<compile_context>
chip_gen: v7x
topology: tpu7x:2x2x1
jax: 0.10.0
libtpu: 0.0.40
codegen_flags: <defaults>
</compile_context>

<pallas_src>
import functools

import jax
import jax.numpy as jnp
from jax.experimental import pallas as pl
from jax.experimental.pallas import tpu as pltpu

BN_EPS = 1e-5


def _row_tile(n):
    # Largest sublane-aligned (multiple-of-8) tile that divides n, else the
    # full extent.  Conv/pool here are row-local along the tiled axis (1x3 conv
    # mixes only along W), so no halo is needed and row tiles pipeline freely.
    for cand in (512, 256, 128, 64, 32, 16, 8):
        if n % cand == 0:
            return cand
    return n


# ----------------------------- pass 1: conv + BN partials --------------------


def _conv_taps_kernel(x_ref, w_ref, y_ref, st_ref, *, C, W, Wt):
    """1x3 conv along W + per-tile BatchNorm partial sums.

    x_ref : (C, TH, W+2)  zero-padded input rows (VMEM)
    w_ref : (C, 3*C)      conv taps in SMEM, w_ref[co, ci*3 + t]
    y_ref : (C, TH, Wt)   conv output (only the Wt = 2*(W//2) columns the pool uses)
    st_ref: (2*C, W)      rows [0:C]  = per-column sums over the TH rows,
                          rows [C:2C] = per-column sums of squares.
    """
    # Hoist the 3 shifted views of every input channel (static lane slices).
    xs = []
    for ci in range(C):
        xc = x_ref[ci]                                   # (TH, W+2)
        xs.append([xc[:, t:t + W] for t in range(3)])    # 3 x (TH, W)

    sums, sqs = [], []
    for co in range(C):
        # NOTE: at C_in = C_out = 4 the channel mix is cheap VPU FMA work and the
        # kernel is memory bound; for wide channels this loop would become
        # per-tap MXU matmuls over a (3*C_in) contraction instead.
        acc = None
        for ci in range(C):
            for t in range(3):
                term = w_ref[co, ci * 3 + t] * xs[ci][t]
                acc = term if acc is None else acc + term
        # Store only the columns the max pool will consume; BN statistics below
        # still cover every valid conv column (incl. an odd trailing column).
        y_ref[co, :, :] = acc[:, :Wt]
        sums.append(jnp.sum(acc, axis=0, keepdims=True))          # (1, W)
        sqs.append(jnp.sum(acc * acc, axis=0, keepdims=True))     # (1, W)
    st_ref[...] = jnp.concatenate(sums + sqs, axis=0)             # (2C, W)


# ----------------------------- pass 2: BN affine + ReLU + pool ----------------


def _bn_relu_pool_kernel(y_ref, ss_ref, o_ref, *, C, Wt, W2):
    """Folded BN affine + ReLU + MaxPool((1,2), stride=(2,2)).

    y_ref : (C, TH2, 2*Wt)  each sublane row = [even conv row | odd conv row]
    ss_ref: (2, C) SMEM     row 0 = scale (gamma*inv_std), row 1 = shift
    o_ref : (C, TH2, W2)
    """
    # 0/1 selection matrices: stride-2 column gather done on the (idle) MXU.
    rows = jax.lax.broadcasted_iota(jnp.int32, (Wt, W2), 0)
    cols = jax.lax.broadcasted_iota(jnp.int32, (Wt, W2), 1)
    sel_even = (rows == 2 * cols).astype(jnp.float32)
    sel_odd = (rows == 2 * cols + 1).astype(jnp.float32)

    for co in range(C):
        z = y_ref[co, :, 0:Wt]                                  # even conv rows (free)
        z = jnp.maximum(z * ss_ref[0, co] + ss_ref[1, co], 0.0) # BN affine + ReLU
        ze = jnp.dot(z, sel_even, preferred_element_type=jnp.float32)
        zo = jnp.dot(z, sel_odd, preferred_element_type=jnp.float32)
        o_ref[co] = jnp.maximum(ze, zo)                         # (TH2, W2)


# ----------------------------- wrapper ---------------------------------------


def _half_stage(x, w_taps, gamma, beta):
    """Conv2d(C,C,(1,3),padding=(1,1), bias folded out) -> BatchNorm2d (training
    batch stats) -> ReLU -> MaxPool2d((1,2), stride=(2,2)).  NCHW in/out."""
    N, C, H, W = x.shape
    assert H % 2 == 0 and W >= 2  # TODO(synk): odd-H tail handling for general shapes
    Hp, Wp = H + 2, W + 2          # conv output height (H padding) / padded width
    W2 = (W - 2) // 2 + 1          # pooled width  (PyTorch floor mode)
    Wt = 2 * W2                    # conv columns the pool actually consumes
    H2p = Hp // 2                  # pooled height (kernel_h = 1, stride 2)

    xp = jnp.pad(x, ((0, 0), (0, 0), (1, 1), (1, 1)))            # (N, C, Hp, Wp)
    w2d = w_taps.reshape(C, 3 * C).astype(jnp.float32)           # [co, ci*3 + t]

    TH = _row_tile(Hp)
    nht = Hp // TH

    y, stats = pl.pallas_call(
        functools.partial(_conv_taps_kernel, C=C, W=W, Wt=Wt),
        out_shape=(
            jax.ShapeDtypeStruct((N, C, Hp, Wt), jnp.float32),       # conv output
            jax.ShapeDtypeStruct((N, nht, 2 * C, W), jnp.float32),   # BN partials
        ),
        grid=(N, nht),
        in_specs=[
            pl.BlockSpec((None, C, TH, Wp), lambda n, h: (n, 0, h, 0)),
            pl.BlockSpec(memory_space=pltpu.MemorySpace.SMEM),
        ],
        out_specs=(
            pl.BlockSpec((None, C, TH, Wt), lambda n, h: (n, 0, h, 0)),
            pl.BlockSpec((None, None, 2 * C, W), lambda n, h: (n, h, 0, 0)),
        ),
        compiler_params=pltpu.CompilerParams(
            dimension_semantics=("parallel", "parallel")),
    )(xp, w2d)

    # Finish the BN reduction (tiny: |stats| = |Y| / TH) and fold gamma/beta +
    # mean/var into one per-channel multiply-add.
    cnt = float(N * Hp * W)
    s1 = jnp.sum(stats[:, :, :C, :], axis=(0, 1, 3))
    s2 = jnp.sum(stats[:, :, C:, :], axis=(0, 1, 3))
    mean = s1 / cnt
    var = jnp.maximum(s2 / cnt - mean * mean, 0.0)  # f32 sum/sumsq is fine at these counts
    scale = gamma * jax.lax.rsqrt(var + BN_EPS)
    shift = beta - mean * scale
    ss = jnp.stack([scale, shift], axis=0).astype(jnp.float32)   # (2, C)

    # Free reshape: each row now holds [even conv row | odd conv row], so the
    # stride-2 row selection of the (1,2)/s2 pool is a plain lane slice.
    y_pairs = y.reshape(N, C, H2p, 2 * Wt)

    TH2 = _row_tile(H2p)
    nh2 = H2p // TH2
    out = pl.pallas_call(
        functools.partial(_bn_relu_pool_kernel, C=C, Wt=Wt, W2=W2),
        out_shape=jax.ShapeDtypeStruct((N, C, H2p, W2), jnp.float32),
        grid=(N, nh2),
        in_specs=[
            pl.BlockSpec((None, C, TH2, 2 * Wt), lambda n, h: (n, 0, h, 0)),
            pl.BlockSpec(memory_space=pltpu.MemorySpace.SMEM),
        ],
        out_specs=pl.BlockSpec((None, C, TH2, W2), lambda n, h: (n, 0, h, 0)),
        compiler_params=pltpu.CompilerParams(
            dimension_semantics=("parallel", "parallel")),
    )(y_pairs, ss)
    return out


def wavelet_conv_forward(x, conv1_w, conv2_w, gamma, beta):
    """Forward of `wavelet_conv` (NCHW, PyTorch training-mode BN semantics)."""
    # conv1 kernel (1, 3): taps along W.
    y = _half_stage(x, conv1_w[:, :, 0, :], gamma, beta)
    # conv2 (3,1) + pool (2,1) are the same ops on the H<->W transposed tensor.
    yt = jnp.transpose(y, (0, 1, 3, 2))
    zt = _half_stage(yt, conv2_w[:, :, :, 0], gamma, beta)
    return jnp.transpose(zt, (0, 1, 3, 2))


if __name__ == "__main__":
    N, C, H, W, K = 2, 4, 16, 16, 3

    key = jax.random.PRNGKey(0)
    kx, kw1, kb1, kw2, kb2 = jax.random.split(key, 5)

    x = jax.random.normal(kx, (N, C, H, W), dtype=jnp.float32)

    # Conv2d default (kaiming-uniform-like) init scales.
    bound1 = 1.0 / (C * 1 * K) ** 0.5
    conv1_w = jax.random.uniform(kw1, (C, C, 1, K), jnp.float32, -bound1, bound1)
    conv1_b = jax.random.uniform(kb1, (C,), jnp.float32, -bound1, bound1)
    bound2 = 1.0 / (C * K * 1) ** 0.5
    conv2_w = jax.random.uniform(kw2, (C, C, K, 1), jnp.float32, -bound2, bound2)
    conv2_b = jax.random.uniform(kb2, (C,), jnp.float32, -bound2, bound2)

    # BatchNorm2d default init.
    gamma = jnp.ones((C,), jnp.float32)
    beta = jnp.zeros((C,), jnp.float32)

    fwd = jax.jit(wavelet_conv_forward)
    out = fwd(x, conv1_w, conv2_w, gamma, beta)
    jax.block_until_ready(out)

    # ---- pure-JAX reference of the PyTorch module (biases INCLUDED: training
    # mode BatchNorm cancels them, which the kernels exploit by folding them out).
    def bn_relu(v):
        mu = v.mean(axis=(0, 2, 3), keepdims=True)
        var = ((v - mu) ** 2).mean(axis=(0, 2, 3), keepdims=True)
        vn = (v - mu) * jax.lax.rsqrt(var + BN_EPS)
        return jnp.maximum(
            vn * gamma.reshape(1, C, 1, 1) + beta.reshape(1, C, 1, 1), 0.0)

    def maxpool(v, kh, kw):
        return jax.lax.reduce_window(v, -jnp.inf, jax.lax.max,
                                     (1, 1, kh, kw), (1, 1, 2, 2), "VALID")

    r = jax.lax.conv_general_dilated(
        x, conv1_w, (1, 1), ((1, 1), (1, 1)),
        dimension_numbers=("NCHW", "OIHW", "NCHW")) + conv1_b.reshape(1, C, 1, 1)
    r = maxpool(bn_relu(r), 1, 2)
    r = jax.lax.conv_general_dilated(
        r, conv2_w, (1, 1), ((1, 1), (1, 1)),
        dimension_numbers=("NCHW", "OIHW", "NCHW")) + conv2_b.reshape(1, C, 1, 1)
    ref = maxpool(bn_relu(r), 2, 1)

    assert out.shape == ref.shape, (out.shape, ref.shape)
    err = float(jnp.max(jnp.abs(out - ref)))
    assert err < 1e-4, f"max abs err {err}"
    print("KERNEL_OK")
</pallas_src>

<mosaic_0001>
module attributes {stable_mosaic.version = 11 : i64} {
  func.func @_conv_taps_kernel(%arg0: i32, %arg1: i32, %arg2: memref<1x4x18x18xf32, #tpu.memory_space<vmem>>, %arg3: memref<4x12xf32, #tpu.memory_space<smem>>, %arg4: memref<1x4x18x16xf32, #tpu.memory_space<vmem>>, %arg5: memref<1x1x8x16xf32, #tpu.memory_space<vmem>>) attributes {dimension_semantics = [#tpu.dimension_semantics<parallel>, #tpu.dimension_semantics<parallel>], iteration_bounds = array<i64: 2, 1>, scalar_prefetch = 0 : i64, scratch_operands = 0 : i64, tpu.core_type = #tpu.core_type<tc>, window_params = [{transform_indices = @transform_0, window_bounds = array<i64: 1, 4, 18, 18>}, {transform_indices = @transform_1, window_bounds = array<i64: 4, 12>}, {transform_indices = @transform_2, window_bounds = array<i64: 1, 4, 18, 16>}, {transform_indices = @transform_3, window_bounds = array<i64: 1, 1, 8, 16>}]} {
    %c0 = arith.constant 0 : index
    %c0_0 = arith.constant 0 : index
    %c0_1 = arith.constant 0 : index
    %c0_2 = arith.constant 0 : index
    %0 = vector.load %arg2[%c0, %c0_0, %c0_1, %c0_2] : memref<1x4x18x18xf32, #tpu.memory_space<vmem>>, vector<1x1x18x18xf32>
    %1 = vector.shape_cast %0 : vector<1x1x18x18xf32> to vector<18x18xf32>
    %2 = vector.extract_strided_slice %1 {offsets = [0, 0], sizes = [18, 16], strides = [1, 1]} : vector<18x18xf32> to vector<18x16xf32>
    %3 = vector.extract_strided_slice %1 {offsets = [0, 1], sizes = [18, 16], strides = [1, 1]} : vector<18x18xf32> to vector<18x16xf32>
    %4 = vector.extract_strided_slice %1 {offsets = [0, 2], sizes = [18, 16], strides = [1, 1]} : vector<18x18xf32> to vector<18x16xf32>
    %c0_3 = arith.constant 0 : index
    %c1 = arith.constant 1 : index
    %c0_4 = arith.constant 0 : index
    %c0_5 = arith.constant 0 : index
    %5 = vector.load %arg2[%c0_3, %c1, %c0_4, %c0_5] : memref<1x4x18x18xf32, #tpu.memory_space<vmem>>, vector<1x1x18x18xf32>
    %6 = vector.shape_cast %5 : vector<1x1x18x18xf32> to vector<18x18xf32>
    %7 = vector.extract_strided_slice %6 {offsets = [0, 0], sizes = [18, 16], strides = [1, 1]} : vector<18x18xf32> to vector<18x16xf32>
    %8 = vector.extract_strided_slice %6 {offsets = [0, 1], sizes = [18, 16], strides = [1, 1]} : vector<18x18xf32> to vector<18x16xf32>
    %9 = vector.extract_strided_slice %6 {offsets = [0, 2], sizes = [18, 16], strides = [1, 1]} : vector<18x18xf32> to vector<18x16xf32>
    %c0_6 = arith.constant 0 : index
    %c2 = arith.constant 2 : index
    %c0_7 = arith.constant 0 : index
    %c0_8 = arith.constant 0 : index
    %10 = vector.load %arg2[%c0_6, %c2, %c0_7, %c0_8] : memref<1x4x18x18xf32, #tpu.memory_space<vmem>>, vector<1x1x18x18xf32>
    %11 = vector.shape_cast %10 : vector<1x1x18x18xf32> to vector<18x18xf32>
    %12 = vector.extract_strided_slice %11 {offsets = [0, 0], sizes = [18, 16], strides = [1, 1]} : vector<18x18xf32> to vector<18x16xf32>
    %13 = vector.extract_strided_slice %11 {offsets = [0, 1], sizes = [18, 16], strides = [1, 1]} : vector<18x18xf32> to vector<18x16xf32>
    %14 = vector.extract_strided_slice %11 {offsets = [0, 2], sizes = [18, 16], strides = [1, 1]} : vector<18x18xf32> to vector<18x16xf32>
    %c0_9 = arith.constant 0 : index
    %c3 = arith.constant 3 : index
    %c0_10 = arith.constant 0 : index
    %c0_11 = arith.constant 0 : index
    %15 = vector.load %arg2[%c0_9, %c3, %c0_10, %c0_11] : memref<1x4x18x18xf32, #tpu.memory_space<vmem>>, vector<1x1x18x18xf32>
    %16 = vector.shape_cast %15 : vector<1x1x18x18xf32> to vector<18x18xf32>
    %17 = vector.extract_strided_slice %16 {offsets = [0, 0], sizes = [18, 16], strides = [1, 1]} : vector<18x18xf32> to vector<18x16xf32>
    %18 = vector.extract_strided_slice %16 {offsets = [0, 1], sizes = [18, 16], strides = [1, 1]} : vector<18x18xf32> to vector<18x16xf32>
    %19 = vector.extract_strided_slice %16 {offsets = [0, 2], sizes = [18, 16], strides = [1, 1]} : vector<18x18xf32> to vector<18x16xf32>
    %c0_12 = arith.constant 0 : index
    %c0_13 = arith.constant 0 : index
    %20 = memref.load %arg3[%c0_12, %c0_13] : memref<4x12xf32, #tpu.memory_space<smem>>
    %21 = vector.broadcast %20 : f32 to vector<18x16xf32>
    %22 = arith.mulf %21, %2 : vector<18x16xf32>
    %c0_14 = arith.constant 0 : index
    %c1_15 = arith.constant 1 : index
    %23 = memref.load %arg3[%c0_14, %c1_15] : memref<4x12xf32, #tpu.memory_space<smem>>
    %24 = vector.broadcast %23 : f32 to vector<18x16xf32>
    %25 = arith.mulf %24, %3 : vector<18x16xf32>
    %26 = arith.addf %22, %25 : vector<18x16xf32>
    %c0_16 = arith.constant 0 : index
    %c2_17 = arith.constant 2 : index
    %27 = memref.load %arg3[%c0_16, %c2_17] : memref<4x12xf32, #tpu.memory_space<smem>>
    %28 = vector.broadcast %27 : f32 to vector<18x16xf32>
    %29 = arith.mulf %28, %4 : vector<18x16xf32>
    %30 = arith.addf %26, %29 : vector<18x16xf32>
    %c0_18 = arith.constant 0 : index
    %c3_19 = arith.constant 3 : index
    %31 = memref.load %arg3[%c0_18, %c3_19] : memref<4x12xf32, #tpu.memory_space<smem>>
    %32 = vector.broadcast %31 : f32 to vector<18x16xf32>
    %33 = arith.mulf %32, %7 : vector<18x16xf32>
    %34 = arith.addf %30, %33 : vector<18x16xf32>
    %c0_20 = arith.constant 0 : index
    %c4 = arith.constant 4 : index
    %35 = memref.load %arg3[%c0_20, %c4] : memref<4x12xf32, #tpu.memory_space<smem>>
    %36 = vector.broadcast %35 : f32 to vector<18x16xf32>
    %37 = arith.mulf %36, %8 : vector<18x16xf32>
    %38 = arith.addf %34, %37 : vector<18x16xf32>
    %c0_21 = arith.constant 0 : index
    %c5 = arith.constant 5 : index
    %39 = memref.load %arg3[%c0_21, %c5] : memref<4x12xf32, #tpu.memory_space<smem>>
    %40 = vector.broadcast %39 : f32 to vector<18x16xf32>
    %41 = arith.mulf %40, %9 : vector<18x16xf32>
    %42 = arith.addf %38, %41 : vector<18x16xf32>
    %c0_22 = arith.constant 0 : index
    %c6 = arith.constant 6 : index
    %43 = memref.load %arg3[%c0_22, %c6] : memref<4x12xf32, #tpu.memory_space<smem>>
    %44 = vector.broadcast %43 : f32 to vector<18x16xf32>
    %45 = arith.mulf %44, %12 : vector<18x16xf32>
    %46 = arith.addf %42, %45 : vector<18x16xf32>
    %c0_23 = arith.constant 0 : index
    %c7 = arith.constant 7 : index
    %47 = memref.load %arg3[%c0_23, %c7] : memref<4x12xf32, #tpu.memory_space<smem>>
    %48 = vector.broadcast %47 : f32 to vector<18x16xf32>
    %49 = arith.mulf %48, %13 : vector<18x16xf32>
    %50 = arith.addf %46, %49 : vector<18x16xf32>
    %c0_24 = arith.constant 0 : index
    %c8 = arith.constant 8 : index
    %51 = memref.load %arg3[%c0_24, %c8] : memref<4x12xf32, #tpu.memory_space<smem>>
    %52 = vector.broadcast %51 : f32 to vector<18x16xf32>
    %53 = arith.mulf %52, %14 : vector<18x16xf32>
    %54 = arith.addf %50, %53 : vector<18x16xf32>
    %c0_25 = arith.constant 0 : index
    %c9 = arith.constant 9 : index
    %55 = memref.load %arg3[%c0_25, %c9] : memref<4x12xf32, #tpu.memory_space<smem>>
    %56 = vector.broadcast %55 : f32 to vector<18x16xf32>
    %57 = arith.mulf %56, %17 : vector<18x16xf32>
    %58 = arith.addf %54, %57 : vector<18x16xf32>
    %c0_26 = arith.constant 0 : index
    %c10 = arith.constant 10 : index
    %59 = memref.load %arg3[%c0_26, %c10] : memref<4x12xf32, #tpu.memory_space<smem>>
    %60 = vector.broadcast %59 : f32 to vector<18x16xf32>
    %61 = arith.mulf %60, %18 : vector<18x16xf32>
    %62 = arith.addf %58, %61 : vector<18x16xf32>
    %c0_27 = arith.constant 0 : index
    %c11 = arith.constant 11 : index
    %63 = memref.load %arg3[%c0_27, %c11] : memref<4x12xf32, #tpu.memory_space<smem>>
    %64 = vector.broadcast %63 : f32 to vector<18x16xf32>
    %65 = arith.mulf %64, %19 : vector<18x16xf32>
    %66 = arith.addf %62, %65 : vector<18x16xf32>
    %c0_28 = arith.constant 0 : index
    %c0_29 = arith.constant 0 : index
    %c0_30 = arith.constant 0 : index
    %c0_31 = arith.constant 0 : index
    %67 = vector.load %arg4[%c0_28, %c0_29, %c0_30, %c0_31] : memref<1x4x18x16xf32, #tpu.memory_space<vmem>>, vector<1x1x18x16xf32>
    %68 = vector.shape_cast %67 : vector<1x1x18x16xf32> to vector<18x16xf32>
    %69 = vector.shape_cast %66 : vector<18x16xf32> to vector<1x1x18x16xf32>
    tpu.vector_store %arg4[%c0_28, %c0_29, %c0_30, %c0_31], %69 {strides = array<i32>} : memref<1x4x18x16xf32, #tpu.memory_space<vmem>>, vector<1x1x18x16xf32>,
    %cst = arith.constant dense<0.000000e+00> : vector<16xf32>
    %70 = vector.multi_reduction <add>, %66, %cst [0] : vector<18x16xf32> to vector<16xf32>
    %71 = vector.shape_cast %70 : vector<16xf32> to vector<1x16xf32>
    %72 = arith.mulf %66, %66 : vector<18x16xf32>
    %cst_32 = arith.constant dense<0.000000e+00> : vector<16xf32>
    %73 = vector.multi_reduction <add>, %72, %cst_32 [0] : vector<18x16xf32> to vector<16xf32>
    %74 = vector.shape_cast %73 : vector<16xf32> to vector<1x16xf32>
    %c1_33 = arith.constant 1 : index
    %c0_34 = arith.constant 0 : index
    %75 = memref.load %arg3[%c1_33, %c0_34] : memref<4x12xf32, #tpu.memory_space<smem>>
    %76 = vector.broadcast %75 : f32 to vector<18x16xf32>
    %77 = arith.mulf %76, %2 : vector<18x16xf32>
    %c1_35 = arith.constant 1 : index
    %c1_36 = arith.constant 1 : index
    %78 = memref.load %arg3[%c1_35, %c1_36] : memref<4x12xf32, #tpu.memory_space<smem>>
    %79 = vector.broadcast %78 : f32 to vector<18x16xf32>
    %80 = arith.mulf %79, %3 : vector<18x16xf32>
    %81 = arith.addf %77, %80 : vector<18x16xf32>
    %c1_37 = arith.constant 1 : index
    %c2_38 = arith.constant 2 : index
    %82 = memref.load %arg3[%c1_37, %c2_38] : memref<4x12xf32, #tpu.memory_space<smem>>
    %83 = vector.broadcast %82 : f32 to vector<18x16xf32>
    %84 = arith.mulf %83, %4 : vector<18x16xf32>
    %85 = arith.addf %81, %84 : vector<18x16xf32>
    %c1_39 = arith.constant 1 : index
    %c3_40 = arith.constant 3 : index
    %86 = memref.load %arg3[%c1_39, %c3_40] : memref<4x12xf32, #tpu.memory_space<smem>>
    %87 = vector.broadcast %86 : f32 to vector<18x16xf32>
    %88 = arith.mulf %87, %7 : vector<18x16xf32>
    %89 = arith.addf %85, %88 : vector<18x16xf32>
    %c1_41 = arith.constant 1 : index
    %c4_42 = arith.constant 4 : index
    %90 = memref.load %arg3[%c1_41, %c4_42] : memref<4x12xf32, #tpu.memory_space<smem>>
    %91 = vector.broadcast %90 : f32 to vector<18x16xf32>
    %92 = arith.mulf %91, %8 : vector<18x16xf32>
    %93 = arith.addf %89, %92 : vector<18x16xf32>
    %c1_43 = arith.constant 1 : index
    %c5_44 = arith.constant 5 : index
    %94 = memref.load %arg3[%c1_43, %c5_44] : memref<4x12xf32, #tpu.memory_space<smem>>
    %95 = vector.broadcast %94 : f32 to vector<18x16xf32>
    %96 = arith.mulf %95, %9 : vector<18x16xf32>
    %97 = arith.addf %93, %96 : vector<18x16xf32>
    %c1_45 = arith.constant 1 : index
    %c6_46 = arith.constant 6 : index
    %98 = memref.load %arg3[%c1_45, %c6_46] : memref<4x12xf32, #tpu.memory_space<smem>>
    %99 = vector.broadcast %98 : f32 to vector<18x16xf32>
    %100 = arith.mulf %99, %12 : vector<18x16xf32>
    %101 = arith.addf %97, %100 : vector<18x16xf32>
    %c1_47 = arith.constant 1 : index
    %c7_48 = arith.constant 7 : index
    %102 = memref.load %arg3[%c1_47, %c7_48] : memref<4x12xf32, #tpu.memory_space<smem>>
    %103 = vector.broadcast %102 : f32 to vector<18x16xf32>
    %104 = arith.mulf %103, %13 : vector<18x16xf32>
    %105 = arith.addf %101, %104 : vector<18x16xf32>
    %c1_49 = arith.constant 1 : index
    %c8_50 = arith.constant 8 : index
    %106 = memref.load %arg3[%c1_49, %c8_50] : memref<4x12xf32, #tpu.memory_space<smem>>
    %107 = vector.broadcast %106 : f32 to vector<18x16xf32>
    %108 = arith.mulf %107, %14 : vector<18x16xf32>
    %109 = arith.addf %105, %108 : vector<18x16xf32>
    %c1_51 = arith.constant 1 : index
    %c9_52 = arith.constant 9 : index
    %110 = memref.load %arg3[%c1_51, %c9_52] : memref<4x12xf32, #tpu.memory_space<smem>>
    %111 = vector.broadcast %110 : f32 to vector<18x16xf32>
    %112 = arith.mulf %111, %17 : vector<18x16xf32>
    %113 = arith.addf %109, %112 : vector<18x16xf32>
    %c1_53 = arith.constant 1 : index
    %c10_54 = arith.constant 10 : index
    %114 = memref.load %arg3[%c1_53, %c10_54] : memref<4x12xf32, #tpu.memory_space<smem>>
    %115 = vector.broadcast %114 : f32 to vector<18x16xf32>
    %116 = arith.mulf %115, %18 : vector<18x16xf32>
    %117 = arith.addf %113, %116 : vector<18x16xf32>
    %c1_55 = arith.constant 1 : index
    %c11_56 = arith.constant 11 : index
    %118 = memref.load %arg3[%c1_55, %c11_56] : memref<4x12xf32, #tpu.memory_space<smem>>
    %119 = vector.broadcast %118 : f32 to vector<18x16xf32>
    %120 = arith.mulf %119, %19 : vector<18x16xf32>
    %121 = arith.addf %117, %120 : vector<18x16xf32>
    %c0_57 = arith.constant 0 : index
    %c1_58 = arith.constant 1 : index
    %c0_59 = arith.constant 0 : index
    %c0_60 = arith.constant 0 : index
    %122 = vector.load %arg4[%c0_57, %c1_58, %c0_59, %c0_60] : memref<1x4x18x16xf32, #tpu.memory_space<vmem>>, vector<1x1x18x16xf32>
    %123 = vector.shape_cast %122 : vector<1x1x18x16xf32> to vector<18x16xf32>
    %124 = vector.shape_cast %121 : vector<18x16xf32> to vector<1x1x18x16xf32>
    tpu.vector_store %arg4[%c0_57, %c1_58, %c0_59, %c0_60], %124 {strides = array<i32>} : memref<1x4x18x16xf32, #tpu.memory_space<vmem>>, vector<1x1x18x16xf32>,
    %cst_61 = arith.constant dense<0.000000e+00> : vector<16xf32>
    %125 = vector.multi_reduction <add>, %121, %cst_61 [0] : vector<18x16xf32> to vector<16xf32>
    %126 = vector.shape_cast %125 : vector<16xf32> to vector<1x16xf32>
    %127 = arith.mulf %121, %121 : vector<18x16xf32>
    %cst_62 = arith.constant dense<0.000000e+00> : vector<16xf32>
    %128 = vector.multi_reduction <add>, %127, %cst_62 [0] : vector<18x16xf32> to vector<16xf32>
    %129 = vector.shape_cast %128 : vector<16xf32> to vector<1x16xf32>
    %c2_63 = arith.constant 2 : index
    %c0_64 = arith.constant 0 : index
    %130 = memref.load %arg3[%c2_63, %c0_64] : memref<4x12xf32, #tpu.memory_space<smem>>
    %131 = vector.broadcast %130 : f32 to vector<18x16xf32>
    %132 = arith.mulf %131, %2 : vector<18x16xf32>
    %c2_65 = arith.constant 2 : index
    %c1_66 = arith.constant 1 : index
    %133 = memref.load %arg3[%c2_65, %c1_66] : memref<4x12xf32, #tpu.memory_space<smem>>
    %134 = vector.broadcast %133 : f32 to vector<18x16xf32>
    %135 = arith.mulf %134, %3 : vector<18x16xf32>
    %136 = arith.addf %132, %135 : vector<18x16xf32>
    %c2_67 = arith.constant 2 : index
    %c2_68 = arith.constant 2 : index
    %137 = memref.load %arg3[%c2_67, %c2_68] : memref<4x12xf32, #tpu.memory_space<smem>>
    %138 = vector.broadcast %137 : f32 to vector<18x16xf32>
    %139 = arith.mulf %138, %4 : vector<18x16xf32>
    %140 = arith.addf %136, %139 : vector<18x16xf32>
    %c2_69 = arith.constant 2 : index
    %c3_70 = arith.constant 3 : index
    %141 = memref.load %arg3[%c2_69, %c3_70] : memref<4x12xf32, #tpu.memory_space<smem>>
    %142 = vector.broadcast %141 : f32 to vector<18x16xf32>
    %143 = arith.mulf %142, %7 : vector<18x16xf32>
    %144 = arith.addf %140, %143 : vector<18x16xf32>
    %c2_71 = arith.constant 2 : index
    %c4_72 = arith.constant 4 : index
    %145 = memref.load %arg3[%c2_71, %c4_72] : memref<4x12xf32, #tpu.memory_space<smem>>
    %146 = vector.broadcast %145 : f32 to vector<18x16xf32>
    %147 = arith.mulf %146, %8 : vector<18x16xf32>
    %148 = arith.addf %144, %147 : vector<18x16xf32>
    %c2_73 = arith.constant 2 : index
    %c5_74 = arith.constant 5 : index
    %149 = memref.load %arg3[%c2_73, %c5_74] : memref<4x12xf32, #tpu.memory_space<smem>>
    %150 = vector.broadcast %149 : f32 to vector<18x16xf32>
    %151 = arith.mulf %150, %9 : vector<18x16xf32>
    %152 = arith.addf %148, %151 : vector<18x16xf32>
    %c2_75 = arith.constant 2 : index
    %c6_76 = arith.constant 6 : index
    %153 = memref.load %arg3[%c2_75, %c6_76] : memref<4x12xf32, #tpu.memory_space<smem>>
    %154 = vector.broadcast %153 : f32 to vector<18x16xf32>
    %155 = arith.mulf %154, %12 : vector<18x16xf32>
    %156 = arith.addf %152, %155 : vector<18x16xf32>
    %c2_77 = arith.constant 2 : index
    %c7_78 = arith.constant 7 : index
    %157 = memref.load %arg3[%c2_77, %c7_78] : memref<4x12xf32, #tpu.memory_space<smem>>
    %158 = vector.broadcast %157 : f32 to vector<18x16xf32>
    %159 = arith.mulf %158, %13 : vector<18x16xf32>
    %160 = arith.addf %156, %159 : vector<18x16xf32>
    %c2_79 = arith.constant 2 : index
    %c8_80 = arith.constant 8 : index
    %161 = memref.load %arg3[%c2_79, %c8_80] : memref<4x12xf32, #tpu.memory_space<smem>>
    %162 = vector.broadcast %161 : f32 to vector<18x16xf32>
    %163 = arith.mulf %162, %14 : vector<18x16xf32>
    %164 = arith.addf %160, %163 : vector<18x16xf32>
    %c2_81 = arith.constant 2 : index
    %c9_82 = arith.constant 9 : index
    %165 = memref.load %arg3[%c2_81, %c9_82] : memref<4x12xf32, #tpu.memory_space<smem>>
    %166 = vector.broadcast %165 : f32 to vector<18x16xf32>
    %167 = arith.mulf %166, %17 : vector<18x16xf32>
    %168 = arith.addf %164, %167 : vector<18x16xf32>
    %c2_83 = arith.constant 2 : index
    %c10_84 = arith.constant 10 : index
    %169 = memref.load %arg3[%c2_83, %c10_84] : memref<4x12xf32, #tpu.memory_space<smem>>
    %170 = vector.broadcast %169 : f32 to vector<18x16xf32>
    %171 = arith.mulf %170, %18 : vector<18x16xf32>
    %172 = arith.addf %168, %171 : vector<18x16xf32>
    %c2_85 = arith.constant 2 : index
    %c11_86 = arith.constant 11 : index
    %173 = memref.load %arg3[%c2_85, %c11_86] : memref<4x12xf32, #tpu.memory_space<smem>>
    %174 = vector.broadcast %173 : f32 to vector<18x16xf32>
    %175 = arith.mulf %174, %19 : vector<18x16xf32>
    %176 = arith.addf %172, %175 : vector<18x16xf32>
    %c0_87 = arith.constant 0 : index
    %c2_88 = arith.constant 2 : index
    %c0_89 = arith.constant 0 : index
    %c0_90 = arith.constant 0 : index
    %177 = vector.load %arg4[%c0_87, %c2_88, %c0_89, %c0_90] : memref<1x4x18x16xf32, #tpu.memory_space<vmem>>, vector<1x1x18x16xf32>
    %178 = vector.shape_cast %177 : vector<1x1x18x16xf32> to vector<18x16xf32>
    %179 = vector.shape_cast %176 : vector<18x16xf32> to vector<1x1x18x16xf32>
    tpu.vector_store %arg4[%c0_87, %c2_88, %c0_89, %c0_90], %179 {strides = array<i32>} : memref<1x4x18x16xf32, #tpu.memory_space<vmem>>, vector<1x1x18x16xf32>,
    %cst_91 = arith.constant dense<0.000000e+00> : vector<16xf32>
    %180 = vector.multi_reduction <add>, %176, %cst_91 [0] : vector<18x16xf32> to vector<16xf32>
    %181 = vector.shape_cast %180 : vector<16xf32> to vector<1x16xf32>
    %182 = arith.mulf %176, %176 : vector<18x16xf32>
    %cst_92 = arith.constant dense<0.000000e+00> : vector<16xf32>
    %183 = vector.multi_reduction <add>, %182, %cst_92 [0] : vector<18x16xf32> to vector<16xf32>
    %184 = vector.shape_cast %183 : vector<16xf32> to vector<1x16xf32>
    %c3_93 = arith.constant 3 : index
    %c0_94 = arith.constant 0 : index
    %185 = memref.load %arg3[%c3_93, %c0_94] : memref<4x12xf32, #tpu.memory_space<smem>>
    %186 = vector.broadcast %185 : f32 to vector<18x16xf32>
    %187 = arith.mulf %186, %2 : vector<18x16xf32>
    %c3_95 = arith.constant 3 : index
    %c1_96 = arith.constant 1 : index
    %188 = memref.load %arg3[%c3_95, %c1_96] : memref<4x12xf32, #tpu.memory_space<smem>>
    %189 = vector.broadcast %188 : f32 to vector<18x16xf32>
    %190 = arith.mulf %189, %3 : vector<18x16xf32>
    %191 = arith.addf %187, %190 : vector<18x16xf32>
    %c3_97 = arith.constant 3 : index
    %c2_98 = arith.constant 2 : index
    %192 = memref.load %arg3[%c3_97, %c2_98] : memref<4x12xf32, #tpu.memory_space<smem>>
    %193 = vector.broadcast %192 : f32 to vector<18x16xf32>
    %194 = arith.mulf %193, %4 : vector<18x16xf32>
    %195 = arith.addf %191, %194 : vector<18x16xf32>
    %c3_99 = arith.constant 3 : index
    %c3_100 = arith.constant 3 : index
    %196 = memref.load %arg3[%c3_99, %c3_100] : memref<4x12xf32, #tpu.memory_space<smem>>
    %197 = vector.broadcast %196 : f32 to vector<18x16xf32>
    %198 = arith.mulf %197, %7 : vector<18x16xf32>
    %199 = arith.addf %195, %198 : vector<18x16xf32>
    %c3_101 = arith.constant 3 : index
    %c4_102 = arith.constant 4 : index
    %200 = memref.load %arg3[%c3_101, %c4_102] : memref<4x12xf32, #tpu.memory_space<smem>>
    %201 = vector.broadcast %200 : f32 to vector<18x16xf32>
    %202 = arith.mulf %201, %8 : vector<18x16xf32>
    %203 = arith.addf %199, %202 : vector<18x16xf32>
    %c3_103 = arith.constant 3 : index
    %c5_104 = arith.constant 5 : index
    %204 = memref.load %arg3[%c3_103, %c5_104] : memref<4x12xf32, #tpu.memory_space<smem>>
    %205 = vector.broadcast %204 : f32 to vector<18x16xf32>
    %206 = arith.mulf %205, %9 : vector<18x16xf32>
    %207 = arith.addf %203, %206 : vector<18x16xf32>
    %c3_105 = arith.constant 3 : index
    %c6_106 = arith.constant 6 : index
    %208 = memref.load %arg3[%c3_105, %c6_106] : memref<4x12xf32, #tpu.memory_space<smem>>
    %209 = vector.broadcast %208 : f32 to vector<18x16xf32>
    %210 = arith.mulf %209, %12 : vector<18x16xf32>
    %211 = arith.addf %207, %210 : vector<18x16xf32>
    %c3_107 = arith.constant 3 : index
    %c7_108 = arith.constant 7 : index
    %212 = memref.load %arg3[%c3_107, %c7_108] : memref<4x12xf32, #tpu.memory_space<smem>>
    %213 = vector.broadcast %212 : f32 to vector<18x16xf32>
    %214 = arith.mulf %213, %13 : vector<18x16xf32>
    %215 = arith.addf %211, %214 : vector<18x16xf32>
    %c3_109 = arith.constant 3 : index
    %c8_110 = arith.constant 8 : index
    %216 = memref.load %arg3[%c3_109, %c8_110] : memref<4x12xf32, #tpu.memory_space<smem>>
    %217 = vector.broadcast %216 : f32 to vector<18x16xf32>
    %218 = arith.mulf %217, %14 : vector<18x16xf32>
    %219 = arith.addf %215, %218 : vector<18x16xf32>
    %c3_111 = arith.constant 3 : index
    %c9_112 = arith.constant 9 : index
    %220 = memref.load %arg3[%c3_111, %c9_112] : memref<4x12xf32, #tpu.memory_space<smem>>
    %221 = vector.broadcast %220 : f32 to vector<18x16xf32>
    %222 = arith.mulf %221, %17 : vector<18x16xf32>
    %223 = arith.addf %219, %222 : vector<18x16xf32>
    %c3_113 = arith.constant 3 : index
    %c10_114 = arith.constant 10 : index
    %224 = memref.load %arg3[%c3_113, %c10_114] : memref<4x12xf32, #tpu.memory_space<smem>>
    %225 = vector.broadcast %224 : f32 to vector<18x16xf32>
    %226 = arith.mulf %225, %18 : vector<18x16xf32>
    %227 = arith.addf %223, %226 : vector<18x16xf32>
    %c3_115 = arith.constant 3 : index
    %c11_116 = arith.constant 11 : index
    %228 = memref.load %arg3[%c3_115, %c11_116] : memref<4x12xf32, #tpu.memory_space<smem>>
    %229 = vector.broadcast %228 : f32 to vector<18x16xf32>
    %230 = arith.mulf %229, %19 : vector<18x16xf32>
    %231 = arith.addf %227, %230 : vector<18x16xf32>
    %c0_117 = arith.constant 0 : index
    %c3_118 = arith.constant 3 : index
    %c0_119 = arith.constant 0 : index
    %c0_120 = arith.constant 0 : index
    %232 = vector.load %arg4[%c0_117, %c3_118, %c0_119, %c0_120] : memref<1x4x18x16xf32, #tpu.memory_space<vmem>>, vector<1x1x18x16xf32>
    %233 = vector.shape_cast %232 : vector<1x1x18x16xf32> to vector<18x16xf32>
    %234 = vector.shape_cast %231 : vector<18x16xf32> to vector<1x1x18x16xf32>
    tpu.vector_store %arg4[%c0_117, %c3_118, %c0_119, %c0_120], %234 {strides = array<i32>} : memref<1x4x18x16xf32, #tpu.memory_space<vmem>>, vector<1x1x18x16xf32>,
    %cst_121 = arith.constant dense<0.000000e+00> : vector<16xf32>
    %235 = vector.multi_reduction <add>, %231, %cst_121 [0] : vector<18x16xf32> to vector<16xf32>
    %236 = vector.shape_cast %235 : vector<16xf32> to vector<1x16xf32>
    %237 = arith.mulf %231, %231 : vector<18x16xf32>
    %cst_122 = arith.constant dense<0.000000e+00> : vector<16xf32>
    %238 = vector.multi_reduction <add>, %237, %cst_122 [0] : vector<18x16xf32> to vector<16xf32>
    %239 = vector.shape_cast %238 : vector<16xf32> to vector<1x16xf32>
    %240 = tpu.concatenate %71, %126, %181, %236, %74, %129, %184, %239 in 0 : vector<1x16xf32>, vector<1x16xf32>, vector<1x16xf32>, vector<1x16xf32>, vector<1x16xf32>, vector<1x16xf32>, vector<1x16xf32>, vector<1x16xf32> -> vector<8x16xf32>
    %c0_123 = arith.constant 0 : index
    %c0_124 = arith.constant 0 : index
    %c0_125 = arith.constant 0 : index
    %c0_126 = arith.constant 0 : index
    %241 = vector.load %arg5[%c0_123, %c0_124, %c0_125, %c0_126] : memref<1x1x8x16xf32, #tpu.memory_space<vmem>>, vector<1x1x8x16xf32>
    %242 = vector.shape_cast %241 : vector<1x1x8x16xf32> to vector<8x16xf32>
    %243 = vector.shape_cast %240 : vector<8x16xf32> to vector<1x1x8x16xf32>
    tpu.vector_store %arg5[%c0_123, %c0_124, %c0_125, %c0_126], %243 {strides = array<i32>} : memref<1x1x8x16xf32, #tpu.memory_space<vmem>>, vector<1x1x8x16xf32>,
    return
  }
  func.func @transform_0(%arg0: i32, %arg1: i32) -> (i32, i32, i32, i32) {
    %c0_i32 = arith.constant 0 : i32
    %c0_i32_0 = arith.constant 0 : i32
    %c0_i32_1 = arith.constant 0 : i32
    return %arg0, %c0_i32, %arg1, %c0_i32_0 : i32, i32, i32, i32
  }
  func.func @transform_1(%arg0: i32, %arg1: i32) -> (i32, i32) {
    %c0_i32 = arith.constant 0 : i32
    %c0_i32_0 = arith.constant 0 : i32
    %c0_i32_1 = arith.constant 0 : i32
    return %c0_i32, %c0_i32_0 : i32, i32
  }
  func.func @transform_2(%arg0: i32, %arg1: i32) -> (i32, i32, i32, i32) {
    %c0_i32 = arith.constant 0 : i32
    %c0_i32_0 = arith.constant 0 : i32
    %c0_i32_1 = arith.constant 0 : i32
    return %arg0, %c0_i32, %arg1, %c0_i32_0 : i32, i32, i32, i32
  }
  func.func @transform_3(%arg0: i32, %arg1: i32) -> (i32, i32, i32, i32) {
    %c0_i32 = arith.constant 0 : i32
    %c0_i32_0 = arith.constant 0 : i32
    %c0_i32_1 = arith.constant 0 : i32
    return %arg0, %arg1, %c0_i32, %c0_i32_0 : i32, i32, i32, i32
  }
}

module attributes {stable_mosaic.version = 11 : i64} {
  func.func @_bn_relu_pool_kernel(%arg0: i32, %arg1: i32, %arg2: memref<1x4x9x32xf32, #tpu.memory_space<vmem>>, %arg3: memref<2x4xf32, #tpu.memory_space<smem>>, %arg4: memref<1x4x9x8xf32, #tpu.memory_space<vmem>>) attributes {dimension_semantics = [#tpu.dimension_semantics<parallel>, #tpu.dimension_semantics<parallel>], iteration_bounds = array<i64: 2, 1>, scalar_prefetch = 0 : i64, scratch_operands = 0 : i64, tpu.core_type = #tpu.core_type<tc>, window_params = [{transform_indices = @transform_0, window_bounds = array<i64: 1, 4, 9, 32>}, {transform_indices = @transform_1, window_bounds = array<i64: 2, 4>}, {transform_indices = @transform_2, window_bounds = array<i64: 1, 4, 9, 8>}]} {
    %0 = tpu.iota {dimensions = array<i32: 0>} : vector<16x8xi32>
    %1 = tpu.iota {dimensions = array<i32: 1>} : vector<16x8xi32>
    %c2_i32 = arith.constant 2 : i32
    %2 = vector.broadcast %c2_i32 : i32 to vector<16x8xi32>
    %3 = arith.muli %2, %1 : vector<16x8xi32>
    %4 = arith.cmpi eq, %0, %3 : vector<16x8xi32>
    %5 = arith.extui %4 : vector<16x8xi1> to vector<16x8xi32>
    %6 = arith.sitofp %5 : vector<16x8xi32> to vector<16x8xf32>
    %c2_i32_0 = arith.constant 2 : i32
    %7 = vector.broadcast %c2_i32_0 : i32 to vector<16x8xi32>
    %8 = arith.muli %7, %1 : vector<16x8xi32>
    %c1_i32 = arith.constant 1 : i32
    %9 = vector.broadcast %c1_i32 : i32 to vector<16x8xi32>
    %10 = arith.addi %8, %9 : vector<16x8xi32>
    %11 = arith.cmpi eq, %0, %10 : vector<16x8xi32>
    %12 = arith.extui %11 : vector<16x8xi1> to vector<16x8xi32>
    %13 = arith.sitofp %12 : vector<16x8xi32> to vector<16x8xf32>
    %c0 = arith.constant 0 : index
    %c0_1 = arith.constant 0 : index
    %c0_2 = arith.constant 0 : index
    %c0_3 = arith.constant 0 : index
    %14 = vector.load %arg2[%c0, %c0_1, %c0_2, %c0_3] : memref<1x4x9x32xf32, #tpu.memory_space<vmem>>, vector<1x1x9x16xf32>
    %15 = vector.shape_cast %14 : vector<1x1x9x16xf32> to vector<9x16xf32>
    %c0_4 = arith.constant 0 : index
    %c0_5 = arith.constant 0 : index
    %16 = memref.load %arg3[%c0_4, %c0_5] : memref<2x4xf32, #tpu.memory_space<smem>>
    %17 = vector.broadcast %16 : f32 to vector<9x16xf32>
    %18 = arith.mulf %15, %17 : vector<9x16xf32>
    %c1 = arith.constant 1 : index
    %c0_6 = arith.constant 0 : index
    %19 = memref.load %arg3[%c1, %c0_6] : memref<2x4xf32, #tpu.memory_space<smem>>
    %20 = vector.broadcast %19 : f32 to vector<9x16xf32>
    %21 = arith.addf %18, %20 : vector<9x16xf32>
    %cst = arith.constant 0.000000e+00 : f32
    %22 = vector.broadcast %cst : f32 to vector<9x16xf32>
    %23 = arith.maximumf %21, %22 : vector<9x16xf32>
    %cst_7 = arith.constant dense<0.000000e+00> : vector<9x8xf32>
    %24 = tpu.matmul %23, %6, %cst_7 {dimension_numbers = #tpu.dot_dimension_numbers<[1], [0], [0], [1], [0, 0, 1, 1], [], []>} : vector<9x16xf32>, vector<16x8xf32>, vector<9x8xf32> -> vector<9x8xf32>
    %cst_8 = arith.constant dense<0.000000e+00> : vector<9x8xf32>
    %25 = tpu.matmul %23, %13, %cst_8 {dimension_numbers = #tpu.dot_dimension_numbers<[1], [0], [0], [1], [0, 0, 1, 1], [], []>} : vector<9x16xf32>, vector<16x8xf32>, vector<9x8xf32> -> vector<9x8xf32>
    %26 = arith.maximumf %24, %25 : vector<9x8xf32>
    %c0_9 = arith.constant 0 : index
    %c0_10 = arith.constant 0 : index
    %c0_11 = arith.constant 0 : index
    %c0_12 = arith.constant 0 : index
    %27 = vector.load %arg4[%c0_9, %c0_10, %c0_11, %c0_12] : memref<1x4x9x8xf32, #tpu.memory_space<vmem>>, vector<1x1x9x8xf32>
    %28 = vector.shape_cast %27 : vector<1x1x9x8xf32> to vector<9x8xf32>
    %29 = vector.shape_cast %26 : vector<9x8xf32> to vector<1x1x9x8xf32>
    tpu.vector_store %arg4[%c0_9, %c0_10, %c0_11, %c0_12], %29 {strides = array<i32>} : memref<1x4x9x8xf32, #tpu.memory_space<vmem>>, vector<1x1x9x8xf32>,
    %c0_13 = arith.constant 0 : index
    %c1_14 = arith.constant 1 : index
    %c0_15 = arith.constant 0 : index
    %c0_16 = arith.constant 0 : index
    %30 = vector.load %arg2[%c0_13, %c1_14, %c0_15, %c0_16] : memref<1x4x9x32xf32, #tpu.memory_space<vmem>>, vector<1x1x9x16xf32>
    %31 = vector.shape_cast %30 : vector<1x1x9x16xf32> to vector<9x16xf32>
    %c0_17 = arith.constant 0 : index
    %c1_18 = arith.constant 1 : index
    %32 = memref.load %arg3[%c0_17, %c1_18] : memref<2x4xf32, #tpu.memory_space<smem>>
    %33 = vector.broadcast %32 : f32 to vector<9x16xf32>
    %34 = arith.mulf %31, %33 : vector<9x16xf32>
    %c1_19 = arith.constant 1 : index
    %c1_20 = arith.constant 1 : index
    %35 = memref.load %arg3[%c1_19, %c1_20] : memref<2x4xf32, #tpu.memory_space<smem>>
    %36 = vector.broadcast %35 : f32 to vector<9x16xf32>
    %37 = arith.addf %34, %36 : vector<9x16xf32>
    %cst_21 = arith.constant 0.000000e+00 : f32
    %38 = vector.broadcast %cst_21 : f32 to vector<9x16xf32>
    %39 = arith.maximumf %37, %38 : vector<9x16xf32>
    %cst_22 = arith.constant dense<0.000000e+00> : vector<9x8xf32>
    %40 = tpu.matmul %39, %6, %cst_22 {dimension_numbers = #tpu.dot_dimension_numbers<[1], [0], [0], [1], [0, 0, 1, 1], [], []>} : vector<9x16xf32>, vector<16x8xf32>, vector<9x8xf32> -> vector<9x8xf32>
    %cst_23 = arith.constant dense<0.000000e+00> : vector<9x8xf32>
    %41 = tpu.matmul %39, %13, %cst_23 {dimension_numbers = #tpu.dot_dimension_numbers<[1], [0], [0], [1], [0, 0, 1, 1], [], []>} : vector<9x16xf32>, vector<16x8xf32>, vector<9x8xf32> -> vector<9x8xf32>
    %42 = arith.maximumf %40, %41 : vector<9x8xf32>
    %c0_24 = arith.constant 0 : index
    %c1_25 = arith.constant 1 : index
    %c0_26 = arith.constant 0 : index
    %c0_27 = arith.constant 0 : index
    %43 = vector.load %arg4[%c0_24, %c1_25, %c0_26, %c0_27] : memref<1x4x9x8xf32, #tpu.memory_space<vmem>>, vector<1x1x9x8xf32>
    %44 = vector.shape_cast %43 : vector<1x1x9x8xf32> to vector<9x8xf32>
    %45 = vector.shape_cast %42 : vector<9x8xf32> to vector<1x1x9x8xf32>
    tpu.vector_store %arg4[%c0_24, %c1_25, %c0_26, %c0_27], %45 {strides = array<i32>} : memref<1x4x9x8xf32, #tpu.memory_space<vmem>>, vector<1x1x9x8xf32>,
    %c0_28 = arith.constant 0 : index
    %c2 = arith.constant 2 : index
    %c0_29 = arith.constant 0 : index
    %c0_30 = arith.constant 0 : index
    %46 = vector.load %arg2[%c0_28, %c2, %c0_29, %c0_30] : memref<1x4x9x32xf32, #tpu.memory_space<vmem>>, vector<1x1x9x16xf32>
    %47 = vector.shape_cast %46 : vector<1x1x9x16xf32> to vector<9x16xf32>
    %c0_31 = arith.constant 0 : index
    %c2_32 = arith.constant 2 : index
    %48 = memref.load %arg3[%c0_31, %c2_32] : memref<2x4xf32, #tpu.memory_space<smem>>
    %49 = vector.broadcast %48 : f32 to vector<9x16xf32>
    %50 = arith.mulf %47, %49 : vector<9x16xf32>
    %c1_33 = arith.constant 1 : index
    %c2_34 = arith.constant 2 : index
    %51 = memref.load %arg3[%c1_33, %c2_34] : memref<2x4xf32, #tpu.memory_space<smem>>
    %52 = vector.broadcast %51 : f32 to vector<9x16xf32>
    %53 = arith.addf %50, %52 : vector<9x16xf32>
    %cst_35 = arith.constant 0.000000e+00 : f32
    %54 = vector.broadcast %cst_35 : f32 to vector<9x16xf32>
    %55 = arith.maximumf %53, %54 : vector<9x16xf32>
    %cst_36 = arith.constant dense<0.000000e+00> : vector<9x8xf32>
    %56 = tpu.matmul %55, %6, %cst_36 {dimension_numbers = #tpu.dot_dimension_numbers<[1], [0], [0], [1], [0, 0, 1, 1], [], []>} : vector<9x16xf32>, vector<16x8xf32>, vector<9x8xf32> -> vector<9x8xf32>
    %cst_37 = arith.constant dense<0.000000e+00> : vector<9x8xf32>
    %57 = tpu.matmul %55, %13, %cst_37 {dimension_numbers = #tpu.dot_dimension_numbers<[1], [0], [0], [1], [0, 0, 1, 1], [], []>} : vector<9x16xf32>, vector<16x8xf32>, vector<9x8xf32> -> vector<9x8xf32>
    %58 = arith.maximumf %56, %57 : vector<9x8xf32>
    %c0_38 = arith.constant 0 : index
    %c2_39 = arith.constant 2 : index
    %c0_40 = arith.constant 0 : index
    %c0_41 = arith.constant 0 : index
    %59 = vector.load %arg4[%c0_38, %c2_39, %c0_40, %c0_41] : memref<1x4x9x8xf32, #tpu.memory_space<vmem>>, vector<1x1x9x8xf32>
    %60 = vector.shape_cast %59 : vector<1x1x9x8xf32> to vector<9x8xf32>
    %61 = vector.shape_cast %58 : vector<9x8xf32> to vector<1x1x9x8xf32>
    tpu.vector_store %arg4[%c0_38, %c2_39, %c0_40, %c0_41], %61 {strides = array<i32>} : memref<1x4x9x8xf32, #tpu.memory_space<vmem>>, vector<1x1x9x8xf32>,
    %c0_42 = arith.constant 0 : index
    %c3 = arith.constant 3 : index
    %c0_43 = arith.constant 0 : index
    %c0_44 = arith.constant 0 : index
    %62 = vector.load %arg2[%c0_42, %c3, %c0_43, %c0_44] : memref<1x4x9x32xf32, #tpu.memory_space<vmem>>, vector<1x1x9x16xf32>
    %63 = vector.shape_cast %62 : vector<1x1x9x16xf32> to vector<9x16xf32>
    %c0_45 = arith.constant 0 : index
    %c3_46 = arith.constant 3 : index
    %64 = memref.load %arg3[%c0_45, %c3_46] : memref<2x4xf32, #tpu.memory_space<smem>>
    %65 = vector.broadcast %64 : f32 to vector<9x16xf32>
    %66 = arith.mulf %63, %65 : vector<9x16xf32>
    %c1_47 = arith.constant 1 : index
    %c3_48 = arith.constant 3 : index
    %67 = memref.load %arg3[%c1_47, %c3_48] : memref<2x4xf32, #tpu.memory_space<smem>>
    %68 = vector.broadcast %67 : f32 to vector<9x16xf32>
    %69 = arith.addf %66, %68 : vector<9x16xf32>
    %cst_49 = arith.constant 0.000000e+00 : f32
    %70 = vector.broadcast %cst_49 : f32 to vector<9x16xf32>
    %71 = arith.maximumf %69, %70 : vector<9x16xf32>
    %cst_50 = arith.constant dense<0.000000e+00> : vector<9x8xf32>
    %72 = tpu.matmul %71, %6, %cst_50 {dimension_numbers = #tpu.dot_dimension_numbers<[1], [0], [0], [1], [0, 0, 1, 1], [], []>} : vector<9x16xf32>, vector<16x8xf32>, vector<9x8xf32> -> vector<9x8xf32>
    %cst_51 = arith.constant dense<0.000000e+00> : vector<9x8xf32>
    %73 = tpu.matmul %71, %13, %cst_51 {dimension_numbers = #tpu.dot_dimension_numbers<[1], [0], [0], [1], [0, 0, 1, 1], [], []>} : vector<9x16xf32>, vector<16x8xf32>, vector<9x8xf32> -> vector<9x8xf32>
    %74 = arith.maximumf %72, %73 : vector<9x8xf32>
    %c0_52 = arith.constant 0 : index
    %c3_53 = arith.constant 3 : index
    %c0_54 = arith.constant 0 : index
    %c0_55 = arith.constant 0 : index
    %75 = vector.load %arg4[%c0_52, %c3_53, %c0_54, %c0_55] : memref<1x4x9x8xf32, #tpu.memory_space<vmem>>, vector<1x1x9x8xf32>
    %76 = vector.shape_cast %75 : vector<1x1x9x8xf32> to vector<9x8xf32>
    %77 = vector.shape_cast %74 : vector<9x8xf32> to vector<1x1x9x8xf32>
    tpu.vector_store %arg4[%c0_52, %c3_53, %c0_54, %c0_55], %77 {strides = array<i32>} : memref<1x4x9x8xf32, #tpu.memory_space<vmem>>, vector<1x1x9x8xf32>,
    return
  }
  func.func @transform_0(%arg0: i32, %arg1: i32) -> (i32, i32, i32, i32) {
    %c0_i32 = arith.constant 0 : i32
    %c0_i32_0 = arith.constant 0 : i32
    %c0_i32_1 = arith.constant 0 : i32
    return %arg0, %c0_i32, %arg1, %c0_i32_0 : i32, i32, i32, i32
  }
  func.func @transform_1(%arg0: i32, %arg1: i32) -> (i32, i32) {
    %c0_i32 = arith.constant 0 : i32
    %c0_i32_0 = arith.constant 0 : i32
    %c0_i32_1 = arith.constant 0 : i32
    return %c0_i32, %c0_i32_0 : i32, i32
  }
  func.func @transform_2(%arg0: i32, %arg1: i32) -> (i32, i32, i32, i32) {
    %c0_i32 = arith.constant 0 : i32
    %c0_i32_0 = arith.constant 0 : i32
    %c0_i32_1 = arith.constant 0 : i32
    return %arg0, %c0_i32, %arg1, %c0_i32_0 : i32, i32, i32, i32
  }
}

module attributes {stable_mosaic.version = 11 : i64} {
  func.func @_conv_taps_kernel(%arg0: i32, %arg1: i32, %arg2: memref<1x4x10x11xf32, #tpu.memory_space<vmem>>, %arg3: memref<4x12xf32, #tpu.memory_space<smem>>, %arg4: memref<1x4x10x8xf32, #tpu.memory_space<vmem>>, %arg5: memref<1x1x8x9xf32, #tpu.memory_space<vmem>>) attributes {dimension_semantics = [#tpu.dimension_semantics<parallel>, #tpu.dimension_semantics<parallel>], iteration_bounds = array<i64: 2, 1>, scalar_prefetch = 0 : i64, scratch_operands = 0 : i64, tpu.core_type = #tpu.core_type<tc>, window_params = [{transform_indices = @transform_0, window_bounds = array<i64: 1, 4, 10, 11>}, {transform_indices = @transform_1, window_bounds = array<i64: 4, 12>}, {transform_indices = @transform_2, window_bounds = array<i64: 1, 4, 10, 8>}, {transform_indices = @transform_3, window_bounds = array<i64: 1, 1, 8, 9>}]} {
    %c0 = arith.constant 0 : index
    %c0_0 = arith.constant 0 : index
    %c0_1 = arith.constant 0 : index
    %c0_2 = arith.constant 0 : index
    %0 = vector.load %arg2[%c0, %c0_0, %c0_1, %c0_2] : memref<1x4x10x11xf32, #tpu.memory_space<vmem>>, vector<1x1x10x11xf32>
    %1 = vector.shape_cast %0 : vector<1x1x10x11xf32> to vector<10x11xf32>
    %2 = vector.extract_strided_slice %1 {offsets = [0, 0], sizes = [10, 9], strides = [1, 1]} : vector<10x11xf32> to vector<10x9xf32>
    %3 = vector.extract_strided_slice %1 {offsets = [0, 1], sizes = [10, 9], strides = [1, 1]} : vector<10x11xf32> to vector<10x9xf32>
    %4 = vector.extract_strided_slice %1 {offsets = [0, 2], sizes = [10, 9], strides = [1, 1]} : vector<10x11xf32> to vector<10x9xf32>
    %c0_3 = arith.constant 0 : index
    %c1 = arith.constant 1 : index
    %c0_4 = arith.constant 0 : index
    %c0_5 = arith.constant 0 : index
    %5 = vector.load %arg2[%c0_3, %c1, %c0_4, %c0_5] : memref<1x4x10x11xf32, #tpu.memory_space<vmem>>, vector<1x1x10x11xf32>
    %6 = vector.shape_cast %5 : vector<1x1x10x11xf32> to vector<10x11xf32>
    %7 = vector.extract_strided_slice %6 {offsets = [0, 0], sizes = [10, 9], strides = [1, 1]} : vector<10x11xf32> to vector<10x9xf32>
    %8 = vector.extract_strided_slice %6 {offsets = [0, 1], sizes = [10, 9], strides = [1, 1]} : vector<10x11xf32> to vector<10x9xf32>
    %9 = vector.extract_strided_slice %6 {offsets = [0, 2], sizes = [10, 9], strides = [1, 1]} : vector<10x11xf32> to vector<10x9xf32>
    %c0_6 = arith.constant 0 : index
    %c2 = arith.constant 2 : index
    %c0_7 = arith.constant 0 : index
    %c0_8 = arith.constant 0 : index
    %10 = vector.load %arg2[%c0_6, %c2, %c0_7, %c0_8] : memref<1x4x10x11xf32, #tpu.memory_space<vmem>>, vector<1x1x10x11xf32>
    %11 = vector.shape_cast %10 : vector<1x1x10x11xf32> to vector<10x11xf32>
    %12 = vector.extract_strided_slice %11 {offsets = [0, 0], sizes = [10, 9], strides = [1, 1]} : vector<10x11xf32> to vector<10x9xf32>
    %13 = vector.extract_strided_slice %11 {offsets = [0, 1], sizes = [10, 9], strides = [1, 1]} : vector<10x11xf32> to vector<10x9xf32>
    %14 = vector.extract_strided_slice %11 {offsets = [0, 2], sizes = [10, 9], strides = [1, 1]} : vector<10x11xf32> to vector<10x9xf32>
    %c0_9 = arith.constant 0 : index
    %c3 = arith.constant 3 : index
    %c0_10 = arith.constant 0 : index
    %c0_11 = arith.constant 0 : index
    %15 = vector.load %arg2[%c0_9, %c3, %c0_10, %c0_11] : memref<1x4x10x11xf32, #tpu.memory_space<vmem>>, vector<1x1x10x11xf32>
    %16 = vector.shape_cast %15 : vector<1x1x10x11xf32> to vector<10x11xf32>
    %17 = vector.extract_strided_slice %16 {offsets = [0, 0], sizes = [10, 9], strides = [1, 1]} : vector<10x11xf32> to vector<10x9xf32>
    %18 = vector.extract_strided_slice %16 {offsets = [0, 1], sizes = [10, 9], strides = [1, 1]} : vector<10x11xf32> to vector<10x9xf32>
    %19 = vector.extract_strided_slice %16 {offsets = [0, 2], sizes = [10, 9], strides = [1, 1]} : vector<10x11xf32> to vector<10x9xf32>
    %c0_12 = arith.constant 0 : index
    %c0_13 = arith.constant 0 : index
    %20 = memref.load %arg3[%c0_12, %c0_13] : memref<4x12xf32, #tpu.memory_space<smem>>
    %21 = vector.broadcast %20 : f32 to vector<10x9xf32>
    %22 = arith.mulf %21, %2 : vector<10x9xf32>
    %c0_14 = arith.constant 0 : index
    %c1_15 = arith.constant 1 : index
    %23 = memref.load %arg3[%c0_14, %c1_15] : memref<4x12xf32, #tpu.memory_space<smem>>
    %24 = vector.broadcast %23 : f32 to vector<10x9xf32>
    %25 = arith.mulf %24, %3 : vector<10x9xf32>
    %26 = arith.addf %22, %25 : vector<10x9xf32>
    %c0_16 = arith.constant 0 : index
    %c2_17 = arith.constant 2 : index
    %27 = memref.load %arg3[%c0_16, %c2_17] : memref<4x12xf32, #tpu.memory_space<smem>>
    %28 = vector.broadcast %27 : f32 to vector<10x9xf32>
    %29 = arith.mulf %28, %4 : vector<10x9xf32>
    %30 = arith.addf %26, %29 : vector<10x9xf32>
    %c0_18 = arith.constant 0 : index
    %c3_19 = arith.constant 3 : index
    %31 = memref.load %arg3[%c0_18, %c3_19] : memref<4x12xf32, #tpu.memory_space<smem>>
    %32 = vector.broadcast %31 : f32 to vector<10x9xf32>
    %33 = arith.mulf %32, %7 : vector<10x9xf32>
    %34 = arith.addf %30, %33 : vector<10x9xf32>
    %c0_20 = arith.constant 0 : index
    %c4 = arith.constant 4 : index
    %35 = memref.load %arg3[%c0_20, %c4] : memref<4x12xf32, #tpu.memory_space<smem>>
    %36 = vector.broadcast %35 : f32 to vector<10x9xf32>
    %37 = arith.mulf %36, %8 : vector<10x9xf32>
    %38 = arith.addf %34, %37 : vector<10x9xf32>
    %c0_21 = arith.constant 0 : index
    %c5 = arith.constant 5 : index
    %39 = memref.load %arg3[%c0_21, %c5] : memref<4x12xf32, #tpu.memory_space<smem>>
    %40 = vector.broadcast %39 : f32 to vector<10x9xf32>
    %41 = arith.mulf %40, %9 : vector<10x9xf32>
    %42 = arith.addf %38, %41 : vector<10x9xf32>
    %c0_22 = arith.constant 0 : index
    %c6 = arith.constant 6 : index
    %43 = memref.load %arg3[%c0_22, %c6] : memref<4x12xf32, #tpu.memory_space<smem>>
    %44 = vector.broadcast %43 : f32 to vector<10x9xf32>
    %45 = arith.mulf %44, %12 : vector<10x9xf32>
    %46 = arith.addf %42, %45 : vector<10x9xf32>
    %c0_23 = arith.constant 0 : index
    %c7 = arith.constant 7 : index
    %47 = memref.load %arg3[%c0_23, %c7] : memref<4x12xf32, #tpu.memory_space<smem>>
    %48 = vector.broadcast %47 : f32 to vector<10x9xf32>
    %49 = arith.mulf %48, %13 : vector<10x9xf32>
    %50 = arith.addf %46, %49 : vector<10x9xf32>
    %c0_24 = arith.constant 0 : index
    %c8 = arith.constant 8 : index
    %51 = memref.load %arg3[%c0_24, %c8] : memref<4x12xf32, #tpu.memory_space<smem>>
    %52 = vector.broadcast %51 : f32 to vector<10x9xf32>
    %53 = arith.mulf %52, %14 : vector<10x9xf32>
    %54 = arith.addf %50, %53 : vector<10x9xf32>
    %c0_25 = arith.constant 0 : index
    %c9 = arith.constant 9 : index
    %55 = memref.load %arg3[%c0_25, %c9] : memref<4x12xf32, #tpu.memory_space<smem>>
    %56 = vector.broadcast %55 : f32 to vector<10x9xf32>
    %57 = arith.mulf %56, %17 : vector<10x9xf32>
    %58 = arith.addf %54, %57 : vector<10x9xf32>
    %c0_26 = arith.constant 0 : index
    %c10 = arith.constant 10 : index
    %59 = memref.load %arg3[%c0_26, %c10] : memref<4x12xf32, #tpu.memory_space<smem>>
    %60 = vector.broadcast %59 : f32 to vector<10x9xf32>
    %61 = arith.mulf %60, %18 : vector<10x9xf32>
    %62 = arith.addf %58, %61 : vector<10x9xf32>
    %c0_27 = arith.constant 0 : index
    %c11 = arith.constant 11 : index
    %63 = memref.load %arg3[%c0_27, %c11] : memref<4x12xf32, #tpu.memory_space<smem>>
    %64 = vector.broadcast %63 : f32 to vector<10x9xf32>
    %65 = arith.mulf %64, %19 : vector<10x9xf32>
    %66 = arith.addf %62, %65 : vector<10x9xf32>
    %67 = vector.extract_strided_slice %66 {offsets = [0, 0], sizes = [10, 8], strides = [1, 1]} : vector<10x9xf32> to vector<10x8xf32>
    %c0_28 = arith.constant 0 : index
    %c0_29 = arith.constant 0 : index
    %c0_30 = arith.constant 0 : index
    %c0_31 = arith.constant 0 : index
    %68 = vector.load %arg4[%c0_28, %c0_29, %c0_30, %c0_31] : memref<1x4x10x8xf32, #tpu.memory_space<vmem>>, vector<1x1x10x8xf32>
    %69 = vector.shape_cast %68 : vector<1x1x10x8xf32> to vector<10x8xf32>
    %70 = vector.shape_cast %67 : vector<10x8xf32> to vector<1x1x10x8xf32>
    tpu.vector_store %arg4[%c0_28, %c0_29, %c0_30, %c0_31], %70 {strides = array<i32>} : memref<1x4x10x8xf32, #tpu.memory_space<vmem>>, vector<1x1x10x8xf32>,
    %cst = arith.constant dense<0.000000e+00> : vector<9xf32>
    %71 = vector.multi_reduction <add>, %66, %cst [0] : vector<10x9xf32> to vector<9xf32>
    %72 = vector.shape_cast %71 : vector<9xf32> to vector<1x9xf32>
    %73 = arith.mulf %66, %66 : vector<10x9xf32>
    %cst_32 = arith.constant dense<0.000000e+00> : vector<9xf32>
    %74 = vector.multi_reduction <add>, %73, %cst_32 [0] : vector<10x9xf32> to vector<9xf32>
    %75 = vector.shape_cast %74 : vector<9xf32> to vector<1x9xf32>
    %c1_33 = arith.constant 1 : index
    %c0_34 = arith.constant 0 : index
    %76 = memref.load %arg3[%c1_33, %c0_34] : memref<4x12xf32, #tpu.memory_space<smem>>
    %77 = vector.broadcast %76 : f32 to vector<10x9xf32>
    %78 = arith.mulf %77, %2 : vector<10x9xf32>
    %c1_35 = arith.constant 1 : index
    %c1_36 = arith.constant 1 : index
    %79 = memref.load %arg3[%c1_35, %c1_36] : memref<4x12xf32, #tpu.memory_space<smem>>
    %80 = vector.broadcast %79 : f32 to vector<10x9xf32>
    %81 = arith.mulf %80, %3 : vector<10x9xf32>
    %82 = arith.addf %78, %81 : vector<10x9xf32>
    %c1_37 = arith.constant 1 : index
    %c2_38 = arith.constant 2 : index
    %83 = memref.load %arg3[%c1_37, %c2_38] : memref<4x12xf32, #tpu.memory_space<smem>>
    %84 = vector.broadcast %83 : f32 to vector<10x9xf32>
    %85 = arith.mulf %84, %4 : vector<10x9xf32>
    %86 = arith.addf %82, %85 : vector<10x9xf32>
    %c1_39 = arith.constant 1 : index
    %c3_40 = arith.constant 3 : index
    %87 = memref.load %arg3[%c1_39, %c3_40] : memref<4x12xf32, #tpu.memory_space<smem>>
    %88 = vector.broadcast %87 : f32 to vector<10x9xf32>
    %89 = arith.mulf %88, %7 : vector<10x9xf32>
    %90 = arith.addf %86, %89 : vector<10x9xf32>
    %c1_41 = arith.constant 1 : index
    %c4_42 = arith.constant 4 : index
    %91 = memref.load %arg3[%c1_41, %c4_42] : memref<4x12xf32, #tpu.memory_space<smem>>
    %92 = vector.broadcast %91 : f32 to vector<10x9xf32>
    %93 = arith.mulf %92, %8 : vector<10x9xf32>
    %94 = arith.addf %90, %93 : vector<10x9xf32>
    %c1_43 = arith.constant 1 : index
    %c5_44 = arith.constant 5 : index
    %95 = memref.load %arg3[%c1_43, %c5_44] : memref<4x12xf32, #tpu.memory_space<smem>>
    %96 = vector.broadcast %95 : f32 to vector<10x9xf32>
    %97 = arith.mulf %96, %9 : vector<10x9xf32>
    %98 = arith.addf %94, %97 : vector<10x9xf32>
    %c1_45 = arith.constant 1 : index
    %c6_46 = arith.constant 6 : index
    %99 = memref.load %arg3[%c1_45, %c6_46] : memref<4x12xf32, #tpu.memory_space<smem>>
    %100 = vector.broadcast %99 : f32 to vector<10x9xf32>
    %101 = arith.mulf %100, %12 : vector<10x9xf32>
    %102 = arith.addf %98, %101 : vector<10x9xf32>
    %c1_47 = arith.constant 1 : index
    %c7_48 = arith.constant 7 : index
    %103 = memref.load %arg3[%c1_47, %c7_48] : memref<4x12xf32, #tpu.memory_space<smem>>
    %104 = vector.broadcast %103 : f32 to vector<10x9xf32>
    %105 = arith.mulf %104, %13 : vector<10x9xf32>
    %106 = arith.addf %102, %105 : vector<10x9xf32>
    %c1_49 = arith.constant 1 : index
    %c8_50 = arith.constant 8 : index
    %107 = memref.load %arg3[%c1_49, %c8_50] : memref<4x12xf32, #tpu.memory_space<smem>>
    %108 = vector.broadcast %107 : f32 to vector<10x9xf32>
    %109 = arith.mulf %108, %14 : vector<10x9xf32>
    %110 = arith.addf %106, %109 : vector<10x9xf32>
    %c1_51 = arith.constant 1 : index
    %c9_52 = arith.constant 9 : index
    %111 = memref.load %arg3[%c1_51, %c9_52] : memref<4x12xf32, #tpu.memory_space<smem>>
    %112 = vector.broadcast %111 : f32 to vector<10x9xf32>
    %113 = arith.mulf %112, %17 : vector<10x9xf32>
    %114 = arith.addf %110, %113 : vector<10x9xf32>
    %c1_53 = arith.constant 1 : index
    %c10_54 = arith.constant 10 : index
    %115 = memref.load %arg3[%c1_53, %c10_54] : memref<4x12xf32, #tpu.memory_space<smem>>
    %116 = vector.broadcast %115 : f32 to vector<10x9xf32>
    %117 = arith.mulf %116, %18 : vector<10x9xf32>
    %118 = arith.addf %114, %117 : vector<10x9xf32>
    %c1_55 = arith.constant 1 : index
    %c11_56 = arith.constant 11 : index
    %119 = memref.load %arg3[%c1_55, %c11_56] : memref<4x12xf32, #tpu.memory_space<smem>>
    %120 = vector.broadcast %119 : f32 to vector<10x9xf32>
    %121 = arith.mulf %120, %19 : vector<10x9xf32>
    %122 = arith.addf %118, %121 : vector<10x9xf32>
    %123 = vector.extract_strided_slice %122 {offsets = [0, 0], sizes = [10, 8], strides = [1, 1]} : vector<10x9xf32> to vector<10x8xf32>
    %c0_57 = arith.constant 0 : index
    %c1_58 = arith.constant 1 : index
    %c0_59 = arith.constant 0 : index
    %c0_60 = arith.constant 0 : index
    %124 = vector.load %arg4[%c0_57, %c1_58, %c0_59, %c0_60] : memref<1x4x10x8xf32, #tpu.memory_space<vmem>>, vector<1x1x10x8xf32>
    %125 = vector.shape_cast %124 : vector<1x1x10x8xf32> to vector<10x8xf32>
    %126 = vector.shape_cast %123 : vector<10x8xf32> to vector<1x1x10x8xf32>
    tpu.vector_store %arg4[%c0_57, %c1_58, %c0_59, %c0_60], %126 {strides = array<i32>} : memref<1x4x10x8xf32, #tpu.memory_space<vmem>>, vector<1x1x10x8xf32>,
    %cst_61 = arith.constant dense<0.000000e+00> : vector<9xf32>
    %127 = vector.multi_reduction <add>, %122, %cst_61 [0] : vector<10x9xf32> to vector<9xf32>
    %128 = vector.shape_cast %127 : vector<9xf32> to vector<1x9xf32>
    %129 = arith.mulf %122, %122 : vector<10x9xf32>
    %cst_62 = arith.constant dense<0.000000e+00> : vector<9xf32>
    %130 = vector.multi_reduction <add>, %129, %cst_62 [0] : vector<10x9xf32> to vector<9xf32>
    %131 = vector.shape_cast %130 : vector<9xf32> to vector<1x9xf32>
    %c2_63 = arith.constant 2 : index
    %c0_64 = arith.constant 0 : index
    %132 = memref.load %arg3[%c2_63, %c0_64] : memref<4x12xf32, #tpu.memory_space<smem>>
    %133 = vector.broadcast %132 : f32 to vector<10x9xf32>
    %134 = arith.mulf %133, %2 : vector<10x9xf32>
    %c2_65 = arith.constant 2 : index
    %c1_66 = arith.constant 1 : index
    %135 = memref.load %arg3[%c2_65, %c1_66] : memref<4x12xf32, #tpu.memory_space<smem>>
    %136 = vector.broadcast %135 : f32 to vector<10x9xf32>
    %137 = arith.mulf %136, %3 : vector<10x9xf32>
    %138 = arith.addf %134, %137 : vector<10x9xf32>
    %c2_67 = arith.constant 2 : index
    %c2_68 = arith.constant 2 : index
    %139 = memref.load %arg3[%c2_67, %c2_68] : memref<4x12xf32, #tpu.memory_space<smem>>
    %140 = vector.broadcast %139 : f32 to vector<10x9xf32>
    %141 = arith.mulf %140, %4 : vector<10x9xf32>
    %142 = arith.addf %138, %141 : vector<10x9xf32>
    %c2_69 = arith.constant 2 : index
    %c3_70 = arith.constant 3 : index
    %143 = memref.load %arg3[%c2_69, %c3_70] : memref<4x12xf32, #tpu.memory_space<smem>>
    %144 = vector.broadcast %143 : f32 to vector<10x9xf32>
    %145 = arith.mulf %144, %7 : vector<10x9xf32>
    %146 = arith.addf %142, %145 : vector<10x9xf32>
    %c2_71 = arith.constant 2 : index
    %c4_72 = arith.constant 4 : index
    %147 = memref.load %arg3[%c2_71, %c4_72] : memref<4x12xf32, #tpu.memory_space<smem>>
    %148 = vector.broadcast %147 : f32 to vector<10x9xf32>
    %149 = arith.mulf %148, %8 : vector<10x9xf32>
    %150 = arith.addf %146, %149 : vector<10x9xf32>
    %c2_73 = arith.constant 2 : index
    %c5_74 = arith.constant 5 : index
    %151 = memref.load %arg3[%c2_73, %c5_74] : memref<4x12xf32, #tpu.memory_space<smem>>
    %152 = vector.broadcast %151 : f32 to vector<10x9xf32>
    %153 = arith.mulf %152, %9 : vector<10x9xf32>
    %154 = arith.addf %150, %153 : vector<10x9xf32>
    %c2_75 = arith.constant 2 : index
    %c6_76 = arith.constant 6 : index
    %155 = memref.load %arg3[%c2_75, %c6_76] : memref<4x12xf32, #tpu.memory_space<smem>>
    %156 = vector.broadcast %155 : f32 to vector<10x9xf32>
    %157 = arith.mulf %156, %12 : vector<10x9xf32>
    %158 = arith.addf %154, %157 : vector<10x9xf32>
    %c2_77 = arith.constant 2 : index
    %c7_78 = arith.constant 7 : index
    %159 = memref.load %arg3[%c2_77, %c7_78] : memref<4x12xf32, #tpu.memory_space<smem>>
    %160 = vector.broadcast %159 : f32 to vector<10x9xf32>
    %161 = arith.mulf %160, %13 : vector<10x9xf32>
    %162 = arith.addf %158, %161 : vector<10x9xf32>
    %c2_79 = arith.constant 2 : index
    %c8_80 = arith.constant 8 : index
    %163 = memref.load %arg3[%c2_79, %c8_80] : memref<4x12xf32, #tpu.memory_space<smem>>
    %164 = vector.broadcast %163 : f32 to vector<10x9xf32>
    %165 = arith.mulf %164, %14 : vector<10x9xf32>
    %166 = arith.addf %162, %165 : vector<10x9xf32>
    %c2_81 = arith.constant 2 : index
    %c9_82 = arith.constant 9 : index
    %167 = memref.load %arg3[%c2_81, %c9_82] : memref<4x12xf32, #tpu.memory_space<smem>>
    %168 = vector.broadcast %167 : f32 to vector<10x9xf32>
    %169 = arith.mulf %168, %17 : vector<10x9xf32>
    %170 = arith.addf %166, %169 : vector<10x9xf32>
    %c2_83 = arith.constant 2 : index
    %c10_84 = arith.constant 10 : index
    %171 = memref.load %arg3[%c2_83, %c10_84] : memref<4x12xf32, #tpu.memory_space<smem>>
    %172 = vector.broadcast %171 : f32 to vector<10x9xf32>
    %173 = arith.mulf %172, %18 : vector<10x9xf32>
    %174 = arith.addf %170, %173 : vector<10x9xf32>
    %c2_85 = arith.constant 2 : index
    %c11_86 = arith.constant 11 : index
    %175 = memref.load %arg3[%c2_85, %c11_86] : memref<4x12xf32, #tpu.memory_space<smem>>
    %176 = vector.broadcast %175 : f32 to vector<10x9xf32>
    %177 = arith.mulf %176, %19 : vector<10x9xf32>
    %178 = arith.addf %174, %177 : vector<10x9xf32>
    %179 = vector.extract_strided_slice %178 {offsets = [0, 0], sizes = [10, 8], strides = [1, 1]} : vector<10x9xf32> to vector<10x8xf32>
    %c0_87 = arith.constant 0 : index
    %c2_88 = arith.constant 2 : index
    %c0_89 = arith.constant 0 : index
    %c0_90 = arith.constant 0 : index
    %180 = vector.load %arg4[%c0_87, %c2_88, %c0_89, %c0_90] : memref<1x4x10x8xf32, #tpu.memory_space<vmem>>, vector<1x1x10x8xf32>
    %181 = vector.shape_cast %180 : vector<1x1x10x8xf32> to vector<10x8xf32>
    %182 = vector.shape_cast %179 : vector<10x8xf32> to vector<1x1x10x8xf32>
    tpu.vector_store %arg4[%c0_87, %c2_88, %c0_89, %c0_90], %182 {strides = array<i32>} : memref<1x4x10x8xf32, #tpu.memory_space<vmem>>, vector<1x1x10x8xf32>,
    %cst_91 = arith.constant dense<0.000000e+00> : vector<9xf32>
    %183 = vector.multi_reduction <add>, %178, %cst_91 [0] : vector<10x9xf32> to vector<9xf32>
    %184 = vector.shape_cast %183 : vector<9xf32> to vector<1x9xf32>
    %185 = arith.mulf %178, %178 : vector<10x9xf32>
    %cst_92 = arith.constant dense<0.000000e+00> : vector<9xf32>
    %186 = vector.multi_reduction <add>, %185, %cst_92 [0] : vector<10x9xf32> to vector<9xf32>
    %187 = vector.shape_cast %186 : vector<9xf32> to vector<1x9xf32>
    %c3_93 = arith.constant 3 : index
    %c0_94 = arith.constant 0 : index
    %188 = memref.load %arg3[%c3_93, %c0_94] : memref<4x12xf32, #tpu.memory_space<smem>>
    %189 = vector.broadcast %188 : f32 to vector<10x9xf32>
    %190 = arith.mulf %189, %2 : vector<10x9xf32>
    %c3_95 = arith.constant 3 : index
    %c1_96 = arith.constant 1 : index
    %191 = memref.load %arg3[%c3_95, %c1_96] : memref<4x12xf32, #tpu.memory_space<smem>>
    %192 = vector.broadcast %191 : f32 to vector<10x9xf32>
    %193 = arith.mulf %192, %3 : vector<10x9xf32>
    %194 = arith.addf %190, %193 : vector<10x9xf32>
    %c3_97 = arith.constant 3 : index
    %c2_98 = arith.constant 2 : index
    %195 = memref.load %arg3[%c3_97, %c2_98] : memref<4x12xf32, #tpu.memory_space<smem>>
    %196 = vector.broadcast %195 : f32 to vector<10x9xf32>
    %197 = arith.mulf %196, %4 : vector<10x9xf32>
    %198 = arith.addf %194, %197 : vector<10x9xf32>
    %c3_99 = arith.constant 3 : index
    %c3_100 = arith.constant 3 : index
    %199 = memref.load %arg3[%c3_99, %c3_100] : memref<4x12xf32, #tpu.memory_space<smem>>
    %200 = vector.broadcast %199 : f32 to vector<10x9xf32>
    %201 = arith.mulf %200, %7 : vector<10x9xf32>
    %202 = arith.addf %198, %201 : vector<10x9xf32>
    %c3_101 = arith.constant 3 : index
    %c4_102 = arith.constant 4 : index
    %203 = memref.load %arg3[%c3_101, %c4_102] : memref<4x12xf32, #tpu.memory_space<smem>>
    %204 = vector.broadcast %203 : f32 to vector<10x9xf32>
    %205 = arith.mulf %204, %8 : vector<10x9xf32>
    %206 = arith.addf %202, %205 : vector<10x9xf32>
    %c3_103 = arith.constant 3 : index
    %c5_104 = arith.constant 5 : index
    %207 = memref.load %arg3[%c3_103, %c5_104] : memref<4x12xf32, #tpu.memory_space<smem>>
    %208 = vector.broadcast %207 : f32 to vector<10x9xf32>
    %209 = arith.mulf %208, %9 : vector<10x9xf32>
    %210 = arith.addf %206, %209 : vector<10x9xf32>
    %c3_105 = arith.constant 3 : index
    %c6_106 = arith.constant 6 : index
    %211 = memref.load %arg3[%c3_105, %c6_106] : memref<4x12xf32, #tpu.memory_space<smem>>
    %212 = vector.broadcast %211 : f32 to vector<10x9xf32>
    %213 = arith.mulf %212, %12 : vector<10x9xf32>
    %214 = arith.addf %210, %213 : vector<10x9xf32>
    %c3_107 = arith.constant 3 : index
    %c7_108 = arith.constant 7 : index
    %215 = memref.load %arg3[%c3_107, %c7_108] : memref<4x12xf32, #tpu.memory_space<smem>>
    %216 = vector.broadcast %215 : f32 to vector<10x9xf32>
    %217 = arith.mulf %216, %13 : vector<10x9xf32>
    %218 = arith.addf %214, %217 : vector<10x9xf32>
    %c3_109 = arith.constant 3 : index
    %c8_110 = arith.constant 8 : index
    %219 = memref.load %arg3[%c3_109, %c8_110] : memref<4x12xf32, #tpu.memory_space<smem>>
    %220 = vector.broadcast %219 : f32 to vector<10x9xf32>
    %221 = arith.mulf %220, %14 : vector<10x9xf32>
    %222 = arith.addf %218, %221 : vector<10x9xf32>
    %c3_111 = arith.constant 3 : index
    %c9_112 = arith.constant 9 : index
    %223 = memref.load %arg3[%c3_111, %c9_112] : memref<4x12xf32, #tpu.memory_space<smem>>
    %224 = vector.broadcast %223 : f32 to vector<10x9xf32>
    %225 = arith.mulf %224, %17 : vector<10x9xf32>
    %226 = arith.addf %222, %225 : vector<10x9xf32>
    %c3_113 = arith.constant 3 : index
    %c10_114 = arith.constant 10 : index
    %227 = memref.load %arg3[%c3_113, %c10_114] : memref<4x12xf32, #tpu.memory_space<smem>>
    %228 = vector.broadcast %227 : f32 to vector<10x9xf32>
    %229 = arith.mulf %228, %18 : vector<10x9xf32>
    %230 = arith.addf %226, %229 : vector<10x9xf32>
    %c3_115 = arith.constant 3 : index
    %c11_116 = arith.constant 11 : index
    %231 = memref.load %arg3[%c3_115, %c11_116] : memref<4x12xf32, #tpu.memory_space<smem>>
    %232 = vector.broadcast %231 : f32 to vector<10x9xf32>
    %233 = arith.mulf %232, %19 : vector<10x9xf32>
    %234 = arith.addf %230, %233 : vector<10x9xf32>
    %235 = vector.extract_strided_slice %234 {offsets = [0, 0], sizes = [10, 8], strides = [1, 1]} : vector<10x9xf32> to vector<10x8xf32>
    %c0_117 = arith.constant 0 : index
    %c3_118 = arith.constant 3 : index
    %c0_119 = arith.constant 0 : index
    %c0_120 = arith.constant 0 : index
    %236 = vector.load %arg4[%c0_117, %c3_118, %c0_119, %c0_120] : memref<1x4x10x8xf32, #tpu.memory_space<vmem>>, vector<1x1x10x8xf32>
    %237 = vector.shape_cast %236 : vector<1x1x10x8xf32> to vector<10x8xf32>
    %238 = vector.shape_cast %235 : vector<10x8xf32> to vector<1x1x10x8xf32>
    tpu.vector_store %arg4[%c0_117, %c3_118, %c0_119, %c0_120], %238 {strides = array<i32>} : memref<1x4x10x8xf32, #tpu.memory_space<vmem>>, vector<1x1x10x8xf32>,
    %cst_121 = arith.constant dense<0.000000e+00> : vector<9xf32>
    %239 = vector.multi_reduction <add>, %234, %cst_121 [0] : vector<10x9xf32> to vector<9xf32>
    %240 = vector.shape_cast %239 : vector<9xf32> to vector<1x9xf32>
    %241 = arith.mulf %234, %234 : vector<10x9xf32>
    %cst_122 = arith.constant dense<0.000000e+00> : vector<9xf32>
    %242 = vector.multi_reduction <add>, %241, %cst_122 [0] : vector<10x9xf32> to vector<9xf32>
    %243 = vector.shape_cast %242 : vector<9xf32> to vector<1x9xf32>
    %244 = tpu.concatenate %72, %128, %184, %240, %75, %131, %187, %243 in 0 : vector<1x9xf32>, vector<1x9xf32>, vector<1x9xf32>, vector<1x9xf32>, vector<1x9xf32>, vector<1x9xf32>, vector<1x9xf32>, vector<1x9xf32> -> vector<8x9xf32>
    %c0_123 = arith.constant 0 : index
    %c0_124 = arith.constant 0 : index
    %c0_125 = arith.constant 0 : index
    %c0_126 = arith.constant 0 : index
    %245 = vector.load %arg5[%c0_123, %c0_124, %c0_125, %c0_126] : memref<1x1x8x9xf32, #tpu.memory_space<vmem>>, vector<1x1x8x9xf32>
    %246 = vector.shape_cast %245 : vector<1x1x8x9xf32> to vector<8x9xf32>
    %247 = vector.shape_cast %244 : vector<8x9xf32> to vector<1x1x8x9xf32>
    tpu.vector_store %arg5[%c0_123, %c0_124, %c0_125, %c0_126], %247 {strides = array<i32>} : memref<1x1x8x9xf32, #tpu.memory_space<vmem>>, vector<1x1x8x9xf32>,
    return
  }
  func.func @transform_0(%arg0: i32, %arg1: i32) -> (i32, i32, i32, i32) {
    %c0_i32 = arith.constant 0 : i32
    %c0_i32_0 = arith.constant 0 : i32
    %c0_i32_1 = arith.constant 0 : i32
    return %arg0, %c0_i32, %arg1, %c0_i32_0 : i32, i32, i32, i32
  }
  func.func @transform_1(%arg0: i32, %arg1: i32) -> (i32, i32) {
    %c0_i32 = arith.constant 0 : i32
    %c0_i32_0 = arith.constant 0 : i32
    %c0_i32_1 = arith.constant 0 : i32
    return %c0_i32, %c0_i32_0 : i32, i32
  }
  func.func @transform_2(%arg0: i32, %arg1: i32) -> (i32, i32, i32, i32) {
    %c0_i32 = arith.constant 0 : i32
    %c0_i32_0 = arith.constant 0 : i32
    %c0_i32_1 = arith.constant 0 : i32
    return %arg0, %c0_i32, %arg1, %c0_i32_0 : i32, i32, i32, i32
  }
  func.func @transform_3(%arg0: i32, %arg1: i32) -> (i32, i32, i32, i32) {
    %c0_i32 = arith.constant 0 : i32
    %c0_i32_0 = arith.constant 0 : i32
    %c0_i32_1 = arith.constant 0 : i32
    return %arg0, %arg1, %c0_i32, %c0_i32_0 : i32, i32, i32, i32
  }
}

module attributes {stable_mosaic.version = 11 : i64} {
  func.func @_bn_relu_pool_kernel(%arg0: i32, %arg1: i32, %arg2: memref<1x4x5x16xf32, #tpu.memory_space<vmem>>, %arg3: memref<2x4xf32, #tpu.memory_space<smem>>, %arg4: memref<1x4x5x4xf32, #tpu.memory_space<vmem>>) attributes {dimension_semantics = [#tpu.dimension_semantics<parallel>, #tpu.dimension_semantics<parallel>], iteration_bounds = array<i64: 2, 1>, scalar_prefetch = 0 : i64, scratch_operands = 0 : i64, tpu.core_type = #tpu.core_type<tc>, window_params = [{transform_indices = @transform_0, window_bounds = array<i64: 1, 4, 5, 16>}, {transform_indices = @transform_1, window_bounds = array<i64: 2, 4>}, {transform_indices = @transform_2, window_bounds = array<i64: 1, 4, 5, 4>}]} {
    %0 = tpu.iota {dimensions = array<i32: 0>} : vector<8x4xi32>
    %1 = tpu.iota {dimensions = array<i32: 1>} : vector<8x4xi32>
    %c2_i32 = arith.constant 2 : i32
    %2 = vector.broadcast %c2_i32 : i32 to vector<8x4xi32>
    %3 = arith.muli %2, %1 : vector<8x4xi32>
    %4 = arith.cmpi eq, %0, %3 : vector<8x4xi32>
    %5 = arith.extui %4 : vector<8x4xi1> to vector<8x4xi32>
    %6 = arith.sitofp %5 : vector<8x4xi32> to vector<8x4xf32>
    %c2_i32_0 = arith.constant 2 : i32
    %7 = vector.broadcast %c2_i32_0 : i32 to vector<8x4xi32>
    %8 = arith.muli %7, %1 : vector<8x4xi32>
    %c1_i32 = arith.constant 1 : i32
    %9 = vector.broadcast %c1_i32 : i32 to vector<8x4xi32>
    %10 = arith.addi %8, %9 : vector<8x4xi32>
    %11 = arith.cmpi eq, %0, %10 : vector<8x4xi32>
    %12 = arith.extui %11 : vector<8x4xi1> to vector<8x4xi32>
    %13 = arith.sitofp %12 : vector<8x4xi32> to vector<8x4xf32>
    %c0 = arith.constant 0 : index
    %c0_1 = arith.constant 0 : index
    %c0_2 = arith.constant 0 : index
    %c0_3 = arith.constant 0 : index
    %14 = vector.load %arg2[%c0, %c0_1, %c0_2, %c0_3] : memref<1x4x5x16xf32, #tpu.memory_space<vmem>>, vector<1x1x5x8xf32>
    %15 = vector.shape_cast %14 : vector<1x1x5x8xf32> to vector<5x8xf32>
    %c0_4 = arith.constant 0 : index
    %c0_5 = arith.constant 0 : index
    %16 = memref.load %arg3[%c0_4, %c0_5] : memref<2x4xf32, #tpu.memory_space<smem>>
    %17 = vector.broadcast %16 : f32 to vector<5x8xf32>
    %18 = arith.mulf %15, %17 : vector<5x8xf32>
    %c1 = arith.constant 1 : index
    %c0_6 = arith.constant 0 : index
    %19 = memref.load %arg3[%c1, %c0_6] : memref<2x4xf32, #tpu.memory_space<smem>>
    %20 = vector.broadcast %19 : f32 to vector<5x8xf32>
    %21 = arith.addf %18, %20 : vector<5x8xf32>
    %cst = arith.constant 0.000000e+00 : f32
    %22 = vector.broadcast %cst : f32 to vector<5x8xf32>
    %23 = arith.maximumf %21, %22 : vector<5x8xf32>
    %cst_7 = arith.constant dense<0.000000e+00> : vector<5x4xf32>
    %24 = tpu.matmul %23, %6, %cst_7 {dimension_numbers = #tpu.dot_dimension_numbers<[1], [0], [0], [1], [0, 0, 1, 1], [], []>} : vector<5x8xf32>, vector<8x4xf32>, vector<5x4xf32> -> vector<5x4xf32>
    %cst_8 = arith.constant dense<0.000000e+00> : vector<5x4xf32>
    %25 = tpu.matmul %23, %13, %cst_8 {dimension_numbers = #tpu.dot_dimension_numbers<[1], [0], [0], [1], [0, 0, 1, 1], [], []>} : vector<5x8xf32>, vector<8x4xf32>, vector<5x4xf32> -> vector<5x4xf32>
    %26 = arith.maximumf %24, %25 : vector<5x4xf32>
    %c0_9 = arith.constant 0 : index
    %c0_10 = arith.constant 0 : index
    %c0_11 = arith.constant 0 : index
    %c0_12 = arith.constant 0 : index
    %27 = vector.load %arg4[%c0_9, %c0_10, %c0_11, %c0_12] : memref<1x4x5x4xf32, #tpu.memory_space<vmem>>, vector<1x1x5x4xf32>
    %28 = vector.shape_cast %27 : vector<1x1x5x4xf32> to vector<5x4xf32>
    %29 = vector.shape_cast %26 : vector<5x4xf32> to vector<1x1x5x4xf32>
    tpu.vector_store %arg4[%c0_9, %c0_10, %c0_11, %c0_12], %29 {strides = array<i32>} : memref<1x4x5x4xf32, #tpu.memory_space<vmem>>, vector<1x1x5x4xf32>,
    %c0_13 = arith.constant 0 : index
    %c1_14 = arith.constant 1 : index
    %c0_15 = arith.constant 0 : index
    %c0_16 = arith.constant 0 : index
    %30 = vector.load %arg2[%c0_13, %c1_14, %c0_15, %c0_16] : memref<1x4x5x16xf32, #tpu.memory_space<vmem>>, vector<1x1x5x8xf32>
    %31 = vector.shape_cast %30 : vector<1x1x5x8xf32> to vector<5x8xf32>
    %c0_17 = arith.constant 0 : index
    %c1_18 = arith.constant 1 : index
    %32 = memref.load %arg3[%c0_17, %c1_18] : memref<2x4xf32, #tpu.memory_space<smem>>
    %33 = vector.broadcast %32 : f32 to vector<5x8xf32>
    %34 = arith.mulf %31, %33 : vector<5x8xf32>
    %c1_19 = arith.constant 1 : index
    %c1_20 = arith.constant 1 : index
    %35 = memref.load %arg3[%c1_19, %c1_20] : memref<2x4xf32, #tpu.memory_space<smem>>
    %36 = vector.broadcast %35 : f32 to vector<5x8xf32>
    %37 = arith.addf %34, %36 : vector<5x8xf32>
    %cst_21 = arith.constant 0.000000e+00 : f32
    %38 = vector.broadcast %cst_21 : f32 to vector<5x8xf32>
    %39 = arith.maximumf %37, %38 : vector<5x8xf32>
    %cst_22 = arith.constant dense<0.000000e+00> : vector<5x4xf32>
    %40 = tpu.matmul %39, %6, %cst_22 {dimension_numbers = #tpu.dot_dimension_numbers<[1], [0], [0], [1], [0, 0, 1, 1], [], []>} : vector<5x8xf32>, vector<8x4xf32>, vector<5x4xf32> -> vector<5x4xf32>
    %cst_23 = arith.constant dense<0.000000e+00> : vector<5x4xf32>
    %41 = tpu.matmul %39, %13, %cst_23 {dimension_numbers = #tpu.dot_dimension_numbers<[1], [0], [0], [1], [0, 0, 1, 1], [], []>} : vector<5x8xf32>, vector<8x4xf32>, vector<5x4xf32> -> vector<5x4xf32>
    %42 = arith.maximumf %40, %41 : vector<5x4xf32>
    %c0_24 = arith.constant 0 : index
    %c1_25 = arith.constant 1 : index
    %c0_26 = arith.constant 0 : index
    %c0_27 = arith.constant 0 : index
    %43 = vector.load %arg4[%c0_24, %c1_25, %c0_26, %c0_27] : memref<1x4x5x4xf32, #tpu.memory_space<vmem>>, vector<1x1x5x4xf32>
    %44 = vector.shape_cast %43 : vector<1x1x5x4xf32> to vector<5x4xf32>
    %45 = vector.shape_cast %42 : vector<5x4xf32> to vector<1x1x5x4xf32>
    tpu.vector_store %arg4[%c0_24, %c1_25, %c0_26, %c0_27], %45 {strides = array<i32>} : memref<1x4x5x4xf32, #tpu.memory_space<vmem>>, vector<1x1x5x4xf32>,
    %c0_28 = arith.constant 0 : index
    %c2 = arith.constant 2 : index
    %c0_29 = arith.constant 0 : index
    %c0_30 = arith.constant 0 : index
    %46 = vector.load %arg2[%c0_28, %c2, %c0_29, %c0_30] : memref<1x4x5x16xf32, #tpu.memory_space<vmem>>, vector<1x1x5x8xf32>
    %47 = vector.shape_cast %46 : vector<1x1x5x8xf32> to vector<5x8xf32>
    %c0_31 = arith.constant 0 : index
    %c2_32 = arith.constant 2 : index
    %48 = memref.load %arg3[%c0_31, %c2_32] : memref<2x4xf32, #tpu.memory_space<smem>>
    %49 = vector.broadcast %48 : f32 to vector<5x8xf32>
    %50 = arith.mulf %47, %49 : vector<5x8xf32>
    %c1_33 = arith.constant 1 : index
    %c2_34 = arith.constant 2 : index
    %51 = memref.load %arg3[%c1_33, %c2_34] : memref<2x4xf32, #tpu.memory_space<smem>>
    %52 = vector.broadcast %51 : f32 to vector<5x8xf32>
    %53 = arith.addf %50, %52 : vector<5x8xf32>
    %cst_35 = arith.constant 0.000000e+00 : f32
    %54 = vector.broadcast %cst_35 : f32 to vector<5x8xf32>
    %55 = arith.maximumf %53, %54 : vector<5x8xf32>
    %cst_36 = arith.constant dense<0.000000e+00> : vector<5x4xf32>
    %56 = tpu.matmul %55, %6, %cst_36 {dimension_numbers = #tpu.dot_dimension_numbers<[1], [0], [0], [1], [0, 0, 1, 1], [], []>} : vector<5x8xf32>, vector<8x4xf32>, vector<5x4xf32> -> vector<5x4xf32>
    %cst_37 = arith.constant dense<0.000000e+00> : vector<5x4xf32>
    %57 = tpu.matmul %55, %13, %cst_37 {dimension_numbers = #tpu.dot_dimension_numbers<[1], [0], [0], [1], [0, 0, 1, 1], [], []>} : vector<5x8xf32>, vector<8x4xf32>, vector<5x4xf32> -> vector<5x4xf32>
    %58 = arith.maximumf %56, %57 : vector<5x4xf32>
    %c0_38 = arith.constant 0 : index
    %c2_39 = arith.constant 2 : index
    %c0_40 = arith.constant 0 : index
    %c0_41 = arith.constant 0 : index
    %59 = vector.load %arg4[%c0_38, %c2_39, %c0_40, %c0_41] : memref<1x4x5x4xf32, #tpu.memory_space<vmem>>, vector<1x1x5x4xf32>
    %60 = vector.shape_cast %59 : vector<1x1x5x4xf32> to vector<5x4xf32>
    %61 = vector.shape_cast %58 : vector<5x4xf32> to vector<1x1x5x4xf32>
    tpu.vector_store %arg4[%c0_38, %c2_39, %c0_40, %c0_41], %61 {strides = array<i32>} : memref<1x4x5x4xf32, #tpu.memory_space<vmem>>, vector<1x1x5x4xf32>,
    %c0_42 = arith.constant 0 : index
    %c3 = arith.constant 3 : index
    %c0_43 = arith.constant 0 : index
    %c0_44 = arith.constant 0 : index
    %62 = vector.load %arg2[%c0_42, %c3, %c0_43, %c0_44] : memref<1x4x5x16xf32, #tpu.memory_space<vmem>>, vector<1x1x5x8xf32>
    %63 = vector.shape_cast %62 : vector<1x1x5x8xf32> to vector<5x8xf32>
    %c0_45 = arith.constant 0 : index
    %c3_46 = arith.constant 3 : index
    %64 = memref.load %arg3[%c0_45, %c3_46] : memref<2x4xf32, #tpu.memory_space<smem>>
    %65 = vector.broadcast %64 : f32 to vector<5x8xf32>
    %66 = arith.mulf %63, %65 : vector<5x8xf32>
    %c1_47 = arith.constant 1 : index
    %c3_48 = arith.constant 3 : index
    %67 = memref.load %arg3[%c1_47, %c3_48] : memref<2x4xf32, #tpu.memory_space<smem>>
    %68 = vector.broadcast %67 : f32 to vector<5x8xf32>
    %69 = arith.addf %66, %68 : vector<5x8xf32>
    %cst_49 = arith.constant 0.000000e+00 : f32
    %70 = vector.broadcast %cst_49 : f32 to vector<5x8xf32>
    %71 = arith.maximumf %69, %70 : vector<5x8xf32>
    %cst_50 = arith.constant dense<0.000000e+00> : vector<5x4xf32>
    %72 = tpu.matmul %71, %6, %cst_50 {dimension_numbers = #tpu.dot_dimension_numbers<[1], [0], [0], [1], [0, 0, 1, 1], [], []>} : vector<5x8xf32>, vector<8x4xf32>, vector<5x4xf32> -> vector<5x4xf32>
    %cst_51 = arith.constant dense<0.000000e+00> : vector<5x4xf32>
    %73 = tpu.matmul %71, %13, %cst_51 {dimension_numbers = #tpu.dot_dimension_numbers<[1], [0], [0], [1], [0, 0, 1, 1], [], []>} : vector<5x8xf32>, vector<8x4xf32>, vector<5x4xf32> -> vector<5x4xf32>
    %74 = arith.maximumf %72, %73 : vector<5x4xf32>
    %c0_52 = arith.constant 0 : index
    %c3_53 = arith.constant 3 : index
    %c0_54 = arith.constant 0 : index
    %c0_55 = arith.constant 0 : index
    %75 = vector.load %arg4[%c0_52, %c3_53, %c0_54, %c0_55] : memref<1x4x5x4xf32, #tpu.memory_space<vmem>>, vector<1x1x5x4xf32>
    %76 = vector.shape_cast %75 : vector<1x1x5x4xf32> to vector<5x4xf32>
    %77 = vector.shape_cast %74 : vector<5x4xf32> to vector<1x1x5x4xf32>
    tpu.vector_store %arg4[%c0_52, %c3_53, %c0_54, %c0_55], %77 {strides = array<i32>} : memref<1x4x5x4xf32, #tpu.memory_space<vmem>>, vector<1x1x5x4xf32>,
    return
  }
  func.func @transform_0(%arg0: i32, %arg1: i32) -> (i32, i32, i32, i32) {
    %c0_i32 = arith.constant 0 : i32
    %c0_i32_0 = arith.constant 0 : i32
    %c0_i32_1 = arith.constant 0 : i32
    return %arg0, %c0_i32, %arg1, %c0_i32_0 : i32, i32, i32, i32
  }
  func.func @transform_1(%arg0: i32, %arg1: i32) -> (i32, i32) {
    %c0_i32 = arith.constant 0 : i32
    %c0_i32_0 = arith.constant 0 : i32
    %c0_i32_1 = arith.constant 0 : i32
    return %c0_i32, %c0_i32_0 : i32, i32
  }
  func.func @transform_2(%arg0: i32, %arg1: i32) -> (i32, i32, i32, i32) {
    %c0_i32 = arith.constant 0 : i32
    %c0_i32_0 = arith.constant 0 : i32
    %c0_i32_1 = arith.constant 0 : i32
    return %arg0, %c0_i32, %arg1, %c0_i32_0 : i32, i32, i32, i32
  }
}

</mosaic_0001>

<bundles_post_ra>
// kernel: squeeze.2
= control target key start
LH: loop header
LB: loop body
LE: loop exit
PB: predicated region body
PF: predicated region fallthrough
CT: control target
= control target key end

     0   :  { %vm21_vm0 = vcmask 23552   ;;  %s56_s14 = smov 3   ;;  %s57_s15 = smov 6   ;;  %vm27_vm1 = vcmask 97352   ;;  %vm33_vm2 = vcmask 72752   ;;  %vm39_vm3 = vcmask 48152   ;;  %s83_s0 = inlined_call_operand.vmem [shape: f32[4,4,1,3], index: 0, kind: input, shape index: {}]   ;;  %s84_s1 = inlined_call_operand.vmem [shape: f32[4,12], index: 1, kind: output, shape index: {}]  }
   0x1   :  { %v49_v0 = vld [vmem:[%s83_s0 + $0xc] sm:$0xf]  ;;  %v50_v1 = vld [vmem:[%s83_s0 + $0x8] sm:$0xf]  ;;  %v51_v2 = vld [vmem:[%s83_s0 + $0x4] sm:$0xf] }
   0x2   :  { %8 = vst [vmem:[#allocation1 + $0x18] sm:$0xf] %v49_v0  ;;  %13 = vst [vmem:[#allocation1 + $0x10] sm:$0xf] %v50_v1  ;;  %v18_v3 = vld [vmem:[%s83_s0] sm:$0xf] }
   0x3   :  { %17 = vst [vmem:[#allocation1 + $0x8] sm:$0xf] %v51_v2  ;;  %19 = vst [vmem:[#allocation1] sm:$0xf] %v18_v3  ;;  %s55_s0 = smov 9  }
   0xa   :  { %v24_v4 = vld [vmem:[#allocation1 + $0x3] ss:$8 sm:$0xf]   ;;  %v36_v5 = vld [vmem:[#allocation1 + $0x1] ss:$8 sm:$0xf]  }
   0xb   :  { %25 = vrot.lane.b32.xlu0 %v24_v4, %s55_s0  ;;  %v20_v6 = vld [vmem:[#allocation1] ss:$8 sm:$0xf]   ;;  %v30_v7 = vld [vmem:[#allocation1 + $0x2] ss:$8 sm:$0xf]   ;;  %37 = vrot.lane.b32.xlu1 %v36_v5, %s56_s14 }
   0xc   :  { %22 = vst.msk [vmem:[#allocation0] sm:$0xf] %vm21_vm0, %v20_v6  }
   0xf   :  { %31 = vrot.lane.b32.xlu0 %v30_v7, %s57_s15 }
  0x7d   :  { %v26_v8 = vpop.permute.xlu0 %25   ;;  %v38_v9 = vpop.permute.xlu1 %37  }
  0x7e   :  { %28 = vst.msk [vmem:[#allocation0] sm:$0xf] %vm27_vm1, %v26_v8  }
  0x81   :  { %v32_v10 = vpop.permute.xlu0 %31  }
  0x82   :  { %34 = vst.msk [vmem:[#allocation0] sm:$0xf] %vm33_vm2, %v32_v10  }
  0x83   :  { %40 = vst.msk [vmem:[#allocation0] sm:$0xf] %vm39_vm3, %v38_v9  }
  0x8a   :  { %v44_v11 = vld [vmem:[#allocation0] sm:$0xf] }
  0x8b   :  { %46 = vst [vmem:[%s84_s1] sm:$0xf] %v44_v11 }

// kernel: squeeze.3
= control target key start
LH: loop header
LB: loop body
LE: loop exit
PB: predicated region body
PF: predicated region fallthrough
CT: control target
= control target key end

     0   :  { %vm21_vm0 = vcmask 23552   ;;  %s56_s14 = smov 3   ;;  %s57_s15 = smov 6   ;;  %vm27_vm1 = vcmask 97352   ;;  %vm33_vm2 = vcmask 72752   ;;  %vm39_vm3 = vcmask 48152   ;;  %s83_s0 = inlined_call_operand.vmem [shape: f32[4,4,3,1], index: 0, kind: input, shape index: {}]   ;;  %s84_s1 = inlined_call_operand.vmem [shape: f32[4,12], index: 1, kind: output, shape index: {}]  }
   0x1   :  { %v49_v0 = vld [vmem:[%s83_s0 + $0xc] sm:$0xf]  ;;  %v50_v1 = vld [vmem:[%s83_s0 + $0x8] sm:$0xf]  ;;  %v51_v2 = vld [vmem:[%s83_s0 + $0x4] sm:$0xf] }
   0x2   :  { %8 = vst [vmem:[#allocation1 + $0x18] sm:$0xf] %v49_v0  ;;  %13 = vst [vmem:[#allocation1 + $0x10] sm:$0xf] %v50_v1  ;;  %v18_v3 = vld [vmem:[%s83_s0] sm:$0xf] }
   0x3   :  { %17 = vst [vmem:[#allocation1 + $0x8] sm:$0xf] %v51_v2  ;;  %19 = vst [vmem:[#allocation1] sm:$0xf] %v18_v3  ;;  %s55_s0 = smov 9  }
   0xa   :  { %v24_v4 = vld [vmem:[#allocation1 + $0x3] ss:$8 sm:$0xf]   ;;  %v36_v5 = vld [vmem:[#allocation1 + $0x1] ss:$8 sm:$0xf]  }
   0xb   :  { %25 = vrot.lane.b32.xlu0 %v24_v4, %s55_s0  ;;  %v20_v6 = vld [vmem:[#allocation1] ss:$8 sm:$0xf]   ;;  %v30_v7 = vld [vmem:[#allocation1 + $0x2] ss:$8 sm:$0xf]   ;;  %37 = vrot.lane.b32.xlu1 %v36_v5, %s56_s14 }
   0xc   :  { %22 = vst.msk [vmem:[#allocation0] sm:$0xf] %vm21_vm0, %v20_v6  }
   0xf   :  { %31 = vrot.lane.b32.xlu0 %v30_v7, %s57_s15 }
  0x7d   :  { %v26_v8 = vpop.permute.xlu0 %25   ;;  %v38_v9 = vpop.permute.xlu1 %37  }
  0x7e   :  { %28 = vst.msk [vmem:[#allocation0] sm:$0xf] %vm27_vm1, %v26_v8  }
  0x81   :  { %v32_v10 = vpop.permute.xlu0 %31  }
  0x82   :  { %34 = vst.msk [vmem:[#allocation0] sm:$0xf] %vm33_vm2, %v32_v10  }
  0x83   :  { %40 = vst.msk [vmem:[#allocation0] sm:$0xf] %vm39_vm3, %v38_v9  }
  0x8a   :  { %v44_v11 = vld [vmem:[#allocation0] sm:$0xf] }
  0x8b   :  { %46 = vst [vmem:[%s84_s1] sm:$0xf] %v44_v11 }

// kernel: wavelet_conv_forward.5
= control target key start
LH: loop header
LB: loop body
LE: loop exit
PB: predicated region body
PF: predicated region fallthrough
CT: control target
= control target key end

     0   :  { %7 = vsyncpa [#allocation3], 0  ;;  %s1298_s9 = smov 0   ;;  %s1300_s10 = smov 0   ;;  %s1469_s0 = inlined_call_operand.vmem [shape: f32[2,4,9,32], index: 0, kind: input, shape index: {}]   ;;  %s1470_s1 = inlined_call_operand.vmem [shape: f32[2,4], index: 1, kind: input, shape index: {}]   ;;  %s1471_s2 = inlined_call_operand.vmem [shape: f32[2,4,9,8], index: 2, kind: output, shape index: {}]  }
   0x1   :  { %s1302_s11 = smov 0  }
   0x2 LB: > { %s1012_s12 = sadd.s32 4294967295, %s1279_s11   ;;  %s25_s13 = sadd.s32 1, %s1275_s10  ;;  %s1279_s11 = sphi %s1302_s11, %s13_s11   ;;  %s1275_s10 = sphi %s1300_s10, %s1479_s10   ;;  %s1271_s9 = sphi %s1298_s9, %s1478_s9  }
   0x3   : > { %p27_p0 = scmp.ge.s32.totalorder %s25_s13, 2  ;;  %p1014_p1 = scmp.ge.s32.totalorder %s1279_s11, 1 }
   0x4   : > { %p107_p2 = scmp.lt.s32.totalorder %s1279_s11, 3  ;;  %p1323_p4 = scmp.eq.s32.totalorder %s1012_s12, 0 }
   0x5   : > { %s1481_s13 = smov (%p27_p0, %s25_s13), 0  ;;  %s120_s18 = sshll.u32 %s1470_s1, 4  ;;  %s121_s18 = int_to_ptr.vmem [resolvable:$true] %s120_s18 }
   0x6   : > { %p1319_p3 = pnand %p1014_p1, %p107_p2  ;;  %s1238_s19 = scalar_lea.vmem %s121_s18, 32 }
   0x7   : > { %p1239_p7 = scmp.ne.s32.totalorder %s121_s18, %s1238_s19  ;;  %p1246_p11 = scmp.lt.s32.totalorder %s121_s18, %s121_s18 }
   0x8   : > { %p1206_p5 = pneg %p1319_p3  ;;  %p1247_p12 = scmp.lt.s32.totalorder %s1238_s19, %s1238_s19 }
   0xa   : > { %p1207_p6 = pnand %p1323_p4, %p1206_p5  ;;  %p1248_p13 = por %p1247_p12, %p1246_p11 }
   0xc   : > { %p1240_p8 = pneg %p1207_p6 }
   0xe   : > { %p1241_p9 = pnand %p1240_p8, %p1239_p7 }
  0x10   : > { %p1242_p10 = pneg %p1241_p9 }
  0x12   : > { %p1249_p0 = pnand %p1248_p13, %p1242_p10 }
  0x14   : > { %1252 = shalt.err (!%p1249_p0)
}
  0x15   : > { %s1281_s20 = smov [#allocation2]   ;;  %146 = sbr.rel (%p1319_p3) target bundleno = 273 (0x111), region = 28 }
  0x16   : > { %1209 = dma.vmem_to_smem (!%p1207_p6), %s121_s18, 32, %s1281_s20, [#allocation3]  }
  0x1c   : > { %1266 = dma.done.wait (%p1323_p4), [#allocation3], 32  }
  0x1d   : > { %1268 = vsyncadd (%p1323_p4), [#allocation3], 4294967264 }
  0x1e   : > { %152 = sfence }
  0x1f   : > { %v197_v0 = vlaneseq  ;;  %p178_p1 = scmp.lt.s32.totalorder %s1271_s9, 1  ;;  %s218_s21 = sld [smem:[#allocation2]]  ;;  %vm228_vm0 = vcmask 130048   ;;  %v1282_v17 = vmov 1.0|1.0   ;;  %vm389_vm7 = vcmask 57344  }
  0x20   : > { %s1341_s22 = sld [smem:[#allocation2 + $0x80]]  ;;  %s1343_s23 = sld [smem:[#allocation2 + $0x1]]  ;;  %vm387_vm8 = vcmask 64512  }
  0x21   : > { %v198_v1 = vshrl.u32 %v197_v0, 7  ;;  %v201_v2 = vand.u32 127, %v197_v0  ;;  %s1483_s9 = smov (!%p178_p1, %s1271_s9), 1  ;;  %s1348_s24 = sld [smem:[#allocation2 + $0x81]] }
  0x22   : > { %s1350_s25 = sld [smem:[#allocation2 + $0x2]]  ;;  %s1080_s26 = sshll.u32 %s1483_s9, 6 }
  0x23   : > { %v199_v3 = vadd.s32 8, %v198_v1  ;;  %v202_v4 = vmul.u32 2, %v201_v2  ;;  %s1353_s27 = sld [smem:[#allocation2 + $0x82]]  ;;  %s1360_s30 = scalar_lea.vmem %s1469_s0, %s1080_s26 }
  0x24   : > { %s1362_s3 = sld [smem:[#allocation2 + $0x3]]  ;;  %v216_v6 = vld [vmem:[%s1360_s30] sm:$0xff]  ;;  %v217_v7 = vld [vmem:[%s1360_s30 + $0x8] sm:$0x1]  ;;  %v1036_v9 = vld [vmem:[%s1360_s30 + $0x10] sm:$0xff]  ;;  %s1442_s7 = scalar_lea.vmem %s1471_s2, %s1080_s26 }
  0x25   : > { %vm203_vm1 = vcmp.eq.s32.totalorder %v198_v1, %v202_v4  ;;  %vm204_vm2 = vcmp.eq.s32.totalorder %v199_v3, %v202_v4  ;;  %v209_v5 = vadd.s32 1, %v202_v4  ;;  %v219_v8 = vstv %s218_s21  ;;  %v1037_v14 = vld [vmem:[%s1360_s30 + $0x18] sm:$0x1]  ;;  %v1050_v16 = vld [vmem:[%s1360_s30 + $0x20] sm:$0xff]  ;;  %s1375_s4 = sld [smem:[#allocation2 + $0x83]]  ;;  %v1064_v26 = vld [vmem:[%s1360_s30 + $0x30] sm:$0xff] }
  0x26   : > { %vm1367_vm3 = vmpackc.low %vm204_vm2, %vm203_vm1  ;;  %v220_v11 = vmul.f32 %v219_v8, %v216_v6  ;;  %v221_v12 = vmul.f32 %v219_v8, %v217_v7  ;;  %v223_v13 = vstv %s1341_s22  ;;  %v395_v15 = vstv %s1343_s23  ;;  %v1051_v20 = vld [vmem:[%s1360_s30 + $0x28] sm:$0x1]  ;;  %v1065_v34 = vld [vmem:[%s1360_s30 + $0x38] sm:$0x1] }
  0x27   : > { %1171 = vmatprep.subr.msk.bf16.mxu0 %vm1367_vm3, %v1282_v17  ;;  %vm210_vm4 = vcmp.eq.s32.totalorder %v198_v1, %v209_v5  ;;  %vm211_vm5 = vcmp.eq.s32.totalorder %v199_v3, %v209_v5  ;;  %v396_v18 = vmul.f32 %v1036_v9, %v395_v15  ;;  %v397_v19 = vmul.f32 %v1037_v14, %v395_v15 }
  0x28   : > { %vm1380_vm6 = vmpackc.low %vm211_vm5, %vm210_vm4  ;;  %1173 = vmatpush3.bf16.msk.msra.mxu0 %vm1367_vm3, %v1282_v17  ;;  %v224_v22 = vadd.f32 %v223_v13, %v220_v11  ;;  %v225_v23 = vadd.f32 %v223_v13, %v221_v12  ;;  %v399_v24 = vstv %s1348_s24  ;;  %v569_v25 = vstv %s1350_s25 }
  0x29   : > { %1175 = vmatprep.subr.msk.bf16.mxu1 %vm1380_vm6, %v1282_v17  ;;  %1179 = vmatprep.subr.msk.bf16.mxu0 %vm1367_vm3, %v1282_v17  ;;  %v400_v27 = vadd.f32 %v399_v24, %v396_v18  ;;  %v401_v28 = vadd.f32 %v399_v24, %v397_v19  ;;  %v570_v29 = vmul.f32 %v1050_v16, %v569_v25  ;;  %v573_v30 = vstv %s1353_s27 }
  0x2a   : > { %1177 = vmatpush3.bf16.msk.msra.mxu1 %vm1380_vm6, %v1282_v17  ;;  %v226_v31 = vmax.f32 %v224_v22, 0.0  ;;  %v227_v32 = vmax.f32 %v225_v23, 0.0  ;;  %v571_v33 = vmul.f32 %v1051_v20, %v569_v25  ;;  %v743_v35 = vstv %s1362_s3 }
  0x2b   : > { %1183 = vmatprep.subr.msk.bf16.mxu1 %vm1380_vm6, %v1282_v17  ;;  %v402_v36 = vmax.f32 %v400_v27, 0.0  ;;  %v574_v37 = vadd.f32 %v573_v30, %v570_v29  ;;  %v744_v38 = vmul.f32 %v1064_v26, %v743_v35  ;;  %v747_v39 = vstv %s1375_s4 }
  0x2c   : > { %1118 = vmatprep.mubr.msk.f32.mxu0 %vm228_vm0, %v226_v31  ;;  %1125 = vmatprep.mubr.msk.f32.mxu1 %vm228_vm0, %v226_v31  ;;  %v403_v40 = vmax.f32 %v401_v28, 0.0  ;;  %v575_v41 = vadd.f32 %v573_v30, %v571_v33  ;;  %v745_v42 = vmul.f32 %v1065_v34, %v743_v35 }
  0x2d   : > { %1119 = vmatmul.mubr.msk.f32.vlgmr.msra.gmra.mrb[0].mxu0 %vm228_vm0, %v227_v32  ;;  %1126 = vmatmul.mubr.msk.f32.vlgmr.msra.gmra.mrb[0].mxu1 %vm228_vm0, %v227_v32  ;;  %v576_v43 = vmax.f32 %v574_v37, 0.0  ;;  %v748_v44 = vadd.f32 %v747_v39, %v744_v38 }
  0x2e   : > { %1181 = vmatpush3.bf16.msk.msra.mxu0 %vm1367_vm3, %v1282_v17  ;;  %1185 = vmatpush3.bf16.msk.msra.mxu1 %vm1380_vm6, %v1282_v17  ;;  %v577_v45 = vmax.f32 %v575_v41, 0.0  ;;  %v749_v46 = vadd.f32 %v747_v39, %v745_v42 }
  0x2f   : > { %1132 = vmatprep.mubr.msk.f32.mxu0 %vm228_vm0, %v402_v36  ;;  %1139 = vmatprep.mubr.msk.f32.mxu1 %vm228_vm0, %v402_v36  ;;  %v750_v47 = vmax.f32 %v748_v44, 0.0 }
  0x30   : > { %1187 = vmatprep.subr.msk.bf16.mxu0 %vm1367_vm3, %v1282_v17  ;;  %1191 = vmatprep.subr.msk.bf16.mxu1 %vm1380_vm6, %v1282_v17  ;;  %v751_v48 = vmax.f32 %v749_v46, 0.0 }
  0x31   : > { %1133 = vmatmul.mubr.msk.f32.vlgmr.msra.gmra.mrb[2].mxu0 %vm228_vm0, %v403_v40  ;;  %1140 = vmatmul.mubr.msk.f32.vlgmr.msra.gmra.mrb[2].mxu1 %vm228_vm0, %v403_v40 }
  0x32   : > { %1189 = vmatpush3.bf16.msk.msra.mxu0 %vm1367_vm3, %v1282_v17  ;;  %1193 = vmatpush3.bf16.msk.msra.mxu1 %vm1380_vm6, %v1282_v17 }
  0x33   : > { %1146 = vmatprep.mubr.msk.f32.mxu0 %vm228_vm0, %v576_v43  ;;  %1153 = vmatprep.mubr.msk.f32.mxu1 %vm228_vm0, %v576_v43 }
  0x34   : > { %1195 = vmatprep.subr.msk.bf16.mxu0 %vm1367_vm3, %v1282_v17  ;;  %1199 = vmatprep.subr.msk.bf16.mxu1 %vm1380_vm6, %v1282_v17 }
  0x35   : > { %1147 = vmatmul.mubr.msk.f32.vlgmr.msra.gmra.mrb[4].mxu0 %vm228_vm0, %v577_v45  ;;  %1154 = vmatmul.mubr.msk.f32.vlgmr.msra.gmra.mrb[4].mxu1 %vm228_vm0, %v577_v45 }
  0x36   : > { %1197 = vmatpush3.bf16.msk.msra.mxu0 %vm1367_vm3, %v1282_v17  ;;  %1201 = vmatpush3.bf16.msk.msra.mxu1 %vm1380_vm6, %v1282_v17 }
  0x37   : > { %1160 = vmatprep.mubr.msk.f32.mxu0 %vm228_vm0, %v750_v47  ;;  %1167 = vmatprep.mubr.msk.f32.mxu1 %vm228_vm0, %v750_v47 }
  0x39   : > { %1161 = vmatmul.mubr.msk.f32.vlgmr.msra.gmra.mrb[6].mxu0 %vm228_vm0, %v751_v48  ;;  %1168 = vmatmul.mubr.msk.f32.vlgmr.msra.gmra.mrb[6].mxu1 %vm228_vm0, %v751_v48 }
 0x100   : > { %v1120_v49 = vpop.f32.mrb[0].mxu0  ;;  %v1127_v50 = vpop.f32.mrb[0].mxu1 }
 0x101   : > { %v386_v51 = vmax.f32 %v1120_v49, %v1127_v50  ;;  %v301_v52 = vpop.f32.mrb[1].mxu0  ;;  %v376_v53 = vpop.f32.mrb[1].mxu1 }
 0x102   : > { %v385_v54 = vmax.f32 %v301_v52, %v376_v53 }
 0x103   : > { %390 = vst.msk [vmem:[%s1442_s7 + $0x8] sm:$0x1] %vm389_vm7, %v386_v51 }
 0x104   : > { %388 = vst.msk [vmem:[%s1442_s7] sm:$0xff] %vm387_vm8, %v385_v54  ;;  %v1134_v55 = vpop.f32.mrb[2].mxu0  ;;  %v1141_v56 = vpop.f32.mrb[2].mxu1 }
 0x105   : > { %v561_v57 = vmax.f32 %v1134_v55, %v1141_v56  ;;  %v476_v58 = vpop.f32.mrb[3].mxu0  ;;  %v551_v59 = vpop.f32.mrb[3].mxu1 }
 0x106   : > { %v560_v60 = vmax.f32 %v476_v58, %v551_v59 }
 0x107   : > { %1049 = vst.msk [vmem:[%s1442_s7 + $0x18] sm:$0x1] %vm389_vm7, %v561_v57 }
 0x108   : > { %1048 = vst.msk [vmem:[%s1442_s7 + $0x10] sm:$0xff] %vm387_vm8, %v560_v60  ;;  %v1148_v61 = vpop.f32.mrb[4].mxu0  ;;  %v1155_v62 = vpop.f32.mrb[4].mxu1 }
 0x109   : > { %v735_v63 = vmax.f32 %v1148_v61, %v1155_v62  ;;  %v650_v0 = vpop.f32.mrb[5].mxu0  ;;  %v725_v1 = vpop.f32.mrb[5].mxu1 }
 0x10a   : > { %v734_v2 = vmax.f32 %v650_v0, %v725_v1 }
 0x10b   : > { %1063 = vst.msk [vmem:[%s1442_s7 + $0x28] sm:$0x1] %vm389_vm7, %v735_v63 }
 0x10c   : > { %1062 = vst.msk [vmem:[%s1442_s7 + $0x20] sm:$0xff] %vm387_vm8, %v734_v2  ;;  %v1162_v3 = vpop.f32.mrb[6].mxu0  ;;  %v1169_v4 = vpop.f32.mrb[6].mxu1 }
 0x10d   : > { %v909_v5 = vmax.f32 %v1162_v3, %v1169_v4  ;;  %v824_v6 = vpop.f32.mrb[7].mxu0  ;;  %v899_v7 = vpop.f32.mrb[7].mxu1 }
 0x10e   : > { %v908_v8 = vmax.f32 %v824_v6, %v899_v7 }
 0x10f   : > { %1077 = vst.msk [vmem:[%s1442_s7 + $0x38] sm:$0x1] %vm389_vm7, %v909_v5 }
 0x110   : > { %1076 = vst.msk [vmem:[%s1442_s7 + $0x30] sm:$0xff] %vm387_vm8, %v908_v8 }
 0x111 PF: > { %s13_s11 = sadd.s32 1, %s1279_s11   ;;  %s1478_s9 = smov %s1275_s10 }
 0x112   : > { %p10_p2 = scmp.ge.s32.totalorder %s13_s11, 4   ;;  %s1479_s10 = smov %s1481_s13 }
 0x114   :  { %12 = sbr.rel (!%p10_p2) target bundleno = 2 (0x2), region = 69 }
 0x11b   :  { %943 = vsyncpa [#allocation3], 1 }
 0x11c   :  { %945 = vsyncpa [#allocation3 + $0x1], 1 }

// kernel: wavelet_conv_forward.4
= control target key start
LH: loop header
LB: loop body
LE: loop exit
PB: predicated region body
PF: predicated region fallthrough
CT: control target
= control target key end

     0   :  { %9 = vsyncpa [#allocation3], 0  ;;  %s1470_s12 = smov 0   ;;  %s1472_s13 = smov 0   ;;  %s1981_s0 = inlined_call_operand.vmem [shape: f32[2,4,18,18], index: 0, kind: input, shape index: {}]   ;;  %s1982_s1 = inlined_call_operand.vmem [shape: f32[4,12], index: 1, kind: input, shape index: {}]   ;;  %s1983_s2 = inlined_call_operand.vmem [shape: f32[2,4,18,16], index: 2, kind: output, shape index: {0}]   ;;  %s1984_s3 = inlined_call_operand.vmem [shape: f32[2,1,8,16], index: 3, kind: output, shape index: {1}]  }
   0x1   :  { %s1474_s14 = smov 0  }
   0x2 LB: > { %s1286_s15 = sadd.s32 4294967295, %s1445_s14   ;;  %s27_s16 = sadd.s32 1, %s1441_s13  ;;  %s1445_s14 = sphi %s1474_s14, %s15_s14   ;;  %s1441_s13 = sphi %s1472_s13, %s2004_s13   ;;  %s1437_s12 = sphi %s1470_s12, %s2003_s12  }
   0x3   : > { %p29_p0 = scmp.ge.s32.totalorder %s27_s16, 2  ;;  %p1288_p1 = scmp.ge.s32.totalorder %s1445_s14, 1 }
   0x4   : > { %p137_p2 = scmp.lt.s32.totalorder %s1445_s14, 3  ;;  %p1495_p4 = scmp.eq.s32.totalorder %s1286_s15, 0 }
   0x5   : > { %s2006_s16 = smov (%p29_p0, %s27_s16), 0  ;;  %s150_s21 = sshll.u32 %s1982_s1, 4  ;;  %s151_s21 = int_to_ptr.vmem [resolvable:$true] %s150_s21 }
   0x6   : > { %p1491_p3 = pnand %p1288_p1, %p137_p2  ;;  %s1404_s22 = scalar_lea.vmem %s151_s21, 64 }
   0x7   : > { %p1405_p7 = scmp.ne.s32.totalorder %s151_s21, %s1404_s22  ;;  %p1412_p11 = scmp.lt.s32.totalorder %s151_s21, %s151_s21 }
   0x8   : > { %p1368_p5 = pneg %p1491_p3  ;;  %p1413_p12 = scmp.lt.s32.totalorder %s1404_s22, %s1404_s22 }
   0xa   : > { %p1369_p6 = pnand %p1495_p4, %p1368_p5  ;;  %p1414_p13 = por %p1413_p12, %p1412_p11 }
   0xc   : > { %p1406_p8 = pneg %p1369_p6 }
   0xe   : > { %p1407_p9 = pnand %p1406_p8, %p1405_p7 }
  0x10   : > { %p1408_p10 = pneg %p1407_p9 }
  0x12   : > { %p1415_p0 = pnand %p1414_p13, %p1408_p10 }
  0x14   : > { %1418 = shalt.err (!%p1415_p0)
}
  0x15   : > { %s1447_s23 = smov [#allocation2]   ;;  %176 = sbr.rel (%p1491_p3) target bundleno = 367 (0x16f), region = 28 }
  0x16   : > { %1371 = dma.vmem_to_smem (!%p1369_p6), %s151_s21, 64, %s1447_s23, [#allocation3]  }
  0x1c   : > { %1432 = dma.done.wait (%p1495_p4), [#allocation3], 64  }
  0x1d   : > { %1434 = vsyncadd (%p1495_p4), [#allocation3], 4294967232 }
  0x1e   : > { %182 = sfence }
  0x1f   : > { %p217_p1 = scmp.lt.s32.totalorder %s1437_s12, 1  ;;  %s1305_s24 = sld [smem:[#allocation2 + $0x1]]  ;;  %vm447_vm0 = vcmask 130048   ;;  %vm450_vm1 = vcmask 123904   ;;  %vm1131_vm2 = vcmask 1040384   ;;  %vm1133_vm3 = vcmask 1041408  }
  0x20   : > { %s1306_s25 = sld [smem:[#allocation2 + $0x2]]  ;;  %s1308_s30 = sld [smem:[#allocation2 + $0x4]]  ;;  %vm1135_vm4 = vcmask 1042432   ;;  %vm1137_vm5 = vcmask 1043456   ;;  %vm1139_vm6 = vcmask 1044480   ;;  %vm1141_vm7 = vcmask 1045504  }
  0x21   : > { %s2008_s12 = smov (!%p217_p1, %s1437_s12), 1  ;;  %s1448_s4 = smov 127   ;;  %vm1143_vm8 = vcmask 1046528  }
  0x22   : > { %s1363_s26 = smul.u32 96, %s2008_s12  ;;  %s1309_s5 = sld [smem:[#allocation2 + $0x5]] }
  0x23   : > { %s1449_s6 = smov 126   ;;  %s1311_s7 = sld [smem:[#allocation2 + $0x7]] }
  0x24   : > { %s1522_s29 = scalar_lea.vmem %s1981_s0, %s1363_s26  ;;  %s1312_s8 = sld [smem:[#allocation2 + $0x8]] }
  0x25   : > { %v264_v0 = vstv %s1305_s24  ;;  %v1525_v1 = vld [vmem:[%s1522_s29 + $0x10] sm:$0x3]  ;;  %v1528_v2 = vld [vmem:[%s1522_s29] sm:$0xff]  ;;  %v1531_v4 = vld [vmem:[%s1522_s29 + $0x8] sm:$0xff]  ;;  %s1314_s9 = sld [smem:[#allocation2 + $0xa]]  ;;  %s1315_s10 = sld [smem:[#allocation2 + $0xb]] }
  0x26   : > { %v284_v3 = vstv %s1306_s25  ;;  %v267_v5 = vmul.f32 %v264_v0, %v1525_v1  ;;  %v265_v6 = vmul.f32 %v264_v0, %v1528_v2  ;;  %v266_v8 = vmul.f32 %v264_v0, %v1531_v4  ;;  %v1544_v11 = vld [vmem:[%s1522_s29 + $0x20] sm:$0xff]  ;;  %v1547_v13 = vld [vmem:[%s1522_s29 + $0x18] sm:$0xff]  ;;  %v1554_v17 = vld [vmem:[%s1522_s29 + $0x28] sm:$0x3]  ;;  %s1317_s11 = sld [smem:[#allocation2 + $0x81]]  ;;  %s1318_s15 = sld [smem:[#allocation2 + $0x82]] }
  0x27   : > { %v285_v7 = vmul.f32 %v284_v3, %v1528_v2  ;;  %v287_v9 = vmul.f32 %v284_v3, %v1525_v1  ;;  %v286_v10 = vmul.f32 %v284_v3, %v1531_v4  ;;  %v312_v12 = vstv %s1308_s30  ;;  %v1565_v22 = vld [vmem:[%s1522_s29 + $0x38] sm:$0xff]  ;;  %v1568_v24 = vld [vmem:[%s1522_s29 + $0x30] sm:$0xff]  ;;  %v1575_v28 = vld [vmem:[%s1522_s29 + $0x40] sm:$0x3]  ;;  %s1320_s17 = sld [smem:[#allocation2 + $0x84]]  ;;  %s1321_s18 = sld [smem:[#allocation2 + $0x85]] }
  0x28   : > { %275 = vrot.lane.b32.xlu1 %v267_v5, %s1448_s4  ;;  %271 = vrot.lane.b32.xlu0 %v265_v6, %s1448_s4  ;;  %v314_v14 = vmul.f32 %v1544_v11, %v312_v12  ;;  %v313_v15 = vmul.f32 %v1547_v13, %v312_v12  ;;  %v332_v16 = vstv %s1309_s5  ;;  %v315_v19 = vmul.f32 %v1554_v17, %v312_v12  ;;  %v1586_v33 = vld [vmem:[%s1522_s29 + $0x50] sm:$0xff]  ;;  %s1323_s19 = sld [smem:[#allocation2 + $0x87]]  ;;  %s1324_s20 = sld [smem:[#allocation2 + $0x88]] }
  0x29   : > { %v333_v18 = vmul.f32 %v1547_v13, %v332_v16  ;;  %v335_v20 = vmul.f32 %v1554_v17, %v332_v16  ;;  %v334_v21 = vmul.f32 %v1544_v11, %v332_v16  ;;  %v360_v23 = vstv %s1311_s7  ;;  %v1589_v35 = vld [vmem:[%s1522_s29 + $0x48] sm:$0xff]  ;;  %v1596_v39 = vld [vmem:[%s1522_s29 + $0x58] sm:$0x3]  ;;  %s1326_s21 = sld [smem:[#allocation2 + $0x8a]]  ;;  %s1332_s22 = sld [smem:[#allocation2 + $0x101]] }
  0x2a   : > { %v362_v25 = vmul.f32 %v1565_v22, %v360_v23  ;;  %v361_v26 = vmul.f32 %v1568_v24, %v360_v23  ;;  %v380_v27 = vstv %s1312_s8  ;;  %v363_v30 = vmul.f32 %v1575_v28, %v360_v23  ;;  %1989 = vst [vmem:[#allocation5_spill] sm:$0xff] %v1596_v39  ;;  %s1347_s23 = sld [smem:[#allocation2 + $0x181]]  ;;  %s1333_s24 = sld [smem:[#allocation2 + $0x102]] }
  0x2b   : > { %v381_v29 = vmul.f32 %v1568_v24, %v380_v27  ;;  %v383_v31 = vmul.f32 %v1575_v28, %v380_v27  ;;  %v382_v32 = vmul.f32 %v1565_v22, %v380_v27  ;;  %v408_v34 = vstv %s1314_s9  ;;  %s1348_s25 = sld [smem:[#allocation2 + $0x182]]  ;;  %s1335_s27 = sld [smem:[#allocation2 + $0x104]] }
  0x2c   : > { %291 = vrot.lane.b32.xlu1 %v285_v7, %s1449_s6  ;;  %273 = vrot.lane.b32.xlu0 %v266_v8, %s1448_s4  ;;  %v410_v36 = vmul.f32 %v1586_v33, %v408_v34  ;;  %v409_v37 = vmul.f32 %v1589_v35, %v408_v34  ;;  %v428_v38 = vstv %s1315_s10  ;;  %v411_v41 = vmul.f32 %v1596_v39, %v408_v34  ;;  %s1350_s28 = sld [smem:[#allocation2 + $0x184]]  ;;  %s1336_s30 = sld [smem:[#allocation2 + $0x105]] }
  0x2d   : > { %v429_v40 = vmul.f32 %v1589_v35, %v428_v38  ;;  %v431_v42 = vmul.f32 %v1596_v39, %v428_v38  ;;  %v430_v43 = vmul.f32 %v1586_v33, %v428_v38  ;;  %v483_v44 = vstv %s1317_s11  ;;  %s1351_s5 = sld [smem:[#allocation2 + $0x185]]  ;;  %s258_s7 = sld [smem:[#allocation2]] }
  0x2e   : > { %v485_v45 = vmul.f32 %v483_v44, %v1531_v4  ;;  %v484_v46 = vmul.f32 %v483_v44, %v1528_v2  ;;  %v503_v47 = vstv %s1318_s15  ;;  %v486_v49 = vmul.f32 %v483_v44, %v1525_v1  ;;  %s1307_s8 = sld [smem:[#allocation2 + $0x3]]  ;;  %s1338_s9 = sld [smem:[#allocation2 + $0x107]] }
  0x2f   : > { %v504_v48 = vmul.f32 %v503_v47, %v1528_v2  ;;  %v506_v50 = vmul.f32 %v503_v47, %v1525_v1  ;;  %v505_v51 = vmul.f32 %v503_v47, %v1531_v4  ;;  %v531_v52 = vstv %s1320_s17  ;;  %s1353_s10 = sld [smem:[#allocation2 + $0x187]]  ;;  %s1310_s11 = sld [smem:[#allocation2 + $0x6]] }
  0x30   : > { %295 = vrot.lane.b32.xlu1 %v287_v9, %s1449_s6  ;;  %293 = vrot.lane.b32.xlu0 %v286_v10, %s1449_s6  ;;  %v533_v53 = vmul.f32 %v1544_v11, %v531_v52  ;;  %v532_v54 = vmul.f32 %v1547_v13, %v531_v52  ;;  %v551_v55 = vstv %s1321_s18  ;;  %v534_v57 = vmul.f32 %v1554_v17, %v531_v52  ;;  %s1339_s15 = sld [smem:[#allocation2 + $0x108]]  ;;  %s1313_s17 = sld [smem:[#allocation2 + $0x9]] }
  0x31   : > { %v552_v56 = vmul.f32 %v1547_v13, %v551_v55  ;;  %v554_v58 = vmul.f32 %v1554_v17, %v551_v55  ;;  %v553_v59 = vmul.f32 %v1544_v11, %v551_v55  ;;  %v579_v60 = vstv %s1323_s19  ;;  %s1354_s18 = sld [smem:[#allocation2 + $0x188]]  ;;  %s1341_s19 = sld [smem:[#allocation2 + $0x10a]] }
  0x32   : > { %v581_v61 = vmul.f32 %v1565_v22, %v579_v60  ;;  %v580_v62 = vmul.f32 %v1568_v24, %v579_v60  ;;  %v599_v63 = vstv %s1324_s20  ;;  %v582_v3 = vmul.f32 %v1575_v28, %v579_v60  ;;  %s1316_s20 = sld [smem:[#allocation2 + $0x80]] }
  0x33   : > { %v600_v0 = vmul.f32 %v1568_v24, %v599_v63  ;;  %v602_v5 = vmul.f32 %v1575_v28, %v599_v63  ;;  %v601_v6 = vmul.f32 %v1565_v22, %v599_v63  ;;  %v627_v7 = vstv %s1326_s21  ;;  %s1327_s21 = sld [smem:[#allocation2 + $0x8b]] }
  0x34   : > { %321 = vrot.lane.b32.xlu1 %v314_v14, %s1448_s4  ;;  %319 = vrot.lane.b32.xlu0 %v313_v15, %s1448_s4  ;;  %v629_v8 = vmul.f32 %v1586_v33, %v627_v7  ;;  %v628_v9 = vmul.f32 %v1589_v35, %v627_v7  ;;  %v701_v10 = vstv %s1332_s22  ;;  %v630_v14 = vmul.f32 %v1596_v39, %v627_v7  ;;  %s1730_s22 = sld [smem:[#allocation2 + $0x18a]] }
  0x35   : > { %v702_v12 = vmul.f32 %v701_v10, %v1528_v2  ;;  %v919_v15 = vstv %s1347_s23  ;;  %v797_v7 = vstv %s1338_s9  ;;  %s1337_s9 = sld [smem:[#allocation2 + $0x106]] }
  0x36   : > { %v920_v16 = vmul.f32 %v919_v15, %v1528_v2 }
  0x38   : > { %339 = vrot.lane.b32.xlu1 %v333_v18, %s1449_s6  ;;  %323 = vrot.lane.b32.xlu0 %v315_v19, %s1448_s4  ;;  %v703_v18 = vmul.f32 %v701_v10, %v1531_v4  ;;  %v704_v19 = vmul.f32 %v701_v10, %v1525_v1 }
  0x3c   : > { %343 = vrot.lane.b32.xlu1 %v335_v20, %s1449_s6  ;;  %341 = vrot.lane.b32.xlu0 %v334_v21, %s1449_s6  ;;  %v921_v20 = vmul.f32 %v919_v15, %v1531_v4  ;;  %v721_v21 = vstv %s1333_s24 }
  0x3d   : > { %v723_v23 = vmul.f32 %v721_v21, %v1531_v4 }
  0x40   : > { %369 = vrot.lane.b32.xlu1 %v362_v25, %s1448_s4  ;;  %367 = vrot.lane.b32.xlu0 %v361_v26, %s1448_s4  ;;  %v722_v25 = vmul.f32 %v721_v21, %v1528_v2  ;;  %v939_v26 = vstv %s1348_s25  ;;  %s1737_s25 = scalar_lea.vmem %s1983_s2, %s1363_s26  ;;  %s1747_s26 = sld [smem:[#allocation2 + $0x83]] }
  0x41   : > { %v940_v27 = vmul.f32 %v939_v26, %v1528_v2 }
  0x44   : > { %387 = vrot.lane.b32.xlu1 %v381_v29, %s1449_s6  ;;  %371 = vrot.lane.b32.xlu0 %v363_v30, %s1448_s4  ;;  %v922_v29 = vmul.f32 %v919_v15, %v1525_v1  ;;  %v724_v30 = vmul.f32 %v721_v21, %v1525_v1 }
  0x48   : > { %391 = vrot.lane.b32.xlu1 %v383_v31, %s1449_s6  ;;  %389 = vrot.lane.b32.xlu0 %v382_v32, %s1449_s6  ;;  %v941_v31 = vmul.f32 %v939_v26, %v1531_v4  ;;  %v749_v32 = vstv %s1335_s27  ;;  %s1342_s27 = sld [smem:[#allocation2 + $0x10b]] }
  0x49   : > { %v750_v34 = vmul.f32 %v1547_v13, %v749_v32 }
  0x4c   : > { %417 = vrot.lane.b32.xlu1 %v410_v36, %s1448_s4  ;;  %415 = vrot.lane.b32.xlu0 %v409_v37, %s1448_s4  ;;  %v942_v36 = vmul.f32 %v939_v26, %v1525_v1  ;;  %v967_v37 = vstv %s1350_s28  ;;  %s1357_s28 = sld [smem:[#allocation2 + $0x18b]] }
  0x4d   : > { %v968_v38 = vmul.f32 %v1547_v13, %v967_v37  ;;  %v969_v44 = vmul.f32 %v1544_v11, %v967_v37 }
  0x50   : > { %435 = vrot.lane.b32.xlu1 %v429_v40, %s1449_s6  ;;  %419 = vrot.lane.b32.xlu0 %v411_v41, %s1448_s4  ;;  %v751_v40 = vmul.f32 %v1544_v11, %v749_v32 }
  0x54   : > { %439 = vrot.lane.b32.xlu1 %v431_v42, %s1449_s6  ;;  %437 = vrot.lane.b32.xlu0 %v430_v43, %s1449_s6  ;;  %v752_v43 = vmul.f32 %v1554_v17, %v749_v32 }
  0x58   : > { %492 = vrot.lane.b32.xlu1 %v485_v45, %s1448_s4  ;;  %490 = vrot.lane.b32.xlu0 %v484_v46, %s1448_s4  ;;  %v769_v45 = vstv %s1336_s30  ;;  %s1322_s30 = sld [smem:[#allocation2 + $0x86]] }
  0x59   : > { %v772_v63 = vmul.f32 %v1554_v17, %v769_v45 }
  0x5c   : > { %510 = vrot.lane.b32.xlu1 %v504_v48, %s1449_s6  ;;  %494 = vrot.lane.b32.xlu0 %v486_v49, %s1448_s4  ;;  %v771_v48 = vmul.f32 %v1544_v11, %v769_v45  ;;  %v770_v49 = vmul.f32 %v1547_v13, %v769_v45 }
  0x60   : > { %514 = vrot.lane.b32.xlu1 %v506_v50, %s1449_s6  ;;  %512 = vrot.lane.b32.xlu0 %v505_v51, %s1449_s6  ;;  %v987_v50 = vstv %s1351_s5  ;;  %v259_v51 = vstv %s258_s7  ;;  %s1325_s5 = sld [smem:[#allocation2 + $0x89]]  ;;  %s1334_s7 = sld [smem:[#allocation2 + $0x103]] }
  0x61   : > { %v988_v55 = vmul.f32 %v1547_v13, %v987_v50  ;;  %v990_v15 = vmul.f32 %v1554_v17, %v987_v50 }
  0x64   : > { %540 = vrot.lane.b32.xlu1 %v533_v53, %s1448_s4  ;;  %538 = vrot.lane.b32.xlu0 %v532_v54, %s1448_s4  ;;  %v261_v54 = vmul.f32 %v259_v51, %v1531_v4 }
  0x68   : > { %558 = vrot.lane.b32.xlu1 %v552_v56, %s1449_s6  ;;  %542 = vrot.lane.b32.xlu0 %v534_v57, %s1448_s4  ;;  %v970_v56 = vmul.f32 %v1554_v17, %v967_v37  ;;  %v260_v57 = vmul.f32 %v259_v51, %v1528_v2 }
  0x6c   : > { %562 = vrot.lane.b32.xlu1 %v554_v58, %s1449_s6  ;;  %560 = vrot.lane.b32.xlu0 %v553_v59, %s1449_s6 }
  0x70   : > { %588 = vrot.lane.b32.xlu1 %v581_v61, %s1448_s4  ;;  %586 = vrot.lane.b32.xlu0 %v580_v62, %s1448_s4  ;;  %v262_v61 = vmul.f32 %v259_v51, %v1525_v1  ;;  %v304_v62 = vstv %s1307_s8  ;;  %s1349_s8 = sld [smem:[#allocation2 + $0x183]] }
  0x71   : > { %v307_v26 = vmul.f32 %v1554_v17, %v304_v62 }
  0x74   : > { %606 = vrot.lane.b32.xlu1 %v600_v0, %s1449_s6  ;;  %590 = vrot.lane.b32.xlu0 %v582_v3, %s1448_s4  ;;  %v989_v0 = vmul.f32 %v1544_v11, %v987_v50 }
  0x78   : > { %610 = vrot.lane.b32.xlu1 %v602_v5, %s1449_s6  ;;  %608 = vrot.lane.b32.xlu0 %v601_v6, %s1449_s6  ;;  %v306_v6 = vmul.f32 %v1544_v11, %v304_v62 }
  0x7c   : > { %636 = vrot.lane.b32.xlu1 %v629_v8, %s1448_s4  ;;  %634 = vrot.lane.b32.xlu0 %v628_v9, %s1448_s4 }
  0x80   : > { %708 = vrot.lane.b32.xlu1 %v702_v12, %s1448_s4  ;;  %638 = vrot.lane.b32.xlu0 %v630_v14, %s1448_s4  ;;  %v305_v12 = vmul.f32 %v1547_v13, %v304_v62  ;;  %v798_v14 = vmul.f32 %v1568_v24, %v797_v7 }
  0x84   : > { %926 = vrot.lane.b32.xlu1 %v920_v16, %s1448_s4  ;;  %710 = vrot.lane.b32.xlu0 %v703_v18, %s1448_s4 }
  0x88   : > { %712 = vrot.lane.b32.xlu1 %v704_v19, %s1448_s4  ;;  %928 = vrot.lane.b32.xlu0 %v921_v20, %s1448_s4  ;;  %v1015_v19 = vstv %s1353_s10  ;;  %s1352_s10 = sld [smem:[#allocation2 + $0x186]] }
  0x8c   : > { %730 = vrot.lane.b32.xlu1 %v723_v23, %s1449_s6  ;;  %728 = vrot.lane.b32.xlu0 %v722_v25, %s1449_s6 }
  0x90   : > { %946 = vrot.lane.b32.xlu1 %v940_v27, %s1449_s6  ;;  %930 = vrot.lane.b32.xlu0 %v922_v29, %s1448_s4  ;;  %v352_v27 = vstv %s1310_s11  ;;  %v1016_v29 = vmul.f32 %v1568_v24, %v1015_v19  ;;  %s1868_s11 = sld [smem:[#allocation2 + $0x109]] }
  0x94   : > { %732 = vrot.lane.b32.xlu1 %v724_v30, %s1449_s6  ;;  %948 = vrot.lane.b32.xlu0 %v941_v31, %s1449_s6  ;;  %v799_v30 = vmul.f32 %v1565_v22, %v797_v7 }
  0x98   : > { %756 = vrot.lane.b32.xlu1 %v750_v34, %s1448_s4  ;;  %950 = vrot.lane.b32.xlu0 %v942_v36, %s1449_s6  ;;  %v354_v34 = vmul.f32 %v1565_v22, %v352_v27 }
  0x9a   : > { %v276_v41 = vpop.permute.xlu1 %275  ;;  %v272_v42 = vpop.permute.xlu0 %271 }
  0x9b   : > { %v280_v3 = vadd.f32 %v272_v42, %v260_v57  ;;  %v282_v16 = vadd.f32 %v276_v41, %v262_v61  ;;  %v353_v42 = vmul.f32 %v1568_v24, %v352_v27  ;;  %v1035_v57 = vstv %s1354_s18 }
  0x9c   : > { %974 = vrot.lane.b32.xlu1 %v968_v38, %s1448_s4  ;;  %758 = vrot.lane.b32.xlu0 %v751_v40, %s1448_s4 }
  0x9e   : > { %v292_v46 = vpop.permute.xlu1 %291  ;;  %v274_v47 = vpop.permute.xlu0 %273 }
  0x9f   : > { %v281_v60 = vadd.f32 %v274_v47, %v261_v54  ;;  %v300_v10 = vadd.f32 %v292_v46, %v280_v3  ;;  %v817_v46 = vstv %s1339_s15  ;;  %v1018_v3 = vmul.f32 %v1575_v28, %v1015_v19  ;;  %s1882_s15 = sld [smem:[#allocation2 + $0x189]] }
  0xa0   : > { %760 = vrot.lane.b32.xlu1 %v752_v43, %s1448_s4  ;;  %976 = vrot.lane.b32.xlu0 %v969_v44, %s1448_s4  ;;  %v800_v43 = vmul.f32 %v1575_v28, %v797_v7  ;;  %v1017_v44 = vmul.f32 %v1565_v22, %v1015_v19  ;;  %v818_v54 = vmul.f32 %v1568_v24, %v817_v46 }
  0xa1   : > { %v308_v25 = vadd.f32 %v305_v12, %v300_v10 }
  0xa2   : > { %v296_v52 = vpop.permute.xlu1 %295  ;;  %v294_v53 = vpop.permute.xlu0 %293 }
  0xa3   : > { %v301_v5 = vadd.f32 %v294_v53, %v281_v60  ;;  %v302_v23 = vadd.f32 %v296_v52, %v282_v16  ;;  %v355_v52 = vmul.f32 %v1575_v28, %v352_v27  ;;  %v819_v53 = vmul.f32 %v1565_v22, %v817_v46 }
  0xa4   : > { %778 = vrot.lane.b32.xlu1 %v771_v48, %s1449_s6  ;;  %776 = vrot.lane.b32.xlu0 %v770_v49, %s1449_s6  ;;  %v1037_v16 = vmul.f32 %v1565_v22, %v1035_v57 }
  0xa5   : > { %v309_v18 = vadd.f32 %v306_v6, %v301_v5  ;;  %v310_v40 = vadd.f32 %v307_v26, %v302_v23 }
  0xa6   : > { %v322_v58 = vpop.permute.xlu1 %321  ;;  %v320_v59 = vpop.permute.xlu0 %319 }
  0xa7   : > { %v329_v31 = vadd.f32 %v322_v58, %v309_v18  ;;  %v328_v32 = vadd.f32 %v320_v59, %v308_v25 }
  0xa8   : > { %994 = vrot.lane.b32.xlu1 %v988_v55, %s1449_s6  ;;  %978 = vrot.lane.b32.xlu0 %v970_v56, %s1448_s4  ;;  %v400_v55 = vstv %s1313_s17 }
  0xa9   : > { %v402_v7 = vmul.f32 %v1586_v33, %v400_v55 }
  0xaa   : > { %v340_v8 = vpop.permute.xlu1 %339  ;;  %v324_v9 = vpop.permute.xlu0 %323 }
  0xab   : > { %v348_v38 = vadd.f32 %v340_v8, %v328_v32  ;;  %v330_v45 = vadd.f32 %v324_v9, %v310_v40  ;;  %v478_v32 = vstv %s1316_s20 }
  0xac   : > { %780 = vrot.lane.b32.xlu1 %v772_v63, %s1449_s6  ;;  %996 = vrot.lane.b32.xlu0 %v989_v0, %s1449_s6  ;;  %v401_v63 = vmul.f32 %v1589_v35, %v400_v55  ;;  %v1036_v0 = vmul.f32 %v1568_v24, %v1035_v57 }
  0xad   : > { %v356_v51 = vadd.f32 %v353_v42, %v348_v38  ;;  %v479_v42 = vmul.f32 %v478_v32, %v1528_v2 }
  0xae   : > { %v344_v20 = vpop.permute.xlu1 %343  ;;  %v342_v21 = vpop.permute.xlu0 %341 }
  0xaf   : > { %v349_v41 = vadd.f32 %v342_v21, %v329_v31  ;;  %v350_v49 = vadd.f32 %v344_v20, %v330_v45  ;;  %v845_v20 = vstv %s1341_s19  ;;  %v1063_v45 = vstv %s1730_s22 }
  0xb0   : > { %804 = vrot.lane.b32.xlu1 %v798_v14, %s1448_s4  ;;  %998 = vrot.lane.b32.xlu0 %v990_v15, %s1449_s6  ;;  %v403_v14 = vmul.f32 %v1596_v39, %v400_v55  ;;  %v820_v15 = vmul.f32 %v1575_v28, %v817_v46  ;;  %v846_v27 = vmul.f32 %v1589_v35, %v845_v20 }
  0xb1   : > { %v357_v50 = vadd.f32 %v354_v34, %v349_v41  ;;  %v358_v62 = vadd.f32 %v355_v52, %v350_v49  ;;  %v1745_v34 = vstv %s1327_s21 }
  0xb2   : > { %v370_v36 = vpop.permute.xlu1 %369  ;;  %v368_v37 = vpop.permute.xlu0 %367 }
  0xb3   : > { %v376_v56 = vadd.f32 %v368_v37, %v356_v51  ;;  %v377_v60 = vadd.f32 %v370_v36, %v357_v50  ;;  %v480_v51 = vmul.f32 %v478_v32, %v1531_v4 }
  0xb4   : > { %1022 = vrot.lane.b32.xlu1 %v1016_v29, %s1448_s4  ;;  %806 = vrot.lane.b32.xlu0 %v799_v30, %s1448_s4  ;;  %v1038_v29 = vmul.f32 %v1575_v28, %v1035_v57  ;;  %v1064_v57 = vmul.f32 %v1589_v35, %v1063_v45 }
  0xb6   : > { %v388_v47 = vpop.permute.xlu1 %387  ;;  %v372_v48 = vpop.permute.xlu0 %371 }
  0xb7   : > { %v396_v61 = vadd.f32 %v388_v47, %v376_v56  ;;  %v378_v5 = vadd.f32 %v372_v48, %v358_v62 }
  0xb8   : > { %808 = vrot.lane.b32.xlu1 %v800_v43, %s1448_s4  ;;  %1024 = vrot.lane.b32.xlu0 %v1017_v44, %s1448_s4  ;;  %v648_v43 = vmul.f32 %v1589_v35, %v1745_v34  ;;  %v847_v44 = vmul.f32 %v1586_v33, %v845_v20 }
  0xb9   : > { %v404_v12 = vadd.f32 %v401_v63, %v396_v61  ;;  %v481_v63 = vmul.f32 %v478_v32, %v1525_v1 }
  0xba   : > { %v392_v58 = vpop.permute.xlu1 %391  ;;  %v390_v59 = vpop.permute.xlu0 %389 }
  0xbb   : > { %v397_v6 = vadd.f32 %v390_v59, %v377_v60  ;;  %v398_v10 = vadd.f32 %v392_v58, %v378_v5  ;;  %v649_v60 = vmul.f32 %v1586_v33, %v1745_v34 }
  0xbc   : > { %826 = vrot.lane.b32.xlu1 %v819_v53, %s1449_s6  ;;  %824 = vrot.lane.b32.xlu0 %v818_v54, %s1449_s6 }
  0xbd   : > { %v405_v18 = vadd.f32 %v402_v7, %v397_v6  ;;  %v406_v26 = vadd.f32 %v403_v14, %v398_v10 }
  0xbe   : > { %v418_v8 = vpop.permute.xlu1 %417  ;;  %v416_v9 = vpop.permute.xlu0 %415 }
  0xbf   : > { %v424_v19 = vadd.f32 %v416_v9, %v404_v12  ;;  %v425_v30 = vadd.f32 %v418_v8, %v405_v18  ;;  %v848_v8 = vmul.f32 %v1596_v39, %v845_v20  ;;  %v1065_v9 = vmul.f32 %v1586_v33, %v1063_v45 }
  0xc0   : > { %1042 = vrot.lane.b32.xlu1 %v1036_v0, %s1449_s6  ;;  %1026 = vrot.lane.b32.xlu0 %v1018_v3, %s1448_s4  ;;  %v523_v0 = vstv %s1747_s26 }
  0xc1   : > { %v524_v10 = vmul.f32 %v1547_v13, %v523_v0 }
  0xc2   : > { %v436_v21 = vpop.permute.xlu1 %435  ;;  %v420_v23 = vpop.permute.xlu0 %419 }
  0xc3   : > { %v444_v25 = vadd.f32 %v436_v21, %v424_v19  ;;  %v426_v31 = vadd.f32 %v420_v23, %v406_v26 }
  0xc4   : > { %828 = vrot.lane.b32.xlu1 %v820_v15, %s1449_s6  ;;  %1044 = vrot.lane.b32.xlu0 %v1037_v16, %s1449_s6  ;;  %v525_v15 = vmul.f32 %v1544_v11, %v523_v0  ;;  %v865_v16 = vstv %s1342_s27 }
  0xc5   : > { %448 = vst.msk [vmem:[%s1737_s25] sm:$0xff] %vm447_vm0, %v444_v25  ;;  %v463_v38 = vmul.f32 %v444_v25, %v444_v25  ;;  %v452_v46 = vsel %vm447_vm0, %v444_v25, 0.0  ;;  %v867_v20 = vmul.f32 %v1586_v33, %v865_v16  ;;  %v866_v25 = vmul.f32 %v1589_v35, %v865_v16 }
  0xc6   : > { %v440_v36 = vpop.permute.xlu1 %439  ;;  %v438_v37 = vpop.permute.xlu0 %437 }
  0xc7   : > { %v446_v40 = vadd.f32 %v440_v36, %v426_v31  ;;  %v445_v41 = vadd.f32 %v438_v37, %v425_v30  ;;  %v466_v54 = vsel %vm447_vm0, %v463_v38, 0.0  ;;  %v1066_v37 = vmul.f32 %v1596_v39, %v1063_v45 }
  0xc8   : > { %852 = vrot.lane.b32.xlu1 %v846_v27, %s1448_s4  ;;  %1046 = vrot.lane.b32.xlu0 %v1038_v29, %s1449_s6  ;;  %v526_v29 = vmul.f32 %v1554_v17, %v523_v0  ;;  %v650_v38 = vmul.f32 %v1596_v39, %v1745_v34 }
  0xc9   : > { %451 = vst.msk [vmem:[%s1737_s25 + $0x10] sm:$0x3] %vm450_vm1, %v446_v40  ;;  %v465_v47 = vmul.f32 %v446_v40, %v446_v40  ;;  %v453_v48 = vsel %vm447_vm0, %v445_v41, 0.0  ;;  %v464_v49 = vmul.f32 %v445_v41, %v445_v41  ;;  %v455_v55 = vsel %vm450_vm1, %v446_v40, 0.0 }
  0xca   : > { %449 = vst.msk [vmem:[%s1737_s25 + $0x8] sm:$0xff] %vm447_vm0, %v445_v41  ;;  %v454_v50 = vadd.f32 %v453_v48, %v452_v46  ;;  %v493_v52 = vpop.permute.xlu1 %492  ;;  %v491_v53 = vpop.permute.xlu0 %490  ;;  %v1083_v41 = vstv %s1357_s28 }
  0xcb   : > { %v467_v56 = vsel %vm447_vm0, %v464_v49, 0.0  ;;  %v469_v61 = vsel %vm450_vm1, %v465_v47, 0.0  ;;  %v499_v62 = vadd.f32 %v491_v53, %v479_v42  ;;  %v500_v12 = vadd.f32 %v493_v52, %v480_v51 }
  0xcc   : > { %v1767_v58 = vadd.f32 %v455_v55, %v454_v50  ;;  %v468_v59 = vadd.f32 %v467_v56, %v466_v54  ;;  %654 = vrot.lane.b32.xlu1 %v648_v43, %s1449_s6  ;;  %854 = vrot.lane.b32.xlu0 %v847_v44, %s1448_s4  ;;  %v571_v44 = vstv %s1322_s30  ;;  %v1085_v48 = vmul.f32 %v1586_v33, %v1083_v41 }
  0xcd   : > { %v1084_v49 = vmul.f32 %v1589_v35, %v1083_v41  ;;  %v573_v45 = vmul.f32 %v1565_v22, %v571_v44  ;;  %v572_v50 = vmul.f32 %v1568_v24, %v571_v44  ;;  %v1086_v54 = vmul.f32 %v1596_v39, %v1083_v41 }
  0xce   : > { %v1776_v3 = vadd.f32 %v469_v61, %v468_v59  ;;  %v511_v5 = vpop.permute.xlu1 %510  ;;  %v495_v6 = vpop.permute.xlu0 %494  ;;  %v868_v55 = vmul.f32 %v1596_v39, %v865_v16  ;;  %v574_v59 = vmul.f32 %v1575_v28, %v571_v44 }
  0xcf   : > { %v519_v7 = vadd.f32 %v511_v5, %v499_v62  ;;  %v501_v14 = vadd.f32 %v495_v6, %v481_v63 }
  0xd0   : > { %1990 = vst [vmem:[#allocation6_spill] sm:$0xff] %v1776_v3  ;;  %1070 = vrot.lane.b32.xlu1 %v1064_v57, %s1448_s4  ;;  %656 = vrot.lane.b32.xlu0 %v649_v60, %s1449_s6 }
  0xd1   : > { %v527_v27 = vadd.f32 %v524_v10, %v519_v7  ;;  %v619_v7 = vstv %s1325_s5 }
  0xd2   : > { %v515_v18 = vpop.permute.xlu1 %514  ;;  %v513_v19 = vpop.permute.xlu0 %512  ;;  %v621_v10 = vmul.f32 %v1586_v33, %v619_v7 }
  0xd3   : > { %v521_v21 = vadd.f32 %v515_v18, %v501_v14  ;;  %v520_v23 = vadd.f32 %v513_v19, %v500_v12  ;;  %v620_v12 = vmul.f32 %v1589_v35, %v619_v7 }
  0xd4   : > { %856 = vrot.lane.b32.xlu1 %v848_v8, %s1448_s4  ;;  %1072 = vrot.lane.b32.xlu0 %v1065_v9, %s1448_s4 }
  0xd5   : > { %v528_v26 = vadd.f32 %v525_v15, %v520_v23  ;;  %v529_v40 = vadd.f32 %v526_v29, %v521_v21  ;;  %v622_v23 = vmul.f32 %v1596_v39, %v619_v7 }
  0xd6   : > { %v541_v30 = vpop.permute.xlu1 %540  ;;  %v539_v31 = vpop.permute.xlu0 %538 }
  0xd7   : > { %v548_v32 = vadd.f32 %v541_v30, %v528_v26  ;;  %v547_v36 = vadd.f32 %v539_v31, %v527_v27 }
  0xd8   : > { %874 = vrot.lane.b32.xlu1 %v867_v20, %s1449_s6  ;;  %872 = vrot.lane.b32.xlu0 %v866_v25, %s1449_s6 }
  0xda   : > { %v559_v42 = vpop.permute.xlu1 %558  ;;  %v543_v43 = vpop.permute.xlu0 %542 }
  0xdb   : > { %v567_v46 = vadd.f32 %v559_v42, %v547_v36  ;;  %v549_v47 = vadd.f32 %v543_v43, %v529_v40 }
  0xdc   : > { %1074 = vrot.lane.b32.xlu1 %v1066_v37, %s1448_s4  ;;  %658 = vrot.lane.b32.xlu0 %v650_v38, %s1449_s6  ;;  %s1331_s4 = sld [smem:[#allocation2 + $0x100]] }
  0xdd   : > { %v575_v57 = vadd.f32 %v572_v50, %v567_v46 }
  0xde   : > { %v563_v34 = vpop.permute.xlu1 %562  ;;  %v561_v51 = vpop.permute.xlu0 %560 }
  0xdf   : > { %v569_v52 = vadd.f32 %v563_v34, %v549_v47  ;;  %v568_v53 = vadd.f32 %v561_v51, %v548_v32 }
  0xe0   : > { %1092 = vrot.lane.b32.xlu1 %v1085_v48, %s1449_s6  ;;  %1090 = vrot.lane.b32.xlu0 %v1084_v49, %s1449_s6 }
  0xe1   : > { %v576_v56 = vadd.f32 %v573_v45, %v568_v53  ;;  %v577_v0 = vadd.f32 %v574_v59, %v569_v52 }
  0xe2   : > { %v589_v60 = vpop.permute.xlu1 %588  ;;  %v587_v61 = vpop.permute.xlu0 %586 }
  0xe3   : > { %v596_v62 = vadd.f32 %v589_v60, %v576_v56  ;;  %v595_v63 = vadd.f32 %v587_v61, %v575_v57 }
  0xe4   : > { %1094 = vrot.lane.b32.xlu1 %v1086_v54, %s1449_s6  ;;  %876 = vrot.lane.b32.xlu0 %v868_v55, %s1449_s6  ;;  %s1346_s6 = sld [smem:[#allocation2 + $0x180]] }
  0xe6   : > { %v607_v5 = vpop.permute.xlu1 %606  ;;  %v591_v6 = vpop.permute.xlu0 %590 }
  0xe7   : > { %v615_v8 = vadd.f32 %v607_v5, %v595_v63  ;;  %v597_v9 = vadd.f32 %v591_v6, %v577_v0  ;;  %v696_v63 = vstv %s1331_s4 }
  0xe8   : > { %v697_v6 = vmul.f32 %v696_v63, %v1528_v2  ;;  %v698_v7 = vmul.f32 %v696_v63, %v1531_v4 }
  0xe9   : > { %v623_v21 = vadd.f32 %v620_v12, %v615_v8  ;;  %v741_v12 = vstv %s1334_s7 }
  0xea   : > { %v611_v14 = vpop.permute.xlu1 %610  ;;  %v609_v15 = vpop.permute.xlu0 %608 }
  0xeb   : > { %v617_v16 = vadd.f32 %v611_v14, %v597_v9  ;;  %v616_v18 = vadd.f32 %v609_v15, %v596_v62 }
  0xed   : > { %v624_v19 = vadd.f32 %v621_v10, %v616_v18  ;;  %v625_v29 = vadd.f32 %v622_v23, %v617_v16  ;;  %v914_v10 = vstv %s1346_s6 }
  0xee   : > { %v637_v20 = vpop.permute.xlu1 %636  ;;  %v635_v25 = vpop.permute.xlu0 %634  ;;  %v915_v16 = vmul.f32 %v914_v10, %v1528_v2 }
  0xef   : > { %v1810_v26 = vadd.f32 %v637_v20, %v624_v19  ;;  %v1812_v27 = vadd.f32 %v635_v25, %v623_v21  ;;  %v742_v20 = vmul.f32 %v1547_v13, %v741_v12  ;;  %v743_v25 = vmul.f32 %v1544_v11, %v741_v12 }
  0xf2   : > { %v709_v30 = vpop.permute.xlu1 %708  ;;  %v639_v31 = vpop.permute.xlu0 %638 }
  0xf3   : > { %v1814_v32 = vadd.f32 %v639_v31, %v625_v29  ;;  %v717_v14 = vadd.f32 %v709_v30, %v697_v6  ;;  %v916_v29 = vmul.f32 %v914_v10, %v1531_v4  ;;  %v959_v31 = vstv %s1349_s8 }
  0xf4   : > { %v960_v4 = vmul.f32 %v1547_v13, %v959_v31 }
  0xf5   : > { %1991 = vst [vmem:[#allocation7_spill] sm:$0xff] %v1814_v32 }
  0xf6   : > { %v927_v36 = vpop.permute.xlu1 %926  ;;  %v711_v37 = vpop.permute.xlu0 %710 }
  0xf7   : > { %v718_v15 = vadd.f32 %v711_v37, %v698_v7  ;;  %v935_v2 = vadd.f32 %v927_v36, %v915_v16  ;;  %v699_v7 = vmul.f32 %v696_v63, %v1525_v1 }
  0xfa   : > { %v1816_v38 = vpop.permute.xlu1 %712  ;;  %v929_v40 = vpop.permute.xlu0 %928 }
  0xfe   : > { %v731_v41 = vpop.permute.xlu1 %730  ;;  %v729_v42 = vpop.permute.xlu0 %728 }
  0xff   : > { %v738_v21 = vadd.f32 %v731_v41, %v718_v15  ;;  %v737_v23 = vadd.f32 %v729_v42, %v717_v14  ;;  %v936_v41 = vadd.f32 %v929_v40, %v916_v29  ;;  %v917_v42 = vmul.f32 %v914_v10, %v1525_v1 }
 0x100   : > { %v789_v14 = vstv %s1337_s9  ;;  %v837_v10 = vstv %s1868_s11 }
 0x101   : > { %v745_v37 = vadd.f32 %v742_v20, %v737_v23  ;;  %v746_v6 = vadd.f32 %v743_v25, %v738_v21  ;;  %v790_v40 = vmul.f32 %v1568_v24, %v789_v14  ;;  %v791_v1 = vmul.f32 %v1565_v22, %v789_v14 }
 0x102   : > { %v947_v43 = vpop.permute.xlu1 %946  ;;  %v1818_v44 = vpop.permute.xlu0 %930 }
 0x103   : > { %v955_v15 = vadd.f32 %v947_v43, %v935_v2  ;;  %v719_v43 = vadd.f32 %v1816_v38, %v699_v7  ;;  %v937_v13 = vadd.f32 %v1818_v44, %v917_v42 }
 0x106   : > { %v1820_v46 = vpop.permute.xlu1 %732  ;;  %v949_v47 = vpop.permute.xlu0 %948 }
 0x10a   : > { %v757_v48 = vpop.permute.xlu1 %756  ;;  %v1822_v49 = vpop.permute.xlu0 %950 }
 0x10b   : > { %v765_v32 = vadd.f32 %v757_v48, %v745_v37  ;;  %v962_v48 = vmul.f32 %v1554_v17, %v959_v31  ;;  %v1055_v37 = vstv %s1882_s15 }
 0x10e   : > { %v1824_v45 = vpop.permute.xlu1 %974  ;;  %v759_v50 = vpop.permute.xlu0 %758 }
 0x112   : > { %v1826_v34 = vpop.permute.xlu1 %760  ;;  %v1828_v51 = vpop.permute.xlu0 %976 }
 0x116   : > { %v779_v52 = vpop.permute.xlu1 %778  ;;  %v777_v53 = vpop.permute.xlu0 %776 }
 0x117   : > { %v785_v63 = vadd.f32 %v777_v53, %v765_v32  ;;  %v957_v32 = vadd.f32 %v1822_v49, %v937_v13 }
 0x119   : > { %v793_v21 = vadd.f32 %v790_v40, %v785_v63 }
 0x11a   : > { %v1830_v54 = vpop.permute.xlu1 %994  ;;  %v1832_v55 = vpop.permute.xlu0 %978 }
 0x11e   : > { %v1834_v56 = vpop.permute.xlu1 %780  ;;  %v1836_v57 = vpop.permute.xlu0 %996 }
 0x122   : > { %v1838_v59 = vpop.permute.xlu1 %804  ;;  %v1840_v60 = vpop.permute.xlu0 %998 }
 0x123   : > { %v813_v49 = vadd.f32 %v1838_v59, %v793_v21 }
 0x126   : > { %v1842_v61 = vpop.permute.xlu1 %1022  ;;  %v1844_v62 = vpop.permute.xlu0 %806 }
 0x12a   : > { %v1846_v0 = vpop.permute.xlu1 %808  ;;  %v1848_v5 = vpop.permute.xlu0 %1024 }
 0x12b   : > { %1992 = vst [vmem:[#allocation8_spill] sm:$0xff] %v1846_v0  ;;  %v956_v0 = vadd.f32 %v949_v47, %v936_v41  ;;  %v963_v47 = vadd.f32 %v960_v4, %v955_v15 }
 0x12d   : > { %v983_v44 = vadd.f32 %v1824_v45, %v963_v47  ;;  %v838_v45 = vmul.f32 %v1589_v35, %v837_v10  ;;  %v457_v35 = vrot.slane %v1767_v58, 4 }
 0x12e   : > { %v1852_v8 = vpop.permute.xlu1 %826  ;;  %v1854_v9 = vpop.permute.xlu0 %824 }
 0x12f   : > { %v833_v59 = vadd.f32 %v1854_v9, %v813_v49 }
 0x132   : > { %v1857_v18 = vpop.permute.xlu1 %1042  ;;  %v1859_v19 = vpop.permute.xlu0 %1026  ;;  %v1998_v21 = vld [vmem:[#allocation8_spill] sm:$0xff] }
 0x133   : > { %1993 = vst [vmem:[#allocation9_spill] sm:$0xff] %v1859_v19  ;;  %v766_v19 = vadd.f32 %v759_v50, %v746_v6 }
 0x135   : > { %v786_v16 = vadd.f32 %v779_v52, %v766_v19  ;;  %v739_v52 = vadd.f32 %v1820_v46, %v719_v43  ;;  %v1401_v43 = vld [vmem:[%s1522_s29 + $0x48] sm:$0xff] }
 0x136   : > { %v1864_v3 = vpop.permute.xlu1 %828  ;;  %v1866_v30 = vpop.permute.xlu0 %1044  ;;  %v1056_v13 = vmul.f32 %v1401_v43, %v1055_v37 }
 0x137   : > { %1994 = vst [vmem:[#allocation10_spill] sm:$0xff] %v1864_v3  ;;  %1995 = vst [vmem:[#allocation11_spill] sm:$0xff] %v1866_v30  ;;  %v961_v3 = vmul.f32 %v1544_v11, %v959_v31  ;;  %v1007_v30 = vstv %s1352_s10  ;;  %v744_v11 = vmul.f32 %v1554_v17, %v741_v12  ;;  %v794_v23 = vadd.f32 %v791_v1, %v786_v16 }
 0x138   : > { %v1008_v50 = vmul.f32 %v1568_v24, %v1007_v30  ;;  %v792_v17 = vmul.f32 %v1575_v28, %v789_v14  ;;  %v1009_v24 = vmul.f32 %v1565_v22, %v1007_v30  ;;  %v1010_v46 = vmul.f32 %v1575_v28, %v1007_v30 }
 0x139   : > { %v964_v53 = vadd.f32 %v961_v3, %v956_v0  ;;  %v1003_v3 = vadd.f32 %v1830_v54, %v983_v44  ;;  %v814_v0 = vadd.f32 %v1844_v62, %v794_v23  ;;  %v839_v22 = vmul.f32 %v1586_v33, %v837_v10 }
 0x13a   : > { %v1874_v39 = vpop.permute.xlu1 %852  ;;  %v1876_v36 = vpop.permute.xlu0 %1046  ;;  %v841_v14 = vadd.f32 %v838_v45, %v833_v59  ;;  %v458_v16 = vadd.f32 %v457_v35, %v1767_v58 }
 0x13b   : > { %v984_v12 = vadd.f32 %v1828_v51, %v964_v53  ;;  %v965_v51 = vadd.f32 %v962_v48, %v957_v32  ;;  %v834_v54 = vadd.f32 %v1852_v8, %v814_v0 }
 0x13d   : > { %v1004_v25 = vadd.f32 %v1836_v57, %v984_v12  ;;  %v985_v2 = vadd.f32 %v1832_v55, %v965_v51  ;;  %v1011_v57 = vadd.f32 %v1008_v50, %v1003_v3  ;;  %v842_v15 = vadd.f32 %v839_v22, %v834_v54  ;;  %v1996_v50 = vld [vmem:[#allocation5_spill] sm:$0xff] }
 0x13e   : > { %v655_v19 = vpop.permute.xlu1 %654  ;;  %v855_v38 = vpop.permute.xlu0 %854  ;;  %v2000_v49 = vld [vmem:[#allocation10_spill] sm:$0xff] }
 0x13f   : > { %v663_v20 = vadd.f32 %v655_v19, %v1812_v27  ;;  %v747_v27 = vadd.f32 %v744_v11, %v739_v52  ;;  %v1012_v7 = vadd.f32 %v1009_v24, %v1004_v25  ;;  %v1031_v63 = vadd.f32 %v1842_v61, %v1011_v57  ;;  %v1997_v61 = vld [vmem:[#allocation11_spill] sm:$0xff]  ;;  %v2002_v57 = vld [vmem:[#allocation6_spill] sm:$0xff] }
 0x140   : > { %v862_v1 = vadd.f32 %v855_v38, %v842_v15  ;;  %v840_v52 = vmul.f32 %v1996_v50, %v837_v10  ;;  %v1402_v19 = vld [vmem:[%s1522_s29 + $0x50] sm:$0xff]  ;;  %v459_v38 = vrot.slane %v458_v16, 2 }
 0x141   : > { %1328 = vst.msk [vmem:[%s1737_s25 + $0x18] sm:$0xff] %vm447_vm0, %v663_v20  ;;  %v681_v62 = vmul.f32 %v663_v20, %v663_v20  ;;  %v767_v30 = vadd.f32 %v1826_v34, %v747_v27  ;;  %v670_v33 = vsel %vm447_vm0, %v663_v20, 0.0  ;;  %v1051_v11 = vadd.f32 %v1857_v18, %v1031_v63  ;;  %v1999_v20 = vld [vmem:[#allocation9_spill] sm:$0xff] }
 0x142   : > { %v1904_v29 = vpop.permute.xlu1 %1070  ;;  %v657_v28 = vpop.permute.xlu0 %656 }
 0x143   : > { %v664_v31 = vadd.f32 %v657_v28, %v1810_v26  ;;  %v787_v9 = vadd.f32 %v1834_v56, %v767_v30  ;;  %v1005_v26 = vadd.f32 %v1840_v60, %v985_v2  ;;  %v684_v55 = vsel %vm447_vm0, %v681_v62, 0.0  ;;  %v2001_v62 = vld [vmem:[#allocation7_spill] sm:$0xff] }
 0x144   : > { %v1032_v56 = vadd.f32 %v1848_v5, %v1012_v7  ;;  %v861_v60 = vadd.f32 %v1874_v39, %v841_v14  ;;  %v1057_v5 = vmul.f32 %v1402_v19, %v1055_v37  ;;  %v1059_v27 = vadd.f32 %v1056_v13, %v1051_v11 }
 0x145   : > { %1329 = vst.msk [vmem:[%s1737_s25 + $0x20] sm:$0xff] %vm447_vm0, %v664_v31  ;;  %v671_v6 = vsel %vm447_vm0, %v664_v31, 0.0  ;;  %v682_v8 = vmul.f32 %v664_v31, %v664_v31  ;;  %v795_v47 = vadd.f32 %v792_v17, %v787_v9  ;;  %v1013_v48 = vadd.f32 %v1010_v46, %v1005_v26  ;;  %v1403_v17 = vld [vmem:[%s1522_s29 + $0x58] sm:$0x3]  ;;  %s1295_s29 = sshll.u32 %s2008_s12, 3 }
 0x146   : > { %v672_v41 = vadd.f32 %v671_v6, %v670_v33  ;;  %v857_v42 = vpop.permute.xlu1 %856  ;;  %v1073_v34 = vpop.permute.xlu0 %1072  ;;  %v1052_v53 = vadd.f32 %v1997_v61, %v1032_v56  ;;  %v1058_v24 = vmul.f32 %v1403_v17, %v1055_v37  ;;  %v1079_v30 = vadd.f32 %v1904_v29, %v1059_v27  ;;  %s242_s19 = scalar_lea.vmem %s1984_s3, %s1295_s29 }
 0x147   : > { %v685_v4 = vsel %vm447_vm0, %v682_v8, 0.0  ;;  %v815_v23 = vadd.f32 %v1998_v21, %v795_v47  ;;  %v1033_v12 = vadd.f32 %v1999_v20, %v1013_v48  ;;  %v471_v33 = vrot.slane %v2002_v57, 4 }
 0x148   : > { %v686_v40 = vadd.f32 %v685_v4, %v684_v55  ;;  %v1060_v28 = vadd.f32 %v1057_v5, %v1052_v53  ;;  %v460_v14 = vadd.f32 %v459_v38, %v458_v16 }
 0x149   : > { %v835_v0 = vadd.f32 %v2000_v49, %v815_v23  ;;  %v1053_v45 = vadd.f32 %v1876_v36, %v1033_v12 }
 0x14a   : > { %v875_v58 = vpop.permute.xlu1 %874  ;;  %v873_v32 = vpop.permute.xlu0 %872  ;;  %v1080_v2 = vadd.f32 %v1073_v34, %v1060_v28 }
 0x14b   : > { %v882_v44 = vadd.f32 %v875_v58, %v862_v1  ;;  %v881_v39 = vadd.f32 %v873_v32, %v861_v60  ;;  %v843_v6 = vadd.f32 %v840_v52, %v835_v0  ;;  %v1061_v8 = vadd.f32 %v1058_v24, %v1053_v45 }
 0x14c   : > { %v461_v58 = vrot.slane %v460_v14, 1  ;;  %v472_v32 = vadd.f32 %v471_v33, %v2002_v57 }
 0x14d   : > { %1344 = vst.msk [vmem:[%s1737_s25 + $0x38] sm:$0xff] %vm447_vm0, %v882_v44  ;;  %v889_v18 = vsel %vm447_vm0, %v882_v44, 0.0  ;;  %v900_v10 = vmul.f32 %v882_v44, %v882_v44  ;;  %1343 = vst.msk [vmem:[%s1737_s25 + $0x30] sm:$0xff] %vm447_vm0, %v881_v39  ;;  %v888_v46 = vsel %vm447_vm0, %v881_v39, 0.0  ;;  %v899_v3 = vmul.f32 %v881_v39, %v881_v39 }
 0x14e   : > { %v890_v51 = vadd.f32 %v889_v18, %v888_v46  ;;  %v1075_v25 = vpop.permute.xlu1 %1074  ;;  %v659_v22 = vpop.permute.xlu0 %658  ;;  %v863_v34 = vadd.f32 %v857_v42, %v843_v6  ;;  %v462_v46 = vadd.f32 %v461_v58, %v460_v14 }
 0x14f   : > { %v903_v54 = vsel %vm447_vm0, %v900_v10, 0.0  ;;  %v902_v59 = vsel %vm447_vm0, %v899_v3, 0.0  ;;  %v665_v31 = vadd.f32 %v659_v22, %v2001_v62  ;;  %v1081_v4 = vadd.f32 %v1075_v25, %v1061_v8 }
 0x150   : > { %v904_v35 = vadd.f32 %v903_v54, %v902_v59  ;;  %v473_v3 = vrot.slane %v472_v32, 2 }
 0x151   : > { %1330 = vst.msk [vmem:[%s1737_s25 + $0x28] sm:$0x3] %vm450_vm1, %v665_v31  ;;  %v673_v37 = vsel %vm450_vm1, %v665_v31, 0.0  ;;  %v683_v36 = vmul.f32 %v665_v31, %v665_v31 }
 0x152   : > { %v674_v9 = vadd.f32 %v673_v37, %v672_v41  ;;  %v1093_v26 = vpop.permute.xlu1 %1092  ;;  %v1091_v7 = vpop.permute.xlu0 %1090  ;;  %v474_v31 = vadd.f32 %v473_v3, %v472_v32 }
 0x153   : > { %v687_v55 = vsel %vm450_vm1, %v683_v36, 0.0  ;;  %v1100_v15 = vadd.f32 %v1093_v26, %v1080_v2  ;;  %v1099_v29 = vadd.f32 %v1091_v7, %v1079_v30 }
 0x154   : > { %v675_v63 = vrot.slane %v674_v9, 4  ;;  %v688_v56 = vadd.f32 %v687_v55, %v686_v40 }
 0x155   : > { %1359 = vst.msk [vmem:[%s1737_s25 + $0x50] sm:$0xff] %vm447_vm0, %v1100_v15  ;;  %v1107_v60 = vsel %vm447_vm0, %v1100_v15, 0.0  ;;  %v1118_v1 = vmul.f32 %v1100_v15, %v1100_v15  ;;  %1358 = vst.msk [vmem:[%s1737_s25 + $0x48] sm:$0xff] %vm447_vm0, %v1099_v29  ;;  %v1106_v41 = vsel %vm447_vm0, %v1099_v29, 0.0  ;;  %v1117_v43 = vmul.f32 %v1099_v29, %v1099_v29 }
 0x156   : > { %v676_v16 = vadd.f32 %v675_v63, %v674_v9  ;;  %v689_v13 = vrot.slane %v688_v56, 4  ;;  %v1108_v47 = vadd.f32 %v1107_v60, %v1106_v41  ;;  %v1095_v11 = vpop.permute.xlu1 %1094  ;;  %v877_v42 = vpop.permute.xlu0 %876  ;;  %v475_v9 = vrot.slane %v474_v31, 1 }
 0x157   : > { %v1121_v48 = vsel %vm447_vm0, %v1118_v1, 0.0  ;;  %v1120_v40 = vsel %vm447_vm0, %v1117_v43, 0.0  ;;  %v1101_v50 = vadd.f32 %v1095_v11, %v1081_v4  ;;  %v883_v52 = vadd.f32 %v877_v42, %v863_v34 }
 0x158   : > { %v677_v61 = vrot.slane %v676_v16, 2  ;;  %v1122_v53 = vadd.f32 %v1121_v48, %v1120_v40  ;;  %v690_v21 = vadd.f32 %v689_v13, %v688_v56  ;;  %v476_v4 = vadd.f32 %v475_v9, %v474_v31 }
 0x159   : > { %1360 = vst.msk [vmem:[%s1737_s25 + $0x58] sm:$0x3] %vm450_vm1, %v1101_v50  ;;  %v1109_v19 = vsel %vm450_vm1, %v1101_v50, 0.0  ;;  %v1119_v5 = vmul.f32 %v1101_v50, %v1101_v50  ;;  %1345 = vst.msk [vmem:[%s1737_s25 + $0x40] sm:$0x3] %vm450_vm1, %v883_v52  ;;  %v891_v44 = vsel %vm450_vm1, %v883_v52, 0.0  ;;  %v901_v39 = vmul.f32 %v883_v52, %v883_v52 }
 0x15a   : > { %v678_v38 = vadd.f32 %v677_v61, %v676_v16  ;;  %v1110_v23 = vadd.f32 %v1109_v19, %v1108_v47  ;;  %v892_v20 = vadd.f32 %v891_v44, %v890_v51  ;;  %v691_v27 = vrot.slane %v690_v21, 2 }
 0x15b   : > { %v1123_v12 = vsel %vm450_vm1, %v1119_v5, 0.0  ;;  %v905_v17 = vsel %vm450_vm1, %v901_v39, 0.0 }
 0x15c   : > { %v679_v24 = vrot.slane %v678_v38, 1  ;;  %v1111_v18 = vrot.slane %v1110_v23, 4  ;;  %v1124_v10 = vadd.f32 %v1123_v12, %v1122_v53  ;;  %v893_v49 = vrot.slane %v892_v20, 4 }
 0x15d   : > { %v906_v0 = vadd.f32 %v905_v17, %v904_v35  ;;  %v692_v37 = vadd.f32 %v691_v27, %v690_v21 }
 0x15e   : > { %v680_v45 = vadd.f32 %v679_v24, %v678_v38  ;;  %v1112_v25 = vadd.f32 %v1111_v18, %v1110_v23  ;;  %v1125_v22 = vrot.slane %v1124_v10, 4  ;;  %v894_v28 = vadd.f32 %v893_v49, %v892_v20 }
 0x15f   : > { %v907_v54 = vrot.slane %v906_v0, 4  ;;  %v693_v14 = vrot.slane %v692_v37, 1 }
 0x160   : > { %v1132_v59 = vsel %vm1131_vm2, %v462_v46, %v680_v45  ;;  %v1113_v51 = vrot.slane %v1112_v25, 2  ;;  %v1126_v62 = vadd.f32 %v1125_v22, %v1124_v10  ;;  %v895_v30 = vrot.slane %v894_v28, 2 }
 0x161   : > { %v908_v2 = vadd.f32 %v907_v54, %v906_v0  ;;  %v694_v56 = vadd.f32 %v693_v14, %v692_v37 }
 0x162   : > { %v1114_v36 = vadd.f32 %v1113_v51, %v1112_v25  ;;  %v1127_v57 = vrot.slane %v1126_v62, 2  ;;  %v896_v33 = vadd.f32 %v895_v30, %v894_v28 }
 0x163   : > { %v909_v6 = vrot.slane %v908_v2, 2 }
 0x164   : > { %v1115_v8 = vrot.slane %v1114_v36, 1  ;;  %v1128_v35 = vadd.f32 %v1127_v57, %v1126_v62  ;;  %v897_v26 = vrot.slane %v896_v33, 1 }
 0x165   : > { %v910_v7 = vadd.f32 %v909_v6, %v908_v2 }
 0x166   : > { %v1116_v55 = vadd.f32 %v1115_v8, %v1114_v36  ;;  %v898_v15 = vadd.f32 %v897_v26, %v896_v33  ;;  %v1129_v34 = vrot.slane %v1128_v35, 1 }
 0x167   : > { %v911_v29 = vrot.slane %v910_v7, 1 }
 0x168   : > { %v1134_v63 = vsel %vm1133_vm3, %v1132_v59, %v898_v15  ;;  %v1130_v43 = vadd.f32 %v1129_v34, %v1128_v35 }
 0x169   : > { %v1136_v60 = vsel %vm1135_vm4, %v1134_v63, %v1116_v55  ;;  %v912_v1 = vadd.f32 %v911_v29, %v910_v7 }
 0x16a   : > { %v1138_v41 = vsel %vm1137_vm5, %v1136_v60, %v476_v4 }
 0x16b   : > { %v1140_v16 = vsel %vm1139_vm6, %v1138_v41, %v694_v56 }
 0x16c   : > { %v1142_v13 = vsel %vm1141_vm7, %v1140_v16, %v912_v1 }
 0x16d   : > { %v1144_v47 = vsel %vm1143_vm8, %v1142_v13, %v1130_v43 }
 0x16e   : > { %1145 = vst.msk [vmem:[%s242_s19] sm:$0xff] %vm447_vm0, %v1144_v47 }
 0x16f PF: > { %s15_s14 = sadd.s32 1, %s1445_s14   ;;  %s2003_s12 = smov %s1441_s13 }
 0x170   : > { %p12_p2 = scmp.ge.s32.totalorder %s15_s14, 4   ;;  %s2004_s13 = smov %s2006_s16 }
 0x172   :  { %14 = sbr.rel (!%p12_p2) target bundleno = 2 (0x2), region = 81 }
 0x179   :  { %1196 = vsyncpa [#allocation3], 1 }
 0x17a   :  { %1198 = vsyncpa [#allocation3 + $0x1], 1 }

// kernel: wavelet_conv_forward.6
= control target key start
LH: loop header
LB: loop body
LE: loop exit
PB: predicated region body
PF: predicated region fallthrough
CT: control target
= control target key end

     0   :  { %9 = vsyncpa [#allocation3], 0  ;;  %s1218_s12 = smov 0   ;;  %s1220_s13 = smov 0   ;;  %s1569_s0 = inlined_call_operand.vmem [shape: f32[2,4,10,11], index: 0, kind: input, shape index: {}]   ;;  %s1570_s1 = inlined_call_operand.vmem [shape: f32[4,12], index: 1, kind: input, shape index: {}]   ;;  %s1571_s2 = inlined_call_operand.vmem [shape: f32[2,4,10,8], index: 2, kind: output, shape index: {0}]   ;;  %s1572_s3 = inlined_call_operand.vmem [shape: f32[2,1,8,9], index: 3, kind: output, shape index: {1}]  }
   0x1   :  { %s1222_s14 = smov 0  }
   0x2 LB: > { %s1040_s15 = sadd.s32 4294967295, %s1193_s14   ;;  %s27_s16 = sadd.s32 1, %s1189_s13  ;;  %s1193_s14 = sphi %s1222_s14, %s15_s14   ;;  %s1189_s13 = sphi %s1220_s13, %s1576_s13   ;;  %s1185_s12 = sphi %s1218_s12, %s1575_s12  }
   0x3   : > { %p29_p0 = scmp.ge.s32.totalorder %s27_s16, 2  ;;  %p1042_p1 = scmp.ge.s32.totalorder %s1193_s14, 1 }
   0x4   : > { %p137_p2 = scmp.lt.s32.totalorder %s1193_s14, 3  ;;  %p1243_p4 = scmp.eq.s32.totalorder %s1040_s15, 0 }
   0x5   : > { %s1578_s16 = smov (%p29_p0, %s27_s16), 0  ;;  %s150_s21 = sshll.u32 %s1570_s1, 4  ;;  %s151_s21 = int_to_ptr.vmem [resolvable:$true] %s150_s21 }
   0x6   : > { %p1239_p3 = pnand %p1042_p1, %p137_p2  ;;  %s1152_s22 = scalar_lea.vmem %s151_s21, 64 }
   0x7   : > { %p1153_p7 = scmp.ne.s32.totalorder %s151_s21, %s1152_s22  ;;  %p1160_p11 = scmp.lt.s32.totalorder %s151_s21, %s151_s21 }
   0x8   : > { %p1119_p5 = pneg %p1239_p3  ;;  %p1161_p12 = scmp.lt.s32.totalorder %s1152_s22, %s1152_s22 }
   0xa   : > { %p1120_p6 = pnand %p1243_p4, %p1119_p5  ;;  %p1162_p13 = por %p1161_p12, %p1160_p11 }
   0xc   : > { %p1154_p8 = pneg %p1120_p6 }
   0xe   : > { %p1155_p9 = pnand %p1154_p8, %p1153_p7 }
  0x10   : > { %p1156_p10 = pneg %p1155_p9 }
  0x12   : > { %p1163_p0 = pnand %p1162_p13, %p1156_p10 }
  0x14   : > { %1166 = shalt.err (!%p1163_p0)
}
  0x15   : > { %s1195_s23 = smov [#allocation2]   ;;  %176 = sbr.rel (%p1239_p3) target bundleno = 303 (0x12f), region = 28 }
  0x16   : > { %1122 = dma.vmem_to_smem (!%p1120_p6), %s151_s21, 64, %s1195_s23, [#allocation3]  }
  0x1c   : > { %1180 = dma.done.wait (%p1243_p4), [#allocation3], 64  }
  0x1d   : > { %1182 = vsyncadd (%p1243_p4), [#allocation3], 4294967232 }
  0x1e   : > { %182 = sfence }
  0x1f   : > { %p217_p1 = scmp.lt.s32.totalorder %s1185_s12, 1  ;;  %s1059_s24 = sld [smem:[#allocation2 + $0x2]]  ;;  %vm390_vm0 = vcmask 58368   ;;  %vm394_vm1 = vcmask 66560   ;;  %vm388_vm2 = vcmask 64512   ;;  %vm392_vm3 = vcmask 72704  }
  0x20   : > { %s1058_s25 = sld [smem:[#allocation2 + $0x1]]  ;;  %s1061_s26 = sld [smem:[#allocation2 + $0x4]]  ;;  %vm885_vm4 = vcmask 1040384   ;;  %vm887_vm5 = vcmask 1041408   ;;  %vm889_vm6 = vcmask 1042432   ;;  %vm891_vm7 = vcmask 1043456  }
  0x21   : > { %s1580_s12 = smov (!%p217_p1, %s1185_s12), 1  ;;  %s1062_s4 = sld [smem:[#allocation2 + $0x5]]  ;;  %vm893_vm8 = vcmask 1044480   ;;  %vm895_vm9 = vcmask 1045504   ;;  %vm897_vm10 = vcmask 1046528  }
  0x22   : > { %s1113_s27 = sshll.u32 %s1580_s12, 6  ;;  %s1196_s5 = smov 126  }
  0x23   : > { %s1270_s30 = scalar_lea.vmem %s1569_s0, %s1113_s27  ;;  %s1197_s6 = smov 127  }
  0x24   : > { %v1273_v0 = vld [vmem:[%s1270_s30] sm:$0xff]  ;;  %v1276_v1 = vld [vmem:[%s1270_s30 + $0x8] sm:$0x3]  ;;  %v1285_v8 = vld [vmem:[%s1270_s30 + $0x18] sm:$0x3]  ;;  %s1064_s7 = sld [smem:[#allocation2 + $0x7]] }
  0x25   : > { %v273_v2 = vstv %s1059_s24  ;;  %v1288_v10 = vld [vmem:[%s1270_s30 + $0x10] sm:$0xff]  ;;  %s1065_s8 = sld [smem:[#allocation2 + $0x8]]  ;;  %v1299_v16 = vld [vmem:[%s1270_s30 + $0x28] sm:$0x3]  ;;  %s1070_s9 = sld [smem:[#allocation2 + $0x81]]  ;;  %v1302_v18 = vld [vmem:[%s1270_s30 + $0x20] sm:$0xff] }
  0x26   : > { %v274_v3 = vmul.f32 %v273_v2, %v1273_v0  ;;  %v259_v4 = vstv %s1058_s25  ;;  %v275_v6 = vmul.f32 %v273_v2, %v1276_v1  ;;  %v293_v9 = vstv %s1061_s26  ;;  %s1304_s10 = sld [smem:[#allocation2 + $0xa]]  ;;  %s1084_s11 = sld [smem:[#allocation2 + $0x101]]  ;;  %v1315_v25 = vld [vmem:[%s1270_s30 + $0x30] sm:$0xff] }
  0x27   : > { %v260_v5 = vmul.f32 %v259_v4, %v1273_v0  ;;  %v261_v7 = vmul.f32 %v259_v4, %v1276_v1  ;;  %v295_v11 = vmul.f32 %v1285_v8, %v293_v9  ;;  %v294_v12 = vmul.f32 %v1288_v10, %v293_v9  ;;  %s1071_s15 = sld [smem:[#allocation2 + $0x82]]  ;;  %s1098_s17 = sld [smem:[#allocation2 + $0x181]] }
  0x28   : > { %278 = vrot.lane.b32.xlu1 %v274_v3, %s1196_s5  ;;  %v307_v13 = vstv %s1062_s4  ;;  %s1085_s18 = sld [smem:[#allocation2 + $0x102]]  ;;  %s1073_s20 = sld [smem:[#allocation2 + $0x84]] }
  0x29   : > { %264 = vrot.lane.b32.xlu0 %v260_v5, %s1197_s6  ;;  %v309_v14 = vmul.f32 %v1285_v8, %v307_v13  ;;  %v308_v15 = vmul.f32 %v1288_v10, %v307_v13  ;;  %s1099_s19 = sld [smem:[#allocation2 + $0x182]]  ;;  %s1087_s21 = sld [smem:[#allocation2 + $0x104]] }
  0x2a   : > { %v327_v17 = vstv %s1064_s7  ;;  %s1074_s22 = sld [smem:[#allocation2 + $0x85]]  ;;  %s1101_s23 = sld [smem:[#allocation2 + $0x184]] }
  0x2b   : > { %v329_v19 = vmul.f32 %v1299_v16, %v327_v17  ;;  %v328_v20 = vmul.f32 %v1302_v18, %v327_v17  ;;  %v341_v21 = vstv %s1065_s8  ;;  %v419_v24 = vstv %s1070_s9  ;;  %s1088_s24 = sld [smem:[#allocation2 + $0x105]]  ;;  %s1076_s26 = sld [smem:[#allocation2 + $0x87]] }
  0x2c   : > { %280 = vrot.lane.b32.xlu1 %v275_v6, %s1196_s5  ;;  %v343_v22 = vmul.f32 %v1299_v16, %v341_v21  ;;  %v342_v23 = vmul.f32 %v1302_v18, %v341_v21  ;;  %v361_v26 = vstv %s1304_s10  ;;  %v420_v27 = vmul.f32 %v419_v24, %v1273_v0  ;;  %s1102_s25 = sld [smem:[#allocation2 + $0x185]]  ;;  %s1090_s28 = sld [smem:[#allocation2 + $0x107]] }
  0x2d   : > { %266 = vrot.lane.b32.xlu0 %v261_v7, %s1197_s6  ;;  %v362_v28 = vmul.f32 %v1315_v25, %v361_v26  ;;  %v576_v29 = vstv %s1084_s11  ;;  %v421_v31 = vmul.f32 %v419_v24, %v1276_v1  ;;  %v433_v32 = vstv %s1071_s15  ;;  %s1077_s29 = sld [smem:[#allocation2 + $0x88]]  ;;  %s1104_s4 = sld [smem:[#allocation2 + $0x187]] }
  0x2e   : > { %v577_v30 = vmul.f32 %v576_v29, %v1273_v0  ;;  %v434_v33 = vmul.f32 %v433_v32, %v1273_v0  ;;  %v578_v34 = vmul.f32 %v576_v29, %v1276_v1  ;;  %v733_v35 = vstv %s1098_s17  ;;  %s1091_s7 = sld [smem:[#allocation2 + $0x108]]  ;;  %s1079_s9 = sld [smem:[#allocation2 + $0x8a]] }
  0x2f   : > { %v734_v36 = vmul.f32 %v733_v35, %v1273_v0  ;;  %v435_v37 = vmul.f32 %v433_v32, %v1276_v1  ;;  %v590_v38 = vstv %s1085_s18  ;;  %v735_v40 = vmul.f32 %v733_v35, %v1276_v1  ;;  %s1105_s8 = sld [smem:[#allocation2 + $0x188]]  ;;  %s1093_s11 = sld [smem:[#allocation2 + $0x10a]] }
  0x30   : > { %300 = vrot.lane.b32.xlu1 %v295_v11, %s1197_s6  ;;  %v591_v39 = vmul.f32 %v590_v38, %v1273_v0  ;;  %v747_v41 = vstv %s1099_s19  ;;  %v592_v43 = vmul.f32 %v590_v38, %v1276_v1  ;;  %v453_v44 = vstv %s1073_s20  ;;  %s1068_s15 = sld [smem:[#allocation2 + $0xb]]  ;;  %s254_s10 = sld [smem:[#allocation2]] }
  0x31   : > { %298 = vrot.lane.b32.xlu0 %v294_v12, %s1197_s6  ;;  %v748_v42 = vmul.f32 %v747_v41, %v1273_v0  ;;  %v454_v45 = vmul.f32 %v1288_v10, %v453_v44  ;;  %v749_v46 = vmul.f32 %v747_v41, %v1276_v1  ;;  %v610_v47 = vstv %s1087_s21  ;;  %s1107_s17 = sld [smem:[#allocation2 + $0x18a]]  ;;  %s1094_s18 = sld [smem:[#allocation2 + $0x10b]] }
  0x32   : > { %v611_v48 = vmul.f32 %v1288_v10, %v610_v47  ;;  %v455_v49 = vmul.f32 %v1285_v8, %v453_v44  ;;  %v467_v50 = vstv %s1074_s22  ;;  %v612_v52 = vmul.f32 %v1285_v8, %v610_v47  ;;  %s1413_s19 = sld [smem:[#allocation2 + $0x3]]  ;;  %s1425_s21 = sld [smem:[#allocation2 + $0x6]] }
  0x33   : > { %v468_v51 = vmul.f32 %v1288_v10, %v467_v50  ;;  %v767_v53 = vstv %s1101_s23  ;;  %v469_v55 = vmul.f32 %v1285_v8, %v467_v50  ;;  %v624_v56 = vstv %s1088_s24  ;;  %s1108_s20 = sld [smem:[#allocation2 + $0x18b]]  ;;  %s1442_s22 = sld [smem:[#allocation2 + $0x80]] }
  0x34   : > { %314 = vrot.lane.b32.xlu1 %v309_v14, %s1196_s5  ;;  %v768_v54 = vmul.f32 %v1288_v10, %v767_v53  ;;  %v625_v57 = vmul.f32 %v1288_v10, %v624_v56  ;;  %v769_v58 = vmul.f32 %v1285_v8, %v767_v53  ;;  %v781_v59 = vstv %s1102_s25  ;;  %s1083_s23 = sld [smem:[#allocation2 + $0x100]]  ;;  %s1461_s25 = sld [smem:[#allocation2 + $0x103]] }
  0x35   : > { %312 = vrot.lane.b32.xlu0 %v308_v15, %s1196_s5  ;;  %v782_v60 = vmul.f32 %v1288_v10, %v781_v59  ;;  %v626_v61 = vmul.f32 %v1285_v8, %v624_v56  ;;  %v487_v62 = vstv %s1076_s26  ;;  %v783_v2 = vmul.f32 %v1285_v8, %v781_v59  ;;  %s1097_s24 = sld [smem:[#allocation2 + $0x180]]  ;;  %s1466_s26 = sld [smem:[#allocation2 + $0x183]] }
  0x36   : > { %v488_v63 = vmul.f32 %v1302_v18, %v487_v62  ;;  %v644_v3 = vstv %s1090_s28  ;;  %v489_v5 = vmul.f32 %v1299_v16, %v487_v62  ;;  %v501_v6 = vstv %s1077_s29  ;;  %s1075_s28 = sld [smem:[#allocation2 + $0x86]] }
  0x37   : > { %v645_v4 = vmul.f32 %v1302_v18, %v644_v3  ;;  %v502_v7 = vmul.f32 %v1302_v18, %v501_v6  ;;  %v646_v9 = vmul.f32 %v1299_v16, %v644_v3  ;;  %v801_v11 = vstv %s1104_s4  ;;  %s1089_s29 = sld [smem:[#allocation2 + $0x106]] }
  0x38   : > { %334 = vrot.lane.b32.xlu1 %v329_v19, %s1197_s6  ;;  %v802_v12 = vmul.f32 %v1302_v18, %v801_v11  ;;  %v503_v13 = vmul.f32 %v1299_v16, %v501_v6  ;;  %v658_v14 = vstv %s1091_s7  ;;  %v803_v17 = vmul.f32 %v1299_v16, %v801_v11  ;;  %s1103_s4 = sld [smem:[#allocation2 + $0x186]]  ;;  %s1078_s7 = sld [smem:[#allocation2 + $0x89]] }
  0x39   : > { %332 = vrot.lane.b32.xlu0 %v328_v20, %s1197_s6  ;;  %v659_v15 = vmul.f32 %v1302_v18, %v658_v14  ;;  %v815_v19 = vstv %s1105_s8  ;;  %v660_v21 = vmul.f32 %v1299_v16, %v658_v14  ;;  %v375_v32 = vstv %s1068_s15  ;;  %s1092_s8 = sld [smem:[#allocation2 + $0x109]] }
  0x3a   : > { %v816_v20 = vmul.f32 %v1302_v18, %v815_v19  ;;  %v817_v24 = vmul.f32 %v1299_v16, %v815_v19  ;;  %v255_v38 = vstv %s254_s10  ;;  %v287_v44 = vstv %s1413_s19 }
  0x3b   : > { %v288_v50 = vmul.f32 %v1288_v10, %v287_v44 }
  0x3c   : > { %348 = vrot.lane.b32.xlu1 %v343_v22, %s1196_s5  ;;  %v1393_v22 = vld [vmem:[%s1270_s30 + $0x38] sm:$0x3]  ;;  %s1080_s30 = sld [smem:[#allocation2 + $0x8b]] }
  0x3d   : > { %346 = vrot.lane.b32.xlu0 %v342_v23, %s1196_s5  ;;  %v363_v23 = vmul.f32 %v1393_v22, %v361_v26 }
  0x40   : > { %424 = vrot.lane.b32.xlu1 %v420_v27, %s1197_s6  ;;  %v521_v27 = vstv %s1079_s9  ;;  %s1494_s9 = sld [smem:[#allocation2 + $0x189]] }
  0x41   : > { %366 = vrot.lane.b32.xlu0 %v362_v28, %s1197_s6  ;;  %v523_v28 = vmul.f32 %v1393_v22, %v521_v27  ;;  %v522_v29 = vmul.f32 %v1315_v25, %v521_v27 }
  0x42   : > { %v535_v35 = vstv %s1080_s30  ;;  %s1509_s30 = scalar_lea.vmem %s1571_s2, %s1113_s27  ;;  %s1051_s27 = sshll.u32 %s1580_s12, 3 }
  0x44   : > { %581 = vrot.lane.b32.xlu1 %v577_v30, %s1197_s6  ;;  %v678_v30 = vstv %s1093_s11 }
  0x45   : > { %426 = vrot.lane.b32.xlu0 %v421_v31, %s1197_s6  ;;  %v680_v26 = vmul.f32 %v1393_v22, %v678_v30  ;;  %v679_v31 = vmul.f32 %v1315_v25, %v678_v30 }
  0x48   : > { %438 = vrot.lane.b32.xlu1 %v434_v33, %s1196_s5  ;;  %v377_v33 = vmul.f32 %v1393_v22, %v375_v32 }
  0x49   : > { %583 = vrot.lane.b32.xlu0 %v578_v34, %s1197_s6  ;;  %v376_v34 = vmul.f32 %v1315_v25, %v375_v32  ;;  %v572_v32 = vstv %s1083_s23 }
  0x4c   : > { %738 = vrot.lane.b32.xlu1 %v734_v36, %s1197_s6  ;;  %v537_v36 = vmul.f32 %v1393_v22, %v535_v35 }
  0x4d   : > { %440 = vrot.lane.b32.xlu0 %v435_v37, %s1196_s5  ;;  %v536_v37 = vmul.f32 %v1315_v25, %v535_v35 }
  0x50   : > { %595 = vrot.lane.b32.xlu1 %v591_v39, %s1196_s5  ;;  %v835_v39 = vstv %s1107_s17 }
  0x51   : > { %740 = vrot.lane.b32.xlu0 %v735_v40, %s1197_s6  ;;  %v256_v40 = vmul.f32 %v255_v38, %v1273_v0  ;;  %v837_v41 = vmul.f32 %v1393_v22, %v835_v39 }
  0x54   : > { %752 = vrot.lane.b32.xlu1 %v748_v42, %s1196_s5  ;;  %v836_v42 = vmul.f32 %v1315_v25, %v835_v39 }
  0x55   : > { %597 = vrot.lane.b32.xlu0 %v592_v43, %s1196_s5  ;;  %v692_v43 = vstv %s1094_s18  ;;  %s242_s18 = scalar_lea.vmem %s1572_s3, %s1051_s27 }
  0x58   : > { %458 = vrot.lane.b32.xlu1 %v454_v45, %s1197_s6 }
  0x59   : > { %754 = vrot.lane.b32.xlu0 %v749_v46, %s1196_s5 }
  0x5c   : > { %615 = vrot.lane.b32.xlu1 %v611_v48, %s1197_s6  ;;  %v257_v48 = vmul.f32 %v255_v38, %v1276_v1 }
  0x5d   : > { %460 = vrot.lane.b32.xlu0 %v455_v49, %s1197_s6  ;;  %v694_v49 = vmul.f32 %v1393_v22, %v692_v43 }
  0x60   : > { %472 = vrot.lane.b32.xlu1 %v468_v51, %s1196_s5  ;;  %v693_v51 = vmul.f32 %v1315_v25, %v692_v43  ;;  %v574_v43 = vmul.f32 %v572_v32, %v1276_v1 }
  0x61   : > { %617 = vrot.lane.b32.xlu0 %v612_v52, %s1197_s6  ;;  %v849_v52 = vstv %s1108_s20 }
  0x62   : > { %v851_v59 = vmul.f32 %v1393_v22, %v849_v52 }
  0x64   : > { %772 = vrot.lane.b32.xlu1 %v768_v54, %s1197_s6 }
  0x65   : > { %474 = vrot.lane.b32.xlu0 %v469_v55, %s1196_s5 }
  0x68   : > { %629 = vrot.lane.b32.xlu1 %v625_v57, %s1196_s5  ;;  %v289_v57 = vmul.f32 %v1285_v8, %v287_v44  ;;  %v729_v44 = vstv %s1097_s24 }
  0x69   : > { %774 = vrot.lane.b32.xlu0 %v769_v58, %s1197_s6 }
  0x6c   : > { %786 = vrot.lane.b32.xlu1 %v782_v60, %s1196_s5  ;;  %v850_v60 = vmul.f32 %v1315_v25, %v849_v52 }
  0x6d   : > { %631 = vrot.lane.b32.xlu0 %v626_v61, %s1196_s5 }
  0x70   : > { %492 = vrot.lane.b32.xlu1 %v488_v63, %s1197_s6 }
  0x71   : > { %788 = vrot.lane.b32.xlu0 %v783_v2, %s1196_s5  ;;  %v321_v2 = vstv %s1425_s21 }
  0x74   : > { %649 = vrot.lane.b32.xlu1 %v645_v4, %s1197_s6 }
  0x75   : > { %494 = vrot.lane.b32.xlu0 %v489_v5, %s1197_s6 }
  0x78   : > { %506 = vrot.lane.b32.xlu1 %v502_v7, %s1196_s5  ;;  %v323_v7 = vmul.f32 %v1299_v16, %v321_v2 }
  0x79   : > { %651 = vrot.lane.b32.xlu0 %v646_v9, %s1197_s6  ;;  %v322_v9 = vmul.f32 %v1302_v18, %v321_v2  ;;  %v761_v2 = vstv %s1466_s26 }
  0x7c   : > { %806 = vrot.lane.b32.xlu1 %v802_v12, %s1197_s6 }
  0x7d   : > { %508 = vrot.lane.b32.xlu0 %v503_v13, %s1196_s5 }
  0x80   : > { %663 = vrot.lane.b32.xlu1 %v659_v15, %s1196_s5 }
  0x81   : > { %808 = vrot.lane.b32.xlu0 %v803_v17, %s1197_s6 }
  0x84   : > { %820 = vrot.lane.b32.xlu1 %v816_v20, %s1196_s5 }
  0x85   : > { %665 = vrot.lane.b32.xlu0 %v660_v21, %s1196_s5 }
  0x88   : > { %368 = vrot.lane.b32.xlu1 %v363_v23, %s1197_s6 }
  0x89   : > { %822 = vrot.lane.b32.xlu0 %v817_v24, %s1196_s5  ;;  %v415_v24 = vstv %s1442_s22 }
  0x8c   : > { %528 = vrot.lane.b32.xlu1 %v523_v28, %s1197_s6 }
  0x8d   : > { %526 = vrot.lane.b32.xlu0 %v522_v29, %s1197_s6 }
  0x90   : > { %685 = vrot.lane.b32.xlu1 %v680_v26, %s1197_s6  ;;  %v416_v26 = vmul.f32 %v415_v24, %v1273_v0 }
  0x91   : > { %683 = vrot.lane.b32.xlu0 %v679_v31, %s1197_s6 }
  0x94   : > { %382 = vrot.lane.b32.xlu1 %v377_v33, %s1196_s5 }
  0x95   : > { %380 = vrot.lane.b32.xlu0 %v376_v34, %s1196_s5 }
  0x98   : > { %542 = vrot.lane.b32.xlu1 %v537_v36, %s1196_s5 }
  0x99   : > { %540 = vrot.lane.b32.xlu0 %v536_v37, %s1196_s5  ;;  %v573_v37 = vmul.f32 %v572_v32, %v1273_v0 }
  0x9a   : > { %v279_v45 = vpop.permute.xlu1 %278 }
  0x9b   : > { %v265_v46 = vpop.permute.xlu0 %264 }
  0x9c   : > { %v270_v47 = vadd.f32 %v265_v46, %v256_v40  ;;  %842 = vrot.lane.b32.xlu1 %v837_v41, %s1197_s6  ;;  %v417_v46 = vmul.f32 %v415_v24, %v1276_v1 }
  0x9d   : > { %840 = vrot.lane.b32.xlu0 %v836_v42, %s1197_s6  ;;  %s1439_s6 = sld [smem:[#allocation2 + $0x9]] }
  0x9e   : > { %v284_v53 = vadd.f32 %v279_v45, %v270_v47  ;;  %v281_v54 = vpop.permute.xlu1 %280 }
  0x9f   : > { %v267_v55 = vpop.permute.xlu0 %266 }
  0xa0   : > { %v271_v56 = vadd.f32 %v267_v55, %v257_v48  ;;  %699 = vrot.lane.b32.xlu1 %v694_v49, %s1196_s5  ;;  %v290_v58 = vadd.f32 %v288_v50, %v284_v53  ;;  %v730_v50 = vmul.f32 %v729_v44, %v1273_v0  ;;  %v604_v55 = vstv %s1461_s25 }
  0xa1   : > { %697 = vrot.lane.b32.xlu0 %v693_v51, %s1196_s5 }
  0xa2   : > { %v285_v61 = vadd.f32 %v281_v54, %v271_v56  ;;  %v301_v62 = vpop.permute.xlu1 %300 }
  0xa3   : > { %v299_v63 = vpop.permute.xlu0 %298  ;;  %v355_v20 = vstv %s1439_s6 }
  0xa4   : > { %v291_v3 = vadd.f32 %v289_v57, %v285_v61  ;;  %v304_v4 = vadd.f32 %v299_v63, %v290_v58  ;;  %856 = vrot.lane.b32.xlu1 %v851_v59, %s1196_s5  ;;  %v356_v28 = vmul.f32 %v1315_v25, %v355_v20  ;;  %v605_v61 = vmul.f32 %v1288_v10, %v604_v55 }
  0xa5   : > { %854 = vrot.lane.b32.xlu0 %v850_v60, %s1196_s5  ;;  %s1452_s5 = sld [smem:[#allocation2 + $0x83]]  ;;  %v731_v60 = vmul.f32 %v729_v44, %v1276_v1  ;;  %v795_v44 = vstv %s1103_s4 }
  0xa6   : > { %v305_v5 = vadd.f32 %v301_v62, %v291_v3  ;;  %v315_v6 = vpop.permute.xlu1 %314 }
  0xa7   : > { %v313_v11 = vpop.permute.xlu0 %312 }
  0xa8   : > { %v319_v12 = vadd.f32 %v315_v6, %v305_v5  ;;  %v318_v13 = vadd.f32 %v313_v11, %v304_v4  ;;  %v762_v6 = vmul.f32 %v1288_v10, %v761_v2 }
  0xaa   : > { %v335_v14 = vpop.permute.xlu1 %334  ;;  %v325_v15 = vadd.f32 %v323_v7, %v319_v12  ;;  %v324_v17 = vadd.f32 %v322_v9, %v318_v13  ;;  %v606_v9 = vmul.f32 %v1285_v8, %v604_v55 }
  0xab   : > { %v333_v19 = vpop.permute.xlu0 %332  ;;  %v447_v40 = vstv %s1452_s5 }
  0xac   : > { %v339_v21 = vadd.f32 %v335_v14, %v325_v15  ;;  %v338_v23 = vadd.f32 %v333_v19, %v324_v17  ;;  %v448_v45 = vmul.f32 %v1288_v10, %v447_v40  ;;  %v449_v56 = vmul.f32 %v1285_v8, %v447_v40 }
  0xad   : > { %v763_v17 = vmul.f32 %v1285_v8, %v761_v2 }
  0xae   : > { %v349_v27 = vpop.permute.xlu1 %348 }
  0xaf   : > { %v1454_v29 = vadd.f32 %v349_v27, %v339_v21  ;;  %v347_v30 = vpop.permute.xlu0 %346  ;;  %v481_v27 = vstv %s1075_s28 }
  0xb0   : > { %v352_v31 = vadd.f32 %v347_v30, %v338_v23  ;;  %v482_v30 = vmul.f32 %v1302_v18, %v481_v27  ;;  %v483_v8 = vmul.f32 %v1299_v16, %v481_v27 }
  0xb2   : > { %v425_v33 = vpop.permute.xlu1 %424  ;;  %v358_v34 = vadd.f32 %v356_v28, %v352_v31 }
  0xb3   : > { %v430_v35 = vadd.f32 %v425_v33, %v416_v26  ;;  %v367_v36 = vpop.permute.xlu0 %366 }
  0xb4   : > { %v1458_v38 = vadd.f32 %v367_v36, %v358_v34  ;;  %v638_v36 = vstv %s1089_s29 }
  0xb6   : > { %v582_v39 = vpop.permute.xlu1 %581 }
  0xb7   : > { %v587_v41 = vadd.f32 %v582_v39, %v573_v37  ;;  %v427_v42 = vpop.permute.xlu0 %426 }
  0xb8   : > { %v431_v53 = vadd.f32 %v427_v42, %v417_v46 }
  0xba   : > { %v439_v47 = vpop.permute.xlu1 %438 }
  0xbb   : > { %v444_v48 = vadd.f32 %v439_v47, %v430_v35  ;;  %v584_v49 = vpop.permute.xlu0 %583 }
  0xbc   : > { %v588_v51 = vadd.f32 %v584_v49, %v574_v43  ;;  %v796_v49 = vmul.f32 %v1302_v18, %v795_v44 }
  0xbd   : > { %v450_v52 = vadd.f32 %v448_v45, %v444_v48 }
  0xbe   : > { %v739_v54 = vpop.permute.xlu1 %738 }
  0xbf   : > { %v744_v57 = vadd.f32 %v739_v54, %v730_v50  ;;  %v441_v58 = vpop.permute.xlu0 %440 }
  0xc0   : > { %v445_v59 = vadd.f32 %v441_v58, %v431_v53 }
  0xc2   : > { %v596_v62 = vpop.permute.xlu1 %595  ;;  %v451_v63 = vadd.f32 %v449_v56, %v445_v59 }
  0xc3   : > { %v601_v3 = vadd.f32 %v596_v62, %v587_v41  ;;  %v741_v4 = vpop.permute.xlu0 %740  ;;  %v639_v41 = vmul.f32 %v1302_v18, %v638_v36 }
  0xc4   : > { %v745_v0 = vadd.f32 %v741_v4, %v731_v60  ;;  %v797_v60 = vmul.f32 %v1299_v16, %v795_v44 }
  0xc5   : > { %v607_v5 = vadd.f32 %v605_v61, %v601_v3 }
  0xc6   : > { %v753_v7 = vpop.permute.xlu1 %752 }
  0xc7   : > { %v758_v11 = vadd.f32 %v753_v7, %v744_v57  ;;  %v598_v12 = vpop.permute.xlu0 %597 }
  0xc8   : > { %v602_v13 = vadd.f32 %v598_v12, %v588_v51 }
  0xc9   : > { %v764_v14 = vadd.f32 %v762_v6, %v758_v11 }
  0xca   : > { %v459_v1 = vpop.permute.xlu1 %458  ;;  %v608_v15 = vadd.f32 %v606_v9, %v602_v13 }
  0xcb   : > { %v755_v19 = vpop.permute.xlu0 %754  ;;  %v464_v10 = vadd.f32 %v459_v1, %v450_v52  ;;  %v640_v52 = vmul.f32 %v1299_v16, %v638_v36 }
  0xcc   : > { %v759_v21 = vadd.f32 %v755_v19, %v745_v0 }
  0xce   : > { %v616_v23 = vpop.permute.xlu1 %615  ;;  %v765_v24 = vadd.f32 %v763_v17, %v759_v21  ;;  %v515_v17 = vstv %s1078_s7 }
  0xcf   : > { %v461_v28 = vpop.permute.xlu0 %460  ;;  %v621_v40 = vadd.f32 %v616_v23, %v607_v5  ;;  %v517_v27 = vmul.f32 %v1393_v22, %v515_v17 }
  0xd0   : > { %v465_v34 = vadd.f32 %v461_v28, %v451_v63  ;;  %v672_v28 = vstv %s1092_s8 }
  0xd1   : > { %v674_v36 = vmul.f32 %v1393_v22, %v672_v28 }
  0xd2   : > { %v473_v26 = vpop.permute.xlu1 %472 }
  0xd3   : > { %v478_v31 = vadd.f32 %v473_v26, %v464_v10  ;;  %v618_v32 = vpop.permute.xlu0 %617 }
  0xd4   : > { %v622_v50 = vadd.f32 %v618_v32, %v608_v15 }
  0xd5   : > { %v484_v33 = vadd.f32 %v482_v30, %v478_v31  ;;  %v673_v31 = vmul.f32 %v1315_v25, %v672_v28 }
  0xd6   : > { %v773_v35 = vpop.permute.xlu1 %772 }
  0xd7   : > { %v475_v37 = vpop.permute.xlu0 %474  ;;  %v778_v47 = vadd.f32 %v773_v35, %v764_v14  ;;  %v357_v14 = vmul.f32 %v1393_v22, %v355_v20  ;;  %v516_v20 = vmul.f32 %v1315_v25, %v515_v17 }
  0xd8   : > { %v479_v39 = vadd.f32 %v475_v37, %v465_v34  ;;  %v829_v37 = vstv %s1494_s9 }
  0xda   : > { %v630_v42 = vpop.permute.xlu1 %629  ;;  %v485_v43 = vadd.f32 %v483_v8, %v479_v39 }
  0xdb   : > { %v635_v45 = vadd.f32 %v630_v42, %v621_v40  ;;  %v775_v46 = vpop.permute.xlu0 %774 }
  0xdc   : > { %v779_v57 = vadd.f32 %v775_v46, %v765_v24  ;;  %v359_v24 = vadd.f32 %v357_v14, %v1454_v29 }
  0xdd   : > { %v641_v48 = vadd.f32 %v639_v41, %v635_v45 }
  0xde   : > { %v787_v51 = vpop.permute.xlu1 %786 }
  0xdf   : > { %v792_v53 = vadd.f32 %v787_v51, %v778_v47  ;;  %v632_v54 = vpop.permute.xlu0 %631 }
  0xe0   : > { %v636_v55 = vadd.f32 %v632_v54, %v622_v50 }
  0xe1   : > { %v1482_v56 = vadd.f32 %v796_v49, %v792_v53 }
  0xe2   : > { %v493_v58 = vpop.permute.xlu1 %492  ;;  %v642_v59 = vadd.f32 %v640_v52, %v636_v55 }
  0xe3   : > { %v789_v61 = vpop.permute.xlu0 %788  ;;  %v498_v19 = vadd.f32 %v493_v58, %v484_v33 }
  0xe4   : > { %v793_v62 = vadd.f32 %v789_v61, %v779_v57 }
  0xe6   : > { %v650_v63 = vpop.permute.xlu1 %649  ;;  %v799_v2 = vadd.f32 %v797_v60, %v793_v62 }
  0xe7   : > { %v495_v18 = vpop.permute.xlu0 %494  ;;  %v655_v39 = vadd.f32 %v650_v63, %v641_v48 }
  0xe8   : > { %v499_v15 = vadd.f32 %v495_v18, %v485_v43 }
  0xea   : > { %v507_v3 = vpop.permute.xlu1 %506 }
  0xeb   : > { %v652_v4 = vpop.permute.xlu0 %651  ;;  %v512_v30 = vadd.f32 %v507_v3, %v498_v19 }
  0xec   : > { %v656_v43 = vadd.f32 %v652_v4, %v642_v59 }
  0xed   : > { %v518_v35 = vadd.f32 %v516_v20, %v512_v30 }
  0xee   : > { %v1485_v0 = vpop.permute.xlu1 %806 }
  0xef   : > { %v509_v5 = vpop.permute.xlu0 %508  ;;  %v812_v61 = vadd.f32 %v1485_v0, %v1482_v56  ;;  %v830_v56 = vmul.f32 %v1315_v25, %v829_v37 }
  0xf0   : > { %v513_v23 = vadd.f32 %v509_v5, %v499_v15 }
  0xf2   : > { %v664_v6 = vpop.permute.xlu1 %663  ;;  %v519_v32 = vadd.f32 %v517_v27, %v513_v23 }
  0xf3   : > { %v809_v7 = vpop.permute.xlu0 %808  ;;  %v669_v49 = vadd.f32 %v664_v6, %v655_v39 }
  0xf4   : > { %v813_v52 = vadd.f32 %v809_v7, %v799_v2  ;;  %v831_v2 = vmul.f32 %v1393_v22, %v829_v37 }
  0xf6   : > { %v1487_v9 = vpop.permute.xlu1 %820 }
  0xf7   : > { %v666_v11 = vpop.permute.xlu0 %665  ;;  %v826_v0 = vadd.f32 %v1487_v9, %v812_v61 }
  0xf8   : > { %v670_v53 = vadd.f32 %v666_v11, %v656_v43 }
  0xf9   : > { %v832_v9 = vadd.f32 %v830_v56, %v826_v0 }
  0xfa   : > { %v369_v12 = vpop.permute.xlu1 %368  ;;  %v676_v11 = vadd.f32 %v674_v36, %v670_v53 }
  0xfb   : > { %v1489_v13 = vpop.permute.xlu0 %822  ;;  %v373_v26 = vadd.f32 %v369_v12, %v359_v24  ;;  %v675_v12 = vadd.f32 %v673_v31, %v669_v49 }
  0xfc   : > { %v827_v3 = vadd.f32 %v1489_v13, %v813_v52 }
  0xfe   : > { %v529_v16 = vpop.permute.xlu1 %528  ;;  %v833_v24 = vadd.f32 %v831_v2, %v827_v3 }
  0xff   : > { %v527_v1 = vpop.permute.xlu0 %526  ;;  %v533_v40 = vadd.f32 %v529_v16, %v519_v32 }
 0x100   : > { %v532_v44 = vadd.f32 %v527_v1, %v518_v35 }
 0x102   : > { %v1496_v21 = vpop.permute.xlu1 %685 }
 0x103   : > { %v1500_v10 = vpop.permute.xlu0 %683  ;;  %v690_v15 = vadd.f32 %v1496_v21, %v676_v11 }
 0x104   : > { %v689_v13 = vadd.f32 %v1500_v10, %v675_v12 }
 0x106   : > { %v383_v29 = vpop.permute.xlu1 %382 }
 0x107   : > { %v387_v33 = vadd.f32 %v383_v29, %v373_v26  ;;  %v381_v34 = vpop.permute.xlu0 %380 }
 0x108   : > { %v386_v8 = vadd.f32 %v381_v34, %v1458_v38 }
 0x109   : > { %391 = vst.msk [vmem:[%s1509_s30 + $0x8] sm:$0x3] %vm390_vm0, %v387_v33  ;;  %v395_v41 = vsel %vm394_vm1, %v387_v33, 0.0  ;;  %v404_v42 = vmul.f32 %v387_v33, %v387_v33 }
 0x10a   : > { %389 = vst.msk [vmem:[%s1509_s30] sm:$0xff] %vm388_vm2, %v386_v8  ;;  %v393_v45 = vsel %vm392_vm3, %v386_v8, 0.0  ;;  %v403_v46 = vmul.f32 %v386_v8, %v386_v8  ;;  %v543_v47 = vpop.permute.xlu1 %542 }
 0x10b   : > { %v406_v38 = vsel %vm394_vm1, %v404_v42, 0.0  ;;  %v396_v48 = vadd.f32 %v395_v41, %v393_v45  ;;  %v547_v50 = vadd.f32 %v543_v47, %v533_v40  ;;  %v541_v51 = vpop.permute.xlu0 %540 }
 0x10c   : > { %v405_v54 = vsel %vm392_vm3, %v403_v46, 0.0  ;;  %v546_v55 = vadd.f32 %v541_v51, %v532_v44 }
 0x10d   : > { %v397_v57 = vrot.slane %v396_v48, 4  ;;  %v407_v58 = vadd.f32 %v406_v38, %v405_v54  ;;  %1082 = vst.msk [vmem:[%s1509_s30 + $0x18] sm:$0x3] %vm390_vm0, %v547_v50  ;;  %v552_v59 = vsel %vm394_vm1, %v547_v50, 0.0  ;;  %v561_v60 = vmul.f32 %v547_v50, %v547_v50 }
 0x10e   : > { %1081 = vst.msk [vmem:[%s1509_s30 + $0x10] sm:$0xff] %vm388_vm2, %v546_v55  ;;  %v551_v62 = vsel %vm392_vm3, %v546_v55, 0.0  ;;  %v560_v63 = vmul.f32 %v546_v55, %v546_v55  ;;  %v843_v18 = vpop.permute.xlu1 %842 }
 0x10f   : > { %v398_v4 = vadd.f32 %v397_v57, %v396_v48  ;;  %v563_v5 = vsel %vm394_vm1, %v561_v60, 0.0  ;;  %v553_v6 = vadd.f32 %v552_v59, %v551_v62  ;;  %v841_v7 = vpop.permute.xlu0 %840  ;;  %v408_v20 = vrot.slane %v407_v58, 4 }
 0x110   : > { %v562_v16 = vsel %vm392_vm3, %v560_v63, 0.0  ;;  %v847_v26 = vadd.f32 %v843_v18, %v833_v24  ;;  %v846_v36 = vadd.f32 %v841_v7, %v832_v9 }
 0x111   : > { %v399_v14 = vrot.slane %v398_v4, 2  ;;  %v554_v1 = vrot.slane %v553_v6, 4  ;;  %v564_v22 = vadd.f32 %v563_v5, %v562_v16  ;;  %v409_v42 = vadd.f32 %v408_v20, %v407_v58 }
 0x112   : > { %v700_v17 = vpop.permute.xlu1 %699 }
 0x113   : > { %v400_v19 = vadd.f32 %v399_v14, %v398_v4  ;;  %v555_v23 = vadd.f32 %v554_v1, %v553_v6  ;;  %v698_v27 = vpop.permute.xlu0 %697  ;;  %v704_v28 = vadd.f32 %v700_v17, %v690_v15  ;;  %v565_v35 = vrot.slane %v564_v22, 4 }
 0x114   : > { %v703_v30 = vadd.f32 %v698_v27, %v689_v13  ;;  %v410_v60 = vrot.slane %v409_v42, 2 }
 0x115   : > { %v556_v25 = vrot.slane %v555_v23, 2  ;;  %1096 = vst.msk [vmem:[%s1509_s30 + $0x28] sm:$0x3] %vm390_vm0, %v704_v28  ;;  %v709_v31 = vsel %vm394_vm1, %v704_v28, 0.0  ;;  %v718_v29 = vmul.f32 %v704_v28, %v704_v28  ;;  %v401_v33 = vrot.slane %v400_v19, 1 }
 0x116   : > { %1095 = vst.msk [vmem:[%s1509_s30 + $0x20] sm:$0xff] %vm388_vm2, %v703_v30  ;;  %v708_v21 = vsel %vm392_vm3, %v703_v30, 0.0  ;;  %v717_v10 = vmul.f32 %v703_v30, %v703_v30  ;;  %v857_v32 = vpop.permute.xlu1 %856  ;;  %v566_v50 = vadd.f32 %v565_v35, %v564_v22  ;;  %v411_v7 = vadd.f32 %v410_v60, %v409_v42 }
 0x117   : > { %v557_v34 = vadd.f32 %v556_v25, %v555_v23  ;;  %v855_v8 = vpop.permute.xlu0 %854  ;;  %v720_v37 = vsel %vm394_vm1, %v718_v29, 0.0  ;;  %v710_v39 = vadd.f32 %v709_v31, %v708_v21  ;;  %v861_v41 = vadd.f32 %v857_v32, %v847_v26 }
 0x118   : > { %v719_v40 = vsel %vm392_vm3, %v717_v10, 0.0  ;;  %v860_v49 = vadd.f32 %v855_v8, %v846_v36  ;;  %v402_v38 = vadd.f32 %v401_v33, %v400_v19  ;;  %v567_v63 = vrot.slane %v566_v50, 2 }
 0x119   : > { %v558_v43 = vrot.slane %v557_v34, 1  ;;  %v721_v44 = vadd.f32 %v720_v37, %v719_v40  ;;  %v711_v45 = vrot.slane %v710_v39, 4  ;;  %1110 = vst.msk [vmem:[%s1509_s30 + $0x38] sm:$0x3] %vm390_vm0, %v861_v41  ;;  %v866_v46 = vsel %vm394_vm1, %v861_v41, 0.0 }
 0x11a   : > { %v875_v47 = vmul.f32 %v861_v41, %v861_v41  ;;  %1109 = vst.msk [vmem:[%s1509_s30 + $0x30] sm:$0xff] %vm388_vm2, %v860_v49  ;;  %v865_v54 = vsel %vm392_vm3, %v860_v49, 0.0  ;;  %v874_v55 = vmul.f32 %v860_v49, %v860_v49  ;;  %v568_v12 = vadd.f32 %v567_v63, %v566_v50 }
 0x11b   : > { %v559_v48 = vadd.f32 %v558_v43, %v557_v34  ;;  %v722_v51 = vrot.slane %v721_v44, 4  ;;  %v712_v52 = vadd.f32 %v711_v45, %v710_v39  ;;  %v867_v59 = vadd.f32 %v866_v46, %v865_v54 }
 0x11c   : > { %v877_v53 = vsel %vm394_vm1, %v875_v47, 0.0  ;;  %v876_v62 = vsel %vm392_vm3, %v874_v55, 0.0  ;;  %v412_v15 = vrot.slane %v411_v7, 1  ;;  %v569_v17 = vrot.slane %v568_v12, 1 }
 0x11d   : > { %v886_v57 = vsel %vm885_vm4, %v402_v38, %v559_v48  ;;  %v723_v58 = vadd.f32 %v722_v51, %v721_v44  ;;  %v713_v61 = vrot.slane %v712_v52, 2  ;;  %v868_v2 = vrot.slane %v867_v59, 4 }
 0x11e   : > { %v878_v18 = vadd.f32 %v877_v53, %v876_v62  ;;  %v413_v30 = vadd.f32 %v412_v15, %v411_v7  ;;  %v570_v20 = vadd.f32 %v569_v17, %v568_v12 }
 0x11f   : > { %v714_v3 = vadd.f32 %v713_v61, %v712_v52  ;;  %v724_v4 = vrot.slane %v723_v58, 2  ;;  %v869_v5 = vadd.f32 %v868_v2, %v867_v59 }
 0x120   : > { %v879_v6 = vrot.slane %v878_v18, 4 }
 0x121   : > { %v715_v11 = vrot.slane %v714_v3, 1  ;;  %v870_v16 = vrot.slane %v869_v5, 2  ;;  %v725_v14 = vadd.f32 %v724_v4, %v723_v58 }
 0x122   : > { %v880_v56 = vadd.f32 %v879_v6, %v878_v18 }
 0x123   : > { %v716_v0 = vadd.f32 %v715_v11, %v714_v3  ;;  %v871_v1 = vadd.f32 %v870_v16, %v869_v5  ;;  %v726_v24 = vrot.slane %v725_v14, 1 }
 0x124   : > { %v881_v22 = vrot.slane %v880_v56, 2 }
 0x125   : > { %v888_v13 = vsel %vm887_vm5, %v886_v57, %v716_v0  ;;  %v872_v19 = vrot.slane %v871_v1, 1  ;;  %v727_v26 = vadd.f32 %v726_v24, %v725_v14 }
 0x126   : > { %v882_v23 = vadd.f32 %v881_v22, %v880_v56 }
 0x127   : > { %v873_v27 = vadd.f32 %v872_v19, %v871_v1 }
 0x128   : > { %v883_v28 = vrot.slane %v882_v23, 1 }
 0x129   : > { %v890_v25 = vsel %vm889_vm6, %v888_v13, %v873_v27 }
 0x12a   : > { %v892_v9 = vsel %vm891_vm7, %v890_v25, %v413_v30  ;;  %v884_v31 = vadd.f32 %v883_v28, %v882_v23 }
 0x12b   : > { %v894_v29 = vsel %vm893_vm8, %v892_v9, %v570_v20 }
 0x12c   : > { %v896_v21 = vsel %vm895_vm9, %v894_v29, %v727_v26 }
 0x12d   : > { %v898_v10 = vsel %vm897_vm10, %v896_v21, %v884_v31 }
 0x12e   : > { %899 = vst.msk [vmem:[%s242_s18] sm:$0xff] %vm392_vm3, %v898_v10 }
 0x12f PF: > { %s15_s14 = sadd.s32 1, %s1193_s14   ;;  %s1575_s12 = smov %s1189_s13 }
 0x130   : > { %p12_p2 = scmp.ge.s32.totalorder %s15_s14, 4   ;;  %s1576_s13 = smov %s1578_s16 }
 0x132   :  { %14 = sbr.rel (!%p12_p2) target bundleno = 2 (0x2), region = 81 }
 0x139   :  { %950 = vsyncpa [#allocation3], 1 }
 0x13a   :  { %952 = vsyncpa [#allocation3 + $0x1], 1 }

// kernel: wavelet_conv_forward.7
= control target key start
LH: loop header
LB: loop body
LE: loop exit
PB: predicated region body
PF: predicated region fallthrough
CT: control target
= control target key end

     0   :  { %7 = vsyncpa [#allocation3], 0  ;;  %s1119_s9 = smov 0   ;;  %s1121_s10 = smov 0   ;;  %s1257_s0 = inlined_call_operand.vmem [shape: f32[2,4,5,16], index: 0, kind: input, shape index: {}]   ;;  %s1258_s1 = inlined_call_operand.vmem [shape: f32[2,4], index: 1, kind: input, shape index: {}]   ;;  %s1259_s2 = inlined_call_operand.vmem [shape: f32[2,4,5,4], index: 2, kind: output, shape index: {}]  }
   0x1   :  { %s1123_s11 = smov 0  }
   0x2 LB: > { %s917_s12 = sadd.s32 4294967295, %s1098_s11   ;;  %s25_s13 = sadd.s32 1, %s1094_s10  ;;  %s1098_s11 = sphi %s1123_s11, %s13_s11   ;;  %s1094_s10 = sphi %s1121_s10, %s1265_s10   ;;  %s1090_s9 = sphi %s1119_s9, %s1264_s9  }
   0x3   : > { %p27_p0 = scmp.ge.s32.totalorder %s25_s13, 2  ;;  %p919_p1 = scmp.ge.s32.totalorder %s1098_s11, 1 }
   0x4   : > { %p107_p2 = scmp.lt.s32.totalorder %s1098_s11, 3  ;;  %p1144_p4 = scmp.eq.s32.totalorder %s917_s12, 0 }
   0x5   : > { %s1267_s13 = smov (%p27_p0, %s25_s13), 0  ;;  %s120_s18 = sshll.u32 %s1258_s1, 4  ;;  %s121_s18 = int_to_ptr.vmem [resolvable:$true] %s120_s18 }
   0x6   : > { %p1140_p3 = pnand %p919_p1, %p107_p2  ;;  %s1057_s19 = scalar_lea.vmem %s121_s18, 32 }
   0x7   : > { %p1058_p7 = scmp.ne.s32.totalorder %s121_s18, %s1057_s19  ;;  %p1065_p11 = scmp.lt.s32.totalorder %s121_s18, %s121_s18 }
   0x8   : > { %p1023_p5 = pneg %p1140_p3  ;;  %p1066_p12 = scmp.lt.s32.totalorder %s1057_s19, %s1057_s19 }
   0xa   : > { %p1024_p6 = pnand %p1144_p4, %p1023_p5  ;;  %p1067_p13 = por %p1066_p12, %p1065_p11 }
   0xc   : > { %p1059_p8 = pneg %p1024_p6 }
   0xe   : > { %p1060_p9 = pnand %p1059_p8, %p1058_p7 }
  0x10   : > { %p1061_p10 = pneg %p1060_p9 }
  0x12   : > { %p1068_p0 = pnand %p1067_p13, %p1061_p10 }
  0x14   : > { %1071 = shalt.err (!%p1068_p0)
}
  0x15   : > { %s1100_s20 = smov [#allocation2]   ;;  %144 = sbr.rel (%p1140_p3) target bundleno = 271 (0x10f), region = 28 }
  0x16   : > { %1026 = dma.vmem_to_smem (!%p1024_p6), %s121_s18, 32, %s1100_s20, [#allocation3]  }
  0x1c   : > { %1085 = dma.done.wait (%p1144_p4), [#allocation3], 32  }
  0x1d   : > { %1087 = vsyncadd (%p1144_p4), [#allocation3], 4294967264 }
  0x1e   : > { %150 = sfence }
  0x1f   : > { %v189_v0 = vlaneseq  ;;  %p173_p1 = scmp.lt.s32.totalorder %s1090_s9, 1  ;;  %s202_s21 = sld [smem:[#allocation2]]  ;;  %v1101_v1 = vmov 0.0   ;;  %vm1102_vm0 = vmmov 0   ;;  %v1103_v10 = vmov 1.0  }
  0x20   : > { %979 = vmatprep.subr.mxu0 %v1101_v1  ;;  %984 = vmatprep.subr.mxu1 %v1101_v1  ;;  %s1164_s22 = sld [smem:[#allocation2 + $0x80]]  ;;  %s936_s23 = sld [smem:[#allocation2 + $0x1]]  ;;  %vm209_vm3 = vcmask 64512   ;;  %vm354_vm4 = vcmask 28672  }
  0x21   : > { %v1166_v2 = vshrl.u32 %v189_v0, 7  ;;  %v192_v3 = vand.u32 127, %v189_v0  ;;  %981 = vmatprep.mubr.msk.f32.mxu0 %vm1102_vm0, %v1101_v1  ;;  %986 = vmatprep.mubr.msk.f32.mxu1 %vm1102_vm0, %v1101_v1  ;;  %s1269_s9 = smov (!%p173_p1, %s1090_s9), 1  ;;  %s937_s24 = sld [smem:[#allocation2 + $0x81]] }
  0x22   : > { %s944_s25 = sld [smem:[#allocation2 + $0x2]]  ;;  %s961_s26 = sshll.u32 %s1269_s9, 5 }
  0x23   : > { %v193_v4 = vmul.u32 2, %v192_v3  ;;  %s1176_s27 = sld [smem:[#allocation2 + $0x82]]  ;;  %s180_s30 = scalar_lea.vmem %s1257_s0, %s961_s26 }
  0x24   : > { %s1183_s3 = sld [smem:[#allocation2 + $0x3]]  ;;  %v201_v7 = vld [vmem:[%s180_s30] sm:$0x1f]  ;;  %v935_v9 = vld [vmem:[%s180_s30 + $0x8] sm:$0x1f]  ;;  %s188_s7 = scalar_lea.vmem %s1259_s2, %s961_s26 }
  0x25   : > { %vm1186_vm1 = vcmp.eq.s32.totalorder %v1166_v2, %v193_v4  ;;  %v197_v6 = vadd.s32 1, %v193_v4  ;;  %v203_v8 = vstv %s202_s21  ;;  %v943_v14 = vld [vmem:[%s180_s30 + $0x10] sm:$0x1f]  ;;  %s1193_s4 = sld [smem:[#allocation2 + $0x83]]  ;;  %v951_v22 = vld [vmem:[%s180_s30 + $0x18] sm:$0x1f] }
  0x26   : > { %980 = vmatpush3.msk.msra.mxu0 %vm1186_vm1, %v1103_v10  ;;  %v204_v11 = vmul.f32 %v203_v8, %v201_v7  ;;  %v206_v12 = vstv %s1164_s22  ;;  %v359_v13 = vstv %s936_s23 }
  0x27   : > { %vm198_vm2 = vcmp.eq.s32.totalorder %v1166_v2, %v197_v6  ;;  %989 = vmatprep.subr.mxu0 %v1101_v1  ;;  %v360_v15 = vmul.f32 %v935_v9, %v359_v13  ;;  %v362_v17 = vstv %s937_s24 }
  0x28   : > { %985 = vmatpush3.msk.msra.mxu1 %vm198_vm2, %v1103_v10  ;;  %v207_v16 = vadd.f32 %v206_v12, %v204_v11  ;;  %v514_v18 = vstv %s944_s25 }
  0x29   : > { %994 = vmatprep.subr.mxu1 %v1101_v1  ;;  %v363_v19 = vadd.f32 %v362_v17, %v360_v15  ;;  %v515_v20 = vmul.f32 %v943_v14, %v514_v18  ;;  %v517_v21 = vstv %s1176_s27 }
  0x2a   : > { %v208_v23 = vmax.f32 %v207_v16, 0.0  ;;  %v669_v24 = vstv %s1183_s3 }
  0x2b   : > { %v364_v25 = vmax.f32 %v363_v19, 0.0  ;;  %v518_v26 = vadd.f32 %v517_v21, %v515_v20  ;;  %v670_v27 = vmul.f32 %v951_v22, %v669_v24  ;;  %v672_v28 = vstv %s1193_s4 }
  0x2c   : > { %982 = vmatmul.mubr.msk.f32.vlgmr.msra.gmra.mrb[0].mxu0 %vm209_vm3, %v208_v23  ;;  %987 = vmatmul.mubr.msk.f32.vlgmr.msra.gmra.mrb[0].mxu1 %vm209_vm3, %v208_v23 }
  0x2d   : > { %990 = vmatpush3.msk.msra.mxu0 %vm1186_vm1, %v1103_v10  ;;  %995 = vmatpush3.msk.msra.mxu1 %vm198_vm2, %v1103_v10  ;;  %v519_v29 = vmax.f32 %v518_v26, 0.0  ;;  %v673_v30 = vadd.f32 %v672_v28, %v670_v27 }
  0x2e   : > { %991 = vmatprep.mubr.msk.f32.mxu0 %vm1102_vm0, %v1101_v1  ;;  %996 = vmatprep.mubr.msk.f32.mxu1 %vm1102_vm0, %v1101_v1 }
  0x2f   : > { %999 = vmatprep.subr.mxu0 %v1101_v1  ;;  %1004 = vmatprep.subr.mxu1 %v1101_v1  ;;  %v674_v31 = vmax.f32 %v673_v30, 0.0 }
  0x30   : > { %992 = vmatmul.mubr.msk.f32.vlgmr.msra.gmra.mrb[2].mxu0 %vm209_vm3, %v364_v25  ;;  %997 = vmatmul.mubr.msk.f32.vlgmr.msra.gmra.mrb[2].mxu1 %vm209_vm3, %v364_v25 }
  0x31   : > { %1000 = vmatpush3.msk.msra.mxu0 %vm1186_vm1, %v1103_v10  ;;  %1005 = vmatpush3.msk.msra.mxu1 %vm198_vm2, %v1103_v10 }
  0x32   : > { %1001 = vmatprep.mubr.msk.f32.mxu0 %vm1102_vm0, %v1101_v1  ;;  %1006 = vmatprep.mubr.msk.f32.mxu1 %vm1102_vm0, %v1101_v1 }
  0x33   : > { %1009 = vmatprep.subr.mxu0 %v1101_v1  ;;  %1014 = vmatprep.subr.mxu1 %v1101_v1 }
  0x34   : > { %1002 = vmatmul.mubr.msk.f32.vlgmr.msra.gmra.mrb[4].mxu0 %vm209_vm3, %v519_v29  ;;  %1007 = vmatmul.mubr.msk.f32.vlgmr.msra.gmra.mrb[4].mxu1 %vm209_vm3, %v519_v29 }
  0x35   : > { %1010 = vmatpush3.msk.msra.mxu0 %vm1186_vm1, %v1103_v10  ;;  %1015 = vmatpush3.msk.msra.mxu1 %vm198_vm2, %v1103_v10 }
  0x36   : > { %1011 = vmatprep.mubr.msk.f32.mxu0 %vm1102_vm0, %v1101_v1  ;;  %1016 = vmatprep.mubr.msk.f32.mxu1 %vm1102_vm0, %v1101_v1 }
  0x38   : > { %1012 = vmatmul.mubr.msk.f32.vlgmr.msra.gmra.mrb[6].mxu0 %vm209_vm3, %v674_v31  ;;  %1017 = vmatmul.mubr.msk.f32.vlgmr.msra.gmra.mrb[6].mxu1 %vm209_vm3, %v674_v31 }
  0xff   : > { %v279_v32 = vpop.f32.mrb[0].mxu0  ;;  %v349_v33 = vpop.f32.mrb[0].mxu1 }
 0x100   : > { %v353_v34 = vmax.f32 %v279_v32, %v349_v33  ;;  %v983_v35 = vpop.f32.mrb[1].mxu0  ;;  %v988_v36 = vpop.f32.mrb[1].mxu1 }
 0x102   : > { %355 = vst.msk [vmem:[%s188_s7] sm:$0x1f] %vm354_vm4, %v353_v34 }
 0x103   : > { %v434_v37 = vpop.f32.mrb[2].mxu0  ;;  %v504_v38 = vpop.f32.mrb[2].mxu1 }
 0x104   : > { %v508_v39 = vmax.f32 %v434_v37, %v504_v38  ;;  %v993_v40 = vpop.f32.mrb[3].mxu0  ;;  %v998_v41 = vpop.f32.mrb[3].mxu1 }
 0x106   : > { %942 = vst.msk [vmem:[%s188_s7 + $0x8] sm:$0x1f] %vm354_vm4, %v508_v39 }
 0x107   : > { %v589_v42 = vpop.f32.mrb[4].mxu0  ;;  %v659_v43 = vpop.f32.mrb[4].mxu1 }
 0x108   : > { %v663_v44 = vmax.f32 %v589_v42, %v659_v43  ;;  %v1003_v45 = vpop.f32.mrb[5].mxu0  ;;  %v1008_v46 = vpop.f32.mrb[5].mxu1 }
 0x10a   : > { %950 = vst.msk [vmem:[%s188_s7 + $0x10] sm:$0x1f] %vm354_vm4, %v663_v44 }
 0x10b   : > { %v744_v47 = vpop.f32.mrb[6].mxu0  ;;  %v814_v48 = vpop.f32.mrb[6].mxu1 }
 0x10c   : > { %v818_v49 = vmax.f32 %v744_v47, %v814_v48  ;;  %v1013_v50 = vpop.f32.mrb[7].mxu0  ;;  %v1018_v51 = vpop.f32.mrb[7].mxu1 }
 0x10e   : > { %958 = vst.msk [vmem:[%s188_s7 + $0x18] sm:$0x1f] %vm354_vm4, %v818_v49 }
 0x10f PF: > { %s13_s11 = sadd.s32 1, %s1098_s11   ;;  %s1264_s9 = smov %s1094_s10 }
 0x110   : > { %p10_p2 = scmp.ge.s32.totalorder %s13_s11, 4   ;;  %s1265_s10 = smov %s1267_s13 }
 0x112   :  { %12 = sbr.rel (!%p10_p2) target bundleno = 2 (0x2), region = 69 }
 0x119   :  { %848 = vsyncpa [#allocation3], 1 }
 0x11a   :  { %850 = vsyncpa [#allocation3 + $0x1], 1 }

</bundles_post_ra>
